<compile_context>
chip_gen: v5e
topology: v5e:2x2
jax: 0.10.0
libtpu: 0.0.40
codegen_flags: <defaults>
</compile_context>

<pallas_src>
import functools

import jax
import jax.numpy as jnp
from jax import lax
from jax.experimental import pallas as pl
from jax.experimental.pallas import tpu as pltpu


# ----------------------------------------------------------------------------
# In-kernel helpers
# ----------------------------------------------------------------------------
def _lstm_cell(gates, c_prev, H):
    """gates: (B, 4H) in PyTorch order [i, f, g, o]; returns (h, c)."""
    i_g = jax.nn.sigmoid(gates[:, 0 * H:1 * H])
    f_g = jax.nn.sigmoid(gates[:, 1 * H:2 * H])
    g_g = jnp.tanh(gates[:, 2 * H:3 * H])
    o_g = jax.nn.sigmoid(gates[:, 3 * H:4 * H])
    c_new = f_g * c_prev + i_g * g_g
    h_new = o_g * jnp.tanh(c_new)
    return h_new, c_new


def _bidir_recurrence(gx_sc, whhf_ref, whhb_ref, *, S, B, H, hf_sc=None, hb_sc=None):
    """Run the fused fwd+bwd recurrence over gx_sc (S*B, 8H).

    gx_sc rows [t*B:(t+1)*B, :4H]  = fwd input-projected gates at time t
    gx_sc rows [t*B:(t+1)*B, 4H:]  = bwd input-projected gates at time t
    Optionally stores per-step hiddens into hf_sc / hb_sc ((S*B, H) scratch).
    Returns final (h_f, c_f, h_b, c_b).
    """
    def body(t, carry):
        h_f, c_f, h_b, c_b = carry
        rf = t * B                  # forward reads/writes position t
        rb = (S - 1 - t) * B        # backward reads/writes position S-1-t

        gx_f = gx_sc[pl.ds(rf, B), :]            # (B, 8H)
        gx_b = gx_sc[pl.ds(rb, B), :]            # (B, 8H)

        gates_f = gx_f[:, :4 * H] + jnp.dot(
            h_f, whhf_ref[...], preferred_element_type=jnp.float32)
        gates_b = gx_b[:, 4 * H:] + jnp.dot(
            h_b, whhb_ref[...], preferred_element_type=jnp.float32)

        h_f, c_f = _lstm_cell(gates_f, c_f, H)
        h_b, c_b = _lstm_cell(gates_b, c_b, H)

        if hf_sc is not None:
            hf_sc[pl.ds(rf, B), :] = h_f
            hb_sc[pl.ds(rb, B), :] = h_b
        return h_f, c_f, h_b, c_b

    zero = jnp.zeros((B, H), jnp.float32)
    return lax.fori_loop(0, S, body, (zero, zero, zero, zero), unroll=True)


# ----------------------------------------------------------------------------
# Pallas kernels
# ----------------------------------------------------------------------------
def _bilstm_seq_kernel(x_ref, wih_ref, whhf_ref, whhb_ref, b_ref,
                       hseq_ref, gx_sc, hf_sc, hb_sc,
                       *, seq_len, batch, hidden):
    """Intermediate bidirectional LSTM layer: emits the full hidden sequence."""
    S, B, H = seq_len, batch, hidden

    # Hoisted input projection for BOTH directions: one (S*B, In) @ (In, 8H) matmul.
    gx_sc[...] = (jnp.dot(x_ref[...], wih_ref[...],
                          preferred_element_type=jnp.float32) + b_ref[...])

    _bidir_recurrence(gx_sc, whhf_ref, whhb_ref,
                      S=S, B=B, H=H, hf_sc=hf_sc, hb_sc=hb_sc)

    # Single slab store: [h_fwd | h_bwd] -> (S*B, 2H), consumed directly by next layer.
    hseq_ref[...] = jnp.concatenate([hf_sc[...], hb_sc[...]], axis=-1)


def _bilstm_final_kernel(x_ref, wih_ref, whhf_ref, whhb_ref, b_ref,
                         fcw_ref, fcb_ref, out_ref, gx_sc,
                         *, seq_len, batch, hidden):
    """Last bidirectional LSTM layer fused with the fc Linear.

    Only the final (h_fwd, h_bwd) are needed (matches torch hidden[-2], hidden[-1]),
    so no hidden sequence, no c_final and no separate Linear kernel are materialized.
    """
    S, B, H = seq_len, batch, hidden

    gx_sc[...] = (jnp.dot(x_ref[...], wih_ref[...],
                          preferred_element_type=jnp.float32) + b_ref[...])

    h_f, _, h_b, _ = _bidir_recurrence(gx_sc, whhf_ref, whhb_ref, S=S, B=B, H=H)

    hidden_cat = jnp.concatenate([h_f, h_b], axis=-1)          # (B, 2H)
    # TODO(synk): dropout on hidden_cat treated as identity (eval mode).
    out_ref[...] = (jnp.dot(hidden_cat, fcw_ref[...],
                            preferred_element_type=jnp.float32) + fcb_ref[...])


# ----------------------------------------------------------------------------
# Wrappers
# ----------------------------------------------------------------------------
_VMEM = pl.BlockSpec(memory_space=pltpu.MemorySpace.VMEM)


def bilstm_layer(x2d, wih, whhf, whhb, bias, *, seq_len, batch, hidden):
    """x2d: (S*B, In) -> hidden sequence (S*B, 2H)."""
    SB = seq_len * batch
    H = hidden
    kernel = functools.partial(_bilstm_seq_kernel,
                               seq_len=seq_len, batch=batch, hidden=H)
    return pl.pallas_call(
        kernel,
        out_shape=jax.ShapeDtypeStruct((SB, 2 * H), jnp.float32),
        in_specs=[_VMEM] * 5,
        out_specs=_VMEM,
        scratch_shapes=[
            pltpu.VMEM((SB, 8 * H), jnp.float32),   # hoisted input-projection gates
            pltpu.VMEM((SB, H), jnp.float32),       # fwd hidden sequence
            pltpu.VMEM((SB, H), jnp.float32),       # bwd hidden sequence
        ],
    )(x2d, wih, whhf, whhb, bias)


def bilstm_final_layer(x2d, wih, whhf, whhb, bias, fc_w_t, fc_b,
                       *, seq_len, batch, hidden):
    """x2d: (S*B, In) -> logits (B, output_dim), fc fused into the LSTM kernel."""
    SB = seq_len * batch
    H = hidden
    out_dim = fc_w_t.shape[-1]
    kernel = functools.partial(_bilstm_final_kernel,
                               seq_len=seq_len, batch=batch, hidden=H)
    return pl.pallas_call(
        kernel,
        out_shape=jax.ShapeDtypeStruct((batch, out_dim), jnp.float32),
        in_specs=[_VMEM] * 7,
        out_specs=_VMEM,
        scratch_shapes=[
            pltpu.VMEM((SB, 8 * H), jnp.float32),   # hoisted input-projection gates
        ],
    )(x2d, wih, whhf, whhb, bias, fc_w_t, fc_b)


# ----------------------------------------------------------------------------
# Model wiring (glue in plain JAX: embedding gather only)
# ----------------------------------------------------------------------------
def rnn_forward(text, params, n_layers):
    S, B = text.shape
    H = params["lstm"][0]["whh_f"].shape[0]

    # Embedding lookup (gather) + dropout (identity in eval mode).
    # TODO(synk): embedding gather kept in plain JAX (data-dependent row gather).
    x2d = params["embedding"][text].reshape(S * B, -1)      # (S*B, E), free reshape

    for layer in range(n_layers - 1):
        p = params["lstm"][layer]
        x2d = bilstm_layer(x2d, p["wih"], p["whh_f"], p["whh_b"], p["bias"],
                           seq_len=S, batch=B, hidden=H)
        # TODO(synk): inter-layer LSTM dropout treated as identity (eval mode).

    p = params["lstm"][n_layers - 1]
    return bilstm_final_layer(x2d, p["wih"], p["whh_f"], p["whh_b"], p["bias"],
                              params["fc_w_t"], params["fc_b"],
                              seq_len=S, batch=B, hidden=H)   # (B, output_dim)


def init_params(key, vocab_size, embedding_dim, hidden_dim, output_dim,
                n_layers, padding_idx):
    keys = jax.random.split(key, 8 * n_layers + 3)
    ki = iter(keys)

    def u(shape, scale=0.1):
        return jax.random.uniform(next(ki), shape, jnp.float32, -scale, scale)

    emb = u((vocab_size, embedding_dim)).at[padding_idx].set(0.0)

    H = hidden_dim
    layers = []
    for layer in range(n_layers):
        in_dim = embedding_dim if layer == 0 else 2 * hidden_dim
        # torch-layout weights, packed ONCE into the kernel layout.
        w_ih_f, w_hh_f = u((4 * H, in_dim)), u((4 * H, H))
        b_ih_f, b_hh_f = u((4 * H,)), u((4 * H,))
        w_ih_b, w_hh_b = u((4 * H, in_dim)), u((4 * H, H))
        b_ih_b, b_hh_b = u((4 * H,)), u((4 * H,))
        layers.append({
            "wih": jnp.concatenate([w_ih_f.T, w_ih_b.T], axis=1),     # (In, 8H)
            "whh_f": w_hh_f.T,                                        # (H, 4H)
            "whh_b": w_hh_b.T,                                        # (H, 4H)
            "bias": jnp.concatenate(
                [b_ih_f + b_hh_f, b_ih_b + b_hh_b]).reshape(1, 8 * H),  # (1, 8H)
        })

    fc_w = u((output_dim, 2 * H))
    fc_b = u((output_dim,))
    return {"embedding": emb, "lstm": layers,
            "fc_w_t": fc_w.T,                    # (2H, O)
            "fc_b": fc_b.reshape(1, output_dim)}


# ----------------------------------------------------------------------------
if __name__ == "__main__":
    VOCAB = 32
    EMBED = 16
    HIDDEN = 32
    OUTPUT = 4
    N_LAYERS = 2
    PADDING_IDX = 0
    SEQ = 8
    BATCH = 2

    root = jax.random.PRNGKey(0)
    k_param, k_text = jax.random.split(root)

    params = init_params(k_param, VOCAB, EMBED, HIDDEN, OUTPUT,
                         N_LAYERS, PADDING_IDX)
    text = jax.random.randint(k_text, (SEQ, BATCH), 0, VOCAB, dtype=jnp.int32)

    fwd = jax.jit(functools.partial(rnn_forward, n_layers=N_LAYERS))
    out = jax.block_until_ready(fwd(text, params))

    assert out.shape == (BATCH, OUTPUT), out.shape
    assert out.dtype == jnp.float32
    print("KERNEL_OK")
</pallas_src>

<mosaic_0001>
module attributes {stable_mosaic.version = 11 : i64} {
  func.func @_bilstm_final_kernel(%arg0: memref<16x64xf32, #tpu.memory_space<vmem>>, %arg1: memref<64x256xf32, #tpu.memory_space<vmem>>, %arg2: memref<32x128xf32, #tpu.memory_space<vmem>>, %arg3: memref<32x128xf32, #tpu.memory_space<vmem>>, %arg4: memref<1x256xf32, #tpu.memory_space<vmem>>, %arg5: memref<64x4xf32, #tpu.memory_space<vmem>>, %arg6: memref<1x4xf32, #tpu.memory_space<vmem>>, %arg7: memref<2x4xf32, #tpu.memory_space<vmem>>, %arg8: memref<16x256xf32, #tpu.memory_space<vmem>>) attributes {dimension_semantics = [], scalar_prefetch = 0 : i64, scratch_operands = 1 : i64, tpu.core_type = #tpu.core_type<tc>} {
    %c0 = arith.constant 0 : index
    %c0_0 = arith.constant 0 : index
    %0 = vector.load %arg0[%c0, %c0_0] : memref<16x64xf32, #tpu.memory_space<vmem>>, vector<16x64xf32>
    %c0_1 = arith.constant 0 : index
    %c0_2 = arith.constant 0 : index
    %1 = vector.load %arg1[%c0_1, %c0_2] : memref<64x256xf32, #tpu.memory_space<vmem>>, vector<64x256xf32>
    %cst = arith.constant dense<0.000000e+00> : vector<16x256xf32>
    %2 = tpu.matmul %0, %1, %cst {dimension_numbers = #tpu.dot_dimension_numbers<[1], [0], [0], [1], [0, 0, 1, 1], [], []>} : vector<16x64xf32>, vector<64x256xf32>, vector<16x256xf32> -> vector<16x256xf32>
    %c0_3 = arith.constant 0 : index
    %c0_4 = arith.constant 0 : index
    %3 = vector.load %arg4[%c0_3, %c0_4] : memref<1x256xf32, #tpu.memory_space<vmem>>, vector<1x256xf32>
    %4 = vector.broadcast %3 : vector<1x256xf32> to vector<16x256xf32>
    %5 = arith.addf %2, %4 : vector<16x256xf32>
    %c0_5 = arith.constant 0 : index
    %c0_6 = arith.constant 0 : index
    %6 = vector.load %arg8[%c0_5, %c0_6] : memref<16x256xf32, #tpu.memory_space<vmem>>, vector<16x256xf32>
    tpu.vector_store %arg8[%c0_5, %c0_6], %5 {strides = array<i32>} : memref<16x256xf32, #tpu.memory_space<vmem>>, vector<16x256xf32>,
    %cst_7 = arith.constant 0.000000e+00 : f32
    %7 = vector.broadcast %cst_7 : f32 to vector<2x32xf32>
    %c0_i32 = arith.constant 0 : i32
    %c2_i32 = arith.constant 2 : i32
    %8 = arith.muli %c0_i32, %c2_i32 : i32
    %c7_i32 = arith.constant 7 : i32
    %9 = arith.subi %c7_i32, %c0_i32 : i32
    %c2_i32_8 = arith.constant 2 : i32
    %10 = arith.muli %9, %c2_i32_8 : i32
    %11 = arith.index_cast %8 : i32 to index
    %c0_9 = arith.constant 0 : index
    %12 = vector.load %arg8[%11, %c0_9] : memref<16x256xf32, #tpu.memory_space<vmem>>, vector<2x256xf32>
    %13 = arith.index_cast %10 : i32 to index
    %c0_10 = arith.constant 0 : index
    %14 = vector.load %arg8[%13, %c0_10] : memref<16x256xf32, #tpu.memory_space<vmem>>, vector<2x256xf32>
    %15 = vector.extract_strided_slice %12 {offsets = [0, 0], sizes = [2, 128], strides = [1, 1]} : vector<2x256xf32> to vector<2x128xf32>
    %c0_11 = arith.constant 0 : index
    %c0_12 = arith.constant 0 : index
    %16 = vector.load %arg2[%c0_11, %c0_12] : memref<32x128xf32, #tpu.memory_space<vmem>>, vector<32x128xf32>
    %cst_13 = arith.constant dense<0.000000e+00> : vector<2x128xf32>
    %17 = tpu.matmul %7, %16, %cst_13 {dimension_numbers = #tpu.dot_dimension_numbers<[1], [0], [0], [1], [0, 0, 1, 1], [], []>} : vector<2x32xf32>, vector<32x128xf32>, vector<2x128xf32> -> vector<2x128xf32>
    %18 = arith.addf %15, %17 : vector<2x128xf32>
    %19 = vector.extract_strided_slice %14 {offsets = [0, 128], sizes = [2, 128], strides = [1, 1]} : vector<2x256xf32> to vector<2x128xf32>
    %c0_14 = arith.constant 0 : index
    %c0_15 = arith.constant 0 : index
    %20 = vector.load %arg3[%c0_14, %c0_15] : memref<32x128xf32, #tpu.memory_space<vmem>>, vector<32x128xf32>
    %cst_16 = arith.constant dense<0.000000e+00> : vector<2x128xf32>
    %21 = tpu.matmul %7, %20, %cst_16 {dimension_numbers = #tpu.dot_dimension_numbers<[1], [0], [0], [1], [0, 0, 1, 1], [], []>} : vector<2x32xf32>, vector<32x128xf32>, vector<2x128xf32> -> vector<2x128xf32>
    %22 = arith.addf %19, %21 : vector<2x128xf32>
    %23 = vector.extract_strided_slice %18 {offsets = [0, 0], sizes = [2, 32], strides = [1, 1]} : vector<2x128xf32> to vector<2x32xf32>
    %24 = arith.negf %23 : vector<2x32xf32>
    %25 = math.exp %24 : vector<2x32xf32>
    %cst_17 = arith.constant 1.000000e+00 : f32
    %26 = vector.broadcast %cst_17 : f32 to vector<2x32xf32>
    %27 = arith.addf %26, %25 : vector<2x32xf32>
    %28 = arith.divf %26, %27 : vector<2x32xf32>
    %29 = vector.extract_strided_slice %18 {offsets = [0, 32], sizes = [2, 32], strides = [1, 1]} : vector<2x128xf32> to vector<2x32xf32>
    %30 = arith.negf %29 : vector<2x32xf32>
    %31 = math.exp %30 : vector<2x32xf32>
    %cst_18 = arith.constant 1.000000e+00 : f32
    %32 = vector.broadcast %cst_18 : f32 to vector<2x32xf32>
    %33 = arith.addf %32, %31 : vector<2x32xf32>
    %34 = arith.divf %32, %33 : vector<2x32xf32>
    %35 = vector.extract_strided_slice %18 {offsets = [0, 64], sizes = [2, 32], strides = [1, 1]} : vector<2x128xf32> to vector<2x32xf32>
    %36 = math.tanh %35 : vector<2x32xf32>
    %37 = vector.extract_strided_slice %18 {offsets = [0, 96], sizes = [2, 32], strides = [1, 1]} : vector<2x128xf32> to vector<2x32xf32>
    %38 = arith.negf %37 : vector<2x32xf32>
    %39 = math.exp %38 : vector<2x32xf32>
    %cst_19 = arith.constant 1.000000e+00 : f32
    %40 = vector.broadcast %cst_19 : f32 to vector<2x32xf32>
    %41 = arith.addf %40, %39 : vector<2x32xf32>
    %42 = arith.divf %40, %41 : vector<2x32xf32>
    %43 = arith.mulf %34, %7 : vector<2x32xf32>
    %44 = arith.mulf %28, %36 : vector<2x32xf32>
    %45 = arith.addf %43, %44 : vector<2x32xf32>
    %46 = math.tanh %45 : vector<2x32xf32>
    %47 = arith.mulf %42, %46 : vector<2x32xf32>
    %48 = vector.extract_strided_slice %22 {offsets = [0, 0], sizes = [2, 32], strides = [1, 1]} : vector<2x128xf32> to vector<2x32xf32>
    %49 = arith.negf %48 : vector<2x32xf32>
    %50 = math.exp %49 : vector<2x32xf32>
    %cst_20 = arith.constant 1.000000e+00 : f32
    %51 = vector.broadcast %cst_20 : f32 to vector<2x32xf32>
    %52 = arith.addf %51, %50 : vector<2x32xf32>
    %53 = arith.divf %51, %52 : vector<2x32xf32>
    %54 = vector.extract_strided_slice %22 {offsets = [0, 32], sizes = [2, 32], strides = [1, 1]} : vector<2x128xf32> to vector<2x32xf32>
    %55 = arith.negf %54 : vector<2x32xf32>
    %56 = math.exp %55 : vector<2x32xf32>
    %cst_21 = arith.constant 1.000000e+00 : f32
    %57 = vector.broadcast %cst_21 : f32 to vector<2x32xf32>
    %58 = arith.addf %57, %56 : vector<2x32xf32>
    %59 = arith.divf %57, %58 : vector<2x32xf32>
    %60 = vector.extract_strided_slice %22 {offsets = [0, 64], sizes = [2, 32], strides = [1, 1]} : vector<2x128xf32> to vector<2x32xf32>
    %61 = math.tanh %60 : vector<2x32xf32>
    %62 = vector.extract_strided_slice %22 {offsets = [0, 96], sizes = [2, 32], strides = [1, 1]} : vector<2x128xf32> to vector<2x32xf32>
    %63 = arith.negf %62 : vector<2x32xf32>
    %64 = math.exp %63 : vector<2x32xf32>
    %cst_22 = arith.constant 1.000000e+00 : f32
    %65 = vector.broadcast %cst_22 : f32 to vector<2x32xf32>
    %66 = arith.addf %65, %64 : vector<2x32xf32>
    %67 = arith.divf %65, %66 : vector<2x32xf32>
    %68 = arith.mulf %59, %7 : vector<2x32xf32>
    %69 = arith.mulf %53, %61 : vector<2x32xf32>
    %70 = arith.addf %68, %69 : vector<2x32xf32>
    %71 = math.tanh %70 : vector<2x32xf32>
    %72 = arith.mulf %67, %71 : vector<2x32xf32>
    %c1_i32 = arith.constant 1 : i32
    %c2_i32_23 = arith.constant 2 : i32
    %73 = arith.muli %c1_i32, %c2_i32_23 : i32
    %c7_i32_24 = arith.constant 7 : i32
    %74 = arith.subi %c7_i32_24, %c1_i32 : i32
    %c2_i32_25 = arith.constant 2 : i32
    %75 = arith.muli %74, %c2_i32_25 : i32
    %76 = arith.index_cast %73 : i32 to index
    %c0_26 = arith.constant 0 : index
    %77 = vector.load %arg8[%76, %c0_26] : memref<16x256xf32, #tpu.memory_space<vmem>>, vector<2x256xf32>
    %78 = arith.index_cast %75 : i32 to index
    %c0_27 = arith.constant 0 : index
    %79 = vector.load %arg8[%78, %c0_27] : memref<16x256xf32, #tpu.memory_space<vmem>>, vector<2x256xf32>
    %80 = vector.extract_strided_slice %77 {offsets = [0, 0], sizes = [2, 128], strides = [1, 1]} : vector<2x256xf32> to vector<2x128xf32>
    %c0_28 = arith.constant 0 : index
    %c0_29 = arith.constant 0 : index
    %81 = vector.load %arg2[%c0_28, %c0_29] : memref<32x128xf32, #tpu.memory_space<vmem>>, vector<32x128xf32>
    %cst_30 = arith.constant dense<0.000000e+00> : vector<2x128xf32>
    %82 = tpu.matmul %47, %81, %cst_30 {dimension_numbers = #tpu.dot_dimension_numbers<[1], [0], [0], [1], [0, 0, 1, 1], [], []>} : vector<2x32xf32>, vector<32x128xf32>, vector<2x128xf32> -> vector<2x128xf32>
    %83 = arith.addf %80, %82 : vector<2x128xf32>
    %84 = vector.extract_strided_slice %79 {offsets = [0, 128], sizes = [2, 128], strides = [1, 1]} : vector<2x256xf32> to vector<2x128xf32>
    %c0_31 = arith.constant 0 : index
    %c0_32 = arith.constant 0 : index
    %85 = vector.load %arg3[%c0_31, %c0_32] : memref<32x128xf32, #tpu.memory_space<vmem>>, vector<32x128xf32>
    %cst_33 = arith.constant dense<0.000000e+00> : vector<2x128xf32>
    %86 = tpu.matmul %72, %85, %cst_33 {dimension_numbers = #tpu.dot_dimension_numbers<[1], [0], [0], [1], [0, 0, 1, 1], [], []>} : vector<2x32xf32>, vector<32x128xf32>, vector<2x128xf32> -> vector<2x128xf32>
    %87 = arith.addf %84, %86 : vector<2x128xf32>
    %88 = vector.extract_strided_slice %83 {offsets = [0, 0], sizes = [2, 32], strides = [1, 1]} : vector<2x128xf32> to vector<2x32xf32>
    %89 = arith.negf %88 : vector<2x32xf32>
    %90 = math.exp %89 : vector<2x32xf32>
    %cst_34 = arith.constant 1.000000e+00 : f32
    %91 = vector.broadcast %cst_34 : f32 to vector<2x32xf32>
    %92 = arith.addf %91, %90 : vector<2x32xf32>
    %93 = arith.divf %91, %92 : vector<2x32xf32>
    %94 = vector.extract_strided_slice %83 {offsets = [0, 32], sizes = [2, 32], strides = [1, 1]} : vector<2x128xf32> to vector<2x32xf32>
    %95 = arith.negf %94 : vector<2x32xf32>
    %96 = math.exp %95 : vector<2x32xf32>
    %cst_35 = arith.constant 1.000000e+00 : f32
    %97 = vector.broadcast %cst_35 : f32 to vector<2x32xf32>
    %98 = arith.addf %97, %96 : vector<2x32xf32>
    %99 = arith.divf %97, %98 : vector<2x32xf32>
    %100 = vector.extract_strided_slice %83 {offsets = [0, 64], sizes = [2, 32], strides = [1, 1]} : vector<2x128xf32> to vector<2x32xf32>
    %101 = math.tanh %100 : vector<2x32xf32>
    %102 = vector.extract_strided_slice %83 {offsets = [0, 96], sizes = [2, 32], strides = [1, 1]} : vector<2x128xf32> to vector<2x32xf32>
    %103 = arith.negf %102 : vector<2x32xf32>
    %104 = math.exp %103 : vector<2x32xf32>
    %cst_36 = arith.constant 1.000000e+00 : f32
    %105 = vector.broadcast %cst_36 : f32 to vector<2x32xf32>
    %106 = arith.addf %105, %104 : vector<2x32xf32>
    %107 = arith.divf %105, %106 : vector<2x32xf32>
    %108 = arith.mulf %99, %45 : vector<2x32xf32>
    %109 = arith.mulf %93, %101 : vector<2x32xf32>
    %110 = arith.addf %108, %109 : vector<2x32xf32>
    %111 = math.tanh %110 : vector<2x32xf32>
    %112 = arith.mulf %107, %111 : vector<2x32xf32>
    %113 = vector.extract_strided_slice %87 {offsets = [0, 0], sizes = [2, 32], strides = [1, 1]} : vector<2x128xf32> to vector<2x32xf32>
    %114 = arith.negf %113 : vector<2x32xf32>
    %115 = math.exp %114 : vector<2x32xf32>
    %cst_37 = arith.constant 1.000000e+00 : f32
    %116 = vector.broadcast %cst_37 : f32 to vector<2x32xf32>
    %117 = arith.addf %116, %115 : vector<2x32xf32>
    %118 = arith.divf %116, %117 : vector<2x32xf32>
    %119 = vector.extract_strided_slice %87 {offsets = [0, 32], sizes = [2, 32], strides = [1, 1]} : vector<2x128xf32> to vector<2x32xf32>
    %120 = arith.negf %119 : vector<2x32xf32>
    %121 = math.exp %120 : vector<2x32xf32>
    %cst_38 = arith.constant 1.000000e+00 : f32
    %122 = vector.broadcast %cst_38 : f32 to vector<2x32xf32>
    %123 = arith.addf %122, %121 : vector<2x32xf32>
    %124 = arith.divf %122, %123 : vector<2x32xf32>
    %125 = vector.extract_strided_slice %87 {offsets = [0, 64], sizes = [2, 32], strides = [1, 1]} : vector<2x128xf32> to vector<2x32xf32>
    %126 = math.tanh %125 : vector<2x32xf32>
    %127 = vector.extract_strided_slice %87 {offsets = [0, 96], sizes = [2, 32], strides = [1, 1]} : vector<2x128xf32> to vector<2x32xf32>
    %128 = arith.negf %127 : vector<2x32xf32>
    %129 = math.exp %128 : vector<2x32xf32>
    %cst_39 = arith.constant 1.000000e+00 : f32
    %130 = vector.broadcast %cst_39 : f32 to vector<2x32xf32>
    %131 = arith.addf %130, %129 : vector<2x32xf32>
    %132 = arith.divf %130, %131 : vector<2x32xf32>
    %133 = arith.mulf %124, %70 : vector<2x32xf32>
    %134 = arith.mulf %118, %126 : vector<2x32xf32>
    %135 = arith.addf %133, %134 : vector<2x32xf32>
    %136 = math.tanh %135 : vector<2x32xf32>
    %137 = arith.mulf %132, %136 : vector<2x32xf32>
    %c2_i32_40 = arith.constant 2 : i32
    %c2_i32_41 = arith.constant 2 : i32
    %138 = arith.muli %c2_i32_40, %c2_i32_41 : i32
    %c7_i32_42 = arith.constant 7 : i32
    %139 = arith.subi %c7_i32_42, %c2_i32_40 : i32
    %c2_i32_43 = arith.constant 2 : i32
    %140 = arith.muli %139, %c2_i32_43 : i32
    %141 = arith.index_cast %138 : i32 to index
    %c0_44 = arith.constant 0 : index
    %142 = vector.load %arg8[%141, %c0_44] : memref<16x256xf32, #tpu.memory_space<vmem>>, vector<2x256xf32>
    %143 = arith.index_cast %140 : i32 to index
    %c0_45 = arith.constant 0 : index
    %144 = vector.load %arg8[%143, %c0_45] : memref<16x256xf32, #tpu.memory_space<vmem>>, vector<2x256xf32>
    %145 = vector.extract_strided_slice %142 {offsets = [0, 0], sizes = [2, 128], strides = [1, 1]} : vector<2x256xf32> to vector<2x128xf32>
    %c0_46 = arith.constant 0 : index
    %c0_47 = arith.constant 0 : index
    %146 = vector.load %arg2[%c0_46, %c0_47] : memref<32x128xf32, #tpu.memory_space<vmem>>, vector<32x128xf32>
    %cst_48 = arith.constant dense<0.000000e+00> : vector<2x128xf32>
    %147 = tpu.matmul %112, %146, %cst_48 {dimension_numbers = #tpu.dot_dimension_numbers<[1], [0], [0], [1], [0, 0, 1, 1], [], []>} : vector<2x32xf32>, vector<32x128xf32>, vector<2x128xf32> -> vector<2x128xf32>
    %148 = arith.addf %145, %147 : vector<2x128xf32>
    %149 = vector.extract_strided_slice %144 {offsets = [0, 128], sizes = [2, 128], strides = [1, 1]} : vector<2x256xf32> to vector<2x128xf32>
    %c0_49 = arith.constant 0 : index
    %c0_50 = arith.constant 0 : index
    %150 = vector.load %arg3[%c0_49, %c0_50] : memref<32x128xf32, #tpu.memory_space<vmem>>, vector<32x128xf32>
    %cst_51 = arith.constant dense<0.000000e+00> : vector<2x128xf32>
    %151 = tpu.matmul %137, %150, %cst_51 {dimension_numbers = #tpu.dot_dimension_numbers<[1], [0], [0], [1], [0, 0, 1, 1], [], []>} : vector<2x32xf32>, vector<32x128xf32>, vector<2x128xf32> -> vector<2x128xf32>
    %152 = arith.addf %149, %151 : vector<2x128xf32>
    %153 = vector.extract_strided_slice %148 {offsets = [0, 0], sizes = [2, 32], strides = [1, 1]} : vector<2x128xf32> to vector<2x32xf32>
    %154 = arith.negf %153 : vector<2x32xf32>
    %155 = math.exp %154 : vector<2x32xf32>
    %cst_52 = arith.constant 1.000000e+00 : f32
    %156 = vector.broadcast %cst_52 : f32 to vector<2x32xf32>
    %157 = arith.addf %156, %155 : vector<2x32xf32>
    %158 = arith.divf %156, %157 : vector<2x32xf32>
    %159 = vector.extract_strided_slice %148 {offsets = [0, 32], sizes = [2, 32], strides = [1, 1]} : vector<2x128xf32> to vector<2x32xf32>
    %160 = arith.negf %159 : vector<2x32xf32>
    %161 = math.exp %160 : vector<2x32xf32>
    %cst_53 = arith.constant 1.000000e+00 : f32
    %162 = vector.broadcast %cst_53 : f32 to vector<2x32xf32>
    %163 = arith.addf %162, %161 : vector<2x32xf32>
    %164 = arith.divf %162, %163 : vector<2x32xf32>
    %165 = vector.extract_strided_slice %148 {offsets = [0, 64], sizes = [2, 32], strides = [1, 1]} : vector<2x128xf32> to vector<2x32xf32>
    %166 = math.tanh %165 : vector<2x32xf32>
    %167 = vector.extract_strided_slice %148 {offsets = [0, 96], sizes = [2, 32], strides = [1, 1]} : vector<2x128xf32> to vector<2x32xf32>
    %168 = arith.negf %167 : vector<2x32xf32>
    %169 = math.exp %168 : vector<2x32xf32>
    %cst_54 = arith.constant 1.000000e+00 : f32
    %170 = vector.broadcast %cst_54 : f32 to vector<2x32xf32>
    %171 = arith.addf %170, %169 : vector<2x32xf32>
    %172 = arith.divf %170, %171 : vector<2x32xf32>
    %173 = arith.mulf %164, %110 : vector<2x32xf32>
    %174 = arith.mulf %158, %166 : vector<2x32xf32>
    %175 = arith.addf %173, %174 : vector<2x32xf32>
    %176 = math.tanh %175 : vector<2x32xf32>
    %177 = arith.mulf %172, %176 : vector<2x32xf32>
    %178 = vector.extract_strided_slice %152 {offsets = [0, 0], sizes = [2, 32], strides = [1, 1]} : vector<2x128xf32> to vector<2x32xf32>
    %179 = arith.negf %178 : vector<2x32xf32>
    %180 = math.exp %179 : vector<2x32xf32>
    %cst_55 = arith.constant 1.000000e+00 : f32
    %181 = vector.broadcast %cst_55 : f32 to vector<2x32xf32>
    %182 = arith.addf %181, %180 : vector<2x32xf32>
    %183 = arith.divf %181, %182 : vector<2x32xf32>
    %184 = vector.extract_strided_slice %152 {offsets = [0, 32], sizes = [2, 32], strides = [1, 1]} : vector<2x128xf32> to vector<2x32xf32>
    %185 = arith.negf %184 : vector<2x32xf32>
    %186 = math.exp %185 : vector<2x32xf32>
    %cst_56 = arith.constant 1.000000e+00 : f32
    %187 = vector.broadcast %cst_56 : f32 to vector<2x32xf32>
    %188 = arith.addf %187, %186 : vector<2x32xf32>
    %189 = arith.divf %187, %188 : vector<2x32xf32>
    %190 = vector.extract_strided_slice %152 {offsets = [0, 64], sizes = [2, 32], strides = [1, 1]} : vector<2x128xf32> to vector<2x32xf32>
    %191 = math.tanh %190 : vector<2x32xf32>
    %192 = vector.extract_strided_slice %152 {offsets = [0, 96], sizes = [2, 32], strides = [1, 1]} : vector<2x128xf32> to vector<2x32xf32>
    %193 = arith.negf %192 : vector<2x32xf32>
    %194 = math.exp %193 : vector<2x32xf32>
    %cst_57 = arith.constant 1.000000e+00 : f32
    %195 = vector.broadcast %cst_57 : f32 to vector<2x32xf32>
    %196 = arith.addf %195, %194 : vector<2x32xf32>
    %197 = arith.divf %195, %196 : vector<2x32xf32>
    %198 = arith.mulf %189, %135 : vector<2x32xf32>
    %199 = arith.mulf %183, %191 : vector<2x32xf32>
    %200 = arith.addf %198, %199 : vector<2x32xf32>
    %201 = math.tanh %200 : vector<2x32xf32>
    %202 = arith.mulf %197, %201 : vector<2x32xf32>
    %c3_i32 = arith.constant 3 : i32
    %c2_i32_58 = arith.constant 2 : i32
    %203 = arith.muli %c3_i32, %c2_i32_58 : i32
    %c7_i32_59 = arith.constant 7 : i32
    %204 = arith.subi %c7_i32_59, %c3_i32 : i32
    %c2_i32_60 = arith.constant 2 : i32
    %205 = arith.muli %204, %c2_i32_60 : i32
    %206 = arith.index_cast %203 : i32 to index
    %c0_61 = arith.constant 0 : index
    %207 = vector.load %arg8[%206, %c0_61] : memref<16x256xf32, #tpu.memory_space<vmem>>, vector<2x256xf32>
    %208 = arith.index_cast %205 : i32 to index
    %c0_62 = arith.constant 0 : index
    %209 = vector.load %arg8[%208, %c0_62] : memref<16x256xf32, #tpu.memory_space<vmem>>, vector<2x256xf32>
    %210 = vector.extract_strided_slice %207 {offsets = [0, 0], sizes = [2, 128], strides = [1, 1]} : vector<2x256xf32> to vector<2x128xf32>
    %c0_63 = arith.constant 0 : index
    %c0_64 = arith.constant 0 : index
    %211 = vector.load %arg2[%c0_63, %c0_64] : memref<32x128xf32, #tpu.memory_space<vmem>>, vector<32x128xf32>
    %cst_65 = arith.constant dense<0.000000e+00> : vector<2x128xf32>
    %212 = tpu.matmul %177, %211, %cst_65 {dimension_numbers = #tpu.dot_dimension_numbers<[1], [0], [0], [1], [0, 0, 1, 1], [], []>} : vector<2x32xf32>, vector<32x128xf32>, vector<2x128xf32> -> vector<2x128xf32>
    %213 = arith.addf %210, %212 : vector<2x128xf32>
    %214 = vector.extract_strided_slice %209 {offsets = [0, 128], sizes = [2, 128], strides = [1, 1]} : vector<2x256xf32> to vector<2x128xf32>
    %c0_66 = arith.constant 0 : index
    %c0_67 = arith.constant 0 : index
    %215 = vector.load %arg3[%c0_66, %c0_67] : memref<32x128xf32, #tpu.memory_space<vmem>>, vector<32x128xf32>
    %cst_68 = arith.constant dense<0.000000e+00> : vector<2x128xf32>
    %216 = tpu.matmul %202, %215, %cst_68 {dimension_numbers = #tpu.dot_dimension_numbers<[1], [0], [0], [1], [0, 0, 1, 1], [], []>} : vector<2x32xf32>, vector<32x128xf32>, vector<2x128xf32> -> vector<2x128xf32>
    %217 = arith.addf %214, %216 : vector<2x128xf32>
    %218 = vector.extract_strided_slice %213 {offsets = [0, 0], sizes = [2, 32], strides = [1, 1]} : vector<2x128xf32> to vector<2x32xf32>
    %219 = arith.negf %218 : vector<2x32xf32>
    %220 = math.exp %219 : vector<2x32xf32>
    %cst_69 = arith.constant 1.000000e+00 : f32
    %221 = vector.broadcast %cst_69 : f32 to vector<2x32xf32>
    %222 = arith.addf %221, %220 : vector<2x32xf32>
    %223 = arith.divf %221, %222 : vector<2x32xf32>
    %224 = vector.extract_strided_slice %213 {offsets = [0, 32], sizes = [2, 32], strides = [1, 1]} : vector<2x128xf32> to vector<2x32xf32>
    %225 = arith.negf %224 : vector<2x32xf32>
    %226 = math.exp %225 : vector<2x32xf32>
    %cst_70 = arith.constant 1.000000e+00 : f32
    %227 = vector.broadcast %cst_70 : f32 to vector<2x32xf32>
    %228 = arith.addf %227, %226 : vector<2x32xf32>
    %229 = arith.divf %227, %228 : vector<2x32xf32>
    %230 = vector.extract_strided_slice %213 {offsets = [0, 64], sizes = [2, 32], strides = [1, 1]} : vector<2x128xf32> to vector<2x32xf32>
    %231 = math.tanh %230 : vector<2x32xf32>
    %232 = vector.extract_strided_slice %213 {offsets = [0, 96], sizes = [2, 32], strides = [1, 1]} : vector<2x128xf32> to vector<2x32xf32>
    %233 = arith.negf %232 : vector<2x32xf32>
    %234 = math.exp %233 : vector<2x32xf32>
    %cst_71 = arith.constant 1.000000e+00 : f32
    %235 = vector.broadcast %cst_71 : f32 to vector<2x32xf32>
    %236 = arith.addf %235, %234 : vector<2x32xf32>
    %237 = arith.divf %235, %236 : vector<2x32xf32>
    %238 = arith.mulf %229, %175 : vector<2x32xf32>
    %239 = arith.mulf %223, %231 : vector<2x32xf32>
    %240 = arith.addf %238, %239 : vector<2x32xf32>
    %241 = math.tanh %240 : vector<2x32xf32>
    %242 = arith.mulf %237, %241 : vector<2x32xf32>
    %243 = vector.extract_strided_slice %217 {offsets = [0, 0], sizes = [2, 32], strides = [1, 1]} : vector<2x128xf32> to vector<2x32xf32>
    %244 = arith.negf %243 : vector<2x32xf32>
    %245 = math.exp %244 : vector<2x32xf32>
    %cst_72 = arith.constant 1.000000e+00 : f32
    %246 = vector.broadcast %cst_72 : f32 to vector<2x32xf32>
    %247 = arith.addf %246, %245 : vector<2x32xf32>
    %248 = arith.divf %246, %247 : vector<2x32xf32>
    %249 = vector.extract_strided_slice %217 {offsets = [0, 32], sizes = [2, 32], strides = [1, 1]} : vector<2x128xf32> to vector<2x32xf32>
    %250 = arith.negf %249 : vector<2x32xf32>
    %251 = math.exp %250 : vector<2x32xf32>
    %cst_73 = arith.constant 1.000000e+00 : f32
    %252 = vector.broadcast %cst_73 : f32 to vector<2x32xf32>
    %253 = arith.addf %252, %251 : vector<2x32xf32>
    %254 = arith.divf %252, %253 : vector<2x32xf32>
    %255 = vector.extract_strided_slice %217 {offsets = [0, 64], sizes = [2, 32], strides = [1, 1]} : vector<2x128xf32> to vector<2x32xf32>
    %256 = math.tanh %255 : vector<2x32xf32>
    %257 = vector.extract_strided_slice %217 {offsets = [0, 96], sizes = [2, 32], strides = [1, 1]} : vector<2x128xf32> to vector<2x32xf32>
    %258 = arith.negf %257 : vector<2x32xf32>
    %259 = math.exp %258 : vector<2x32xf32>
    %cst_74 = arith.constant 1.000000e+00 : f32
    %260 = vector.broadcast %cst_74 : f32 to vector<2x32xf32>
    %261 = arith.addf %260, %259 : vector<2x32xf32>
    %262 = arith.divf %260, %261 : vector<2x32xf32>
    %263 = arith.mulf %254, %200 : vector<2x32xf32>
    %264 = arith.mulf %248, %256 : vector<2x32xf32>
    %265 = arith.addf %263, %264 : vector<2x32xf32>
    %266 = math.tanh %265 : vector<2x32xf32>
    %267 = arith.mulf %262, %266 : vector<2x32xf32>
    %c4_i32 = arith.constant 4 : i32
    %c2_i32_75 = arith.constant 2 : i32
    %268 = arith.muli %c4_i32, %c2_i32_75 : i32
    %c7_i32_76 = arith.constant 7 : i32
    %269 = arith.subi %c7_i32_76, %c4_i32 : i32
    %c2_i32_77 = arith.constant 2 : i32
    %270 = arith.muli %269, %c2_i32_77 : i32
    %271 = arith.index_cast %268 : i32 to index
    %c0_78 = arith.constant 0 : index
    %272 = vector.load %arg8[%271, %c0_78] : memref<16x256xf32, #tpu.memory_space<vmem>>, vector<2x256xf32>
    %273 = arith.index_cast %270 : i32 to index
    %c0_79 = arith.constant 0 : index
    %274 = vector.load %arg8[%273, %c0_79] : memref<16x256xf32, #tpu.memory_space<vmem>>, vector<2x256xf32>
    %275 = vector.extract_strided_slice %272 {offsets = [0, 0], sizes = [2, 128], strides = [1, 1]} : vector<2x256xf32> to vector<2x128xf32>
    %c0_80 = arith.constant 0 : index
    %c0_81 = arith.constant 0 : index
    %276 = vector.load %arg2[%c0_80, %c0_81] : memref<32x128xf32, #tpu.memory_space<vmem>>, vector<32x128xf32>
    %cst_82 = arith.constant dense<0.000000e+00> : vector<2x128xf32>
    %277 = tpu.matmul %242, %276, %cst_82 {dimension_numbers = #tpu.dot_dimension_numbers<[1], [0], [0], [1], [0, 0, 1, 1], [], []>} : vector<2x32xf32>, vector<32x128xf32>, vector<2x128xf32> -> vector<2x128xf32>
    %278 = arith.addf %275, %277 : vector<2x128xf32>
    %279 = vector.extract_strided_slice %274 {offsets = [0, 128], sizes = [2, 128], strides = [1, 1]} : vector<2x256xf32> to vector<2x128xf32>
    %c0_83 = arith.constant 0 : index
    %c0_84 = arith.constant 0 : index
    %280 = vector.load %arg3[%c0_83, %c0_84] : memref<32x128xf32, #tpu.memory_space<vmem>>, vector<32x128xf32>
    %cst_85 = arith.constant dense<0.000000e+00> : vector<2x128xf32>
    %281 = tpu.matmul %267, %280, %cst_85 {dimension_numbers = #tpu.dot_dimension_numbers<[1], [0], [0], [1], [0, 0, 1, 1], [], []>} : vector<2x32xf32>, vector<32x128xf32>, vector<2x128xf32> -> vector<2x128xf32>
    %282 = arith.addf %279, %281 : vector<2x128xf32>
    %283 = vector.extract_strided_slice %278 {offsets = [0, 0], sizes = [2, 32], strides = [1, 1]} : vector<2x128xf32> to vector<2x32xf32>
    %284 = arith.negf %283 : vector<2x32xf32>
    %285 = math.exp %284 : vector<2x32xf32>
    %cst_86 = arith.constant 1.000000e+00 : f32
    %286 = vector.broadcast %cst_86 : f32 to vector<2x32xf32>
    %287 = arith.addf %286, %285 : vector<2x32xf32>
    %288 = arith.divf %286, %287 : vector<2x32xf32>
    %289 = vector.extract_strided_slice %278 {offsets = [0, 32], sizes = [2, 32], strides = [1, 1]} : vector<2x128xf32> to vector<2x32xf32>
    %290 = arith.negf %289 : vector<2x32xf32>
    %291 = math.exp %290 : vector<2x32xf32>
    %cst_87 = arith.constant 1.000000e+00 : f32
    %292 = vector.broadcast %cst_87 : f32 to vector<2x32xf32>
    %293 = arith.addf %292, %291 : vector<2x32xf32>
    %294 = arith.divf %292, %293 : vector<2x32xf32>
    %295 = vector.extract_strided_slice %278 {offsets = [0, 64], sizes = [2, 32], strides = [1, 1]} : vector<2x128xf32> to vector<2x32xf32>
    %296 = math.tanh %295 : vector<2x32xf32>
    %297 = vector.extract_strided_slice %278 {offsets = [0, 96], sizes = [2, 32], strides = [1, 1]} : vector<2x128xf32> to vector<2x32xf32>
    %298 = arith.negf %297 : vector<2x32xf32>
    %299 = math.exp %298 : vector<2x32xf32>
    %cst_88 = arith.constant 1.000000e+00 : f32
    %300 = vector.broadcast %cst_88 : f32 to vector<2x32xf32>
    %301 = arith.addf %300, %299 : vector<2x32xf32>
    %302 = arith.divf %300, %301 : vector<2x32xf32>
    %303 = arith.mulf %294, %240 : vector<2x32xf32>
    %304 = arith.mulf %288, %296 : vector<2x32xf32>
    %305 = arith.addf %303, %304 : vector<2x32xf32>
    %306 = math.tanh %305 : vector<2x32xf32>
    %307 = arith.mulf %302, %306 : vector<2x32xf32>
    %308 = vector.extract_strided_slice %282 {offsets = [0, 0], sizes = [2, 32], strides = [1, 1]} : vector<2x128xf32> to vector<2x32xf32>
    %309 = arith.negf %308 : vector<2x32xf32>
    %310 = math.exp %309 : vector<2x32xf32>
    %cst_89 = arith.constant 1.000000e+00 : f32
    %311 = vector.broadcast %cst_89 : f32 to vector<2x32xf32>
    %312 = arith.addf %311, %310 : vector<2x32xf32>
    %313 = arith.divf %311, %312 : vector<2x32xf32>
    %314 = vector.extract_strided_slice %282 {offsets = [0, 32], sizes = [2, 32], strides = [1, 1]} : vector<2x128xf32> to vector<2x32xf32>
    %315 = arith.negf %314 : vector<2x32xf32>
    %316 = math.exp %315 : vector<2x32xf32>
    %cst_90 = arith.constant 1.000000e+00 : f32
    %317 = vector.broadcast %cst_90 : f32 to vector<2x32xf32>
    %318 = arith.addf %317, %316 : vector<2x32xf32>
    %319 = arith.divf %317, %318 : vector<2x32xf32>
    %320 = vector.extract_strided_slice %282 {offsets = [0, 64], sizes = [2, 32], strides = [1, 1]} : vector<2x128xf32> to vector<2x32xf32>
    %321 = math.tanh %320 : vector<2x32xf32>
    %322 = vector.extract_strided_slice %282 {offsets = [0, 96], sizes = [2, 32], strides = [1, 1]} : vector<2x128xf32> to vector<2x32xf32>
    %323 = arith.negf %322 : vector<2x32xf32>
    %324 = math.exp %323 : vector<2x32xf32>
    %cst_91 = arith.constant 1.000000e+00 : f32
    %325 = vector.broadcast %cst_91 : f32 to vector<2x32xf32>
    %326 = arith.addf %325, %324 : vector<2x32xf32>
    %327 = arith.divf %325, %326 : vector<2x32xf32>
    %328 = arith.mulf %319, %265 : vector<2x32xf32>
    %329 = arith.mulf %313, %321 : vector<2x32xf32>
    %330 = arith.addf %328, %329 : vector<2x32xf32>
    %331 = math.tanh %330 : vector<2x32xf32>
    %332 = arith.mulf %327, %331 : vector<2x32xf32>
    %c5_i32 = arith.constant 5 : i32
    %c2_i32_92 = arith.constant 2 : i32
    %333 = arith.muli %c5_i32, %c2_i32_92 : i32
    %c7_i32_93 = arith.constant 7 : i32
    %334 = arith.subi %c7_i32_93, %c5_i32 : i32
    %c2_i32_94 = arith.constant 2 : i32
    %335 = arith.muli %334, %c2_i32_94 : i32
    %336 = arith.index_cast %333 : i32 to index
    %c0_95 = arith.constant 0 : index
    %337 = vector.load %arg8[%336, %c0_95] : memref<16x256xf32, #tpu.memory_space<vmem>>, vector<2x256xf32>
    %338 = arith.index_cast %335 : i32 to index
    %c0_96 = arith.constant 0 : index
    %339 = vector.load %arg8[%338, %c0_96] : memref<16x256xf32, #tpu.memory_space<vmem>>, vector<2x256xf32>
    %340 = vector.extract_strided_slice %337 {offsets = [0, 0], sizes = [2, 128], strides = [1, 1]} : vector<2x256xf32> to vector<2x128xf32>
    %c0_97 = arith.constant 0 : index
    %c0_98 = arith.constant 0 : index
    %341 = vector.load %arg2[%c0_97, %c0_98] : memref<32x128xf32, #tpu.memory_space<vmem>>, vector<32x128xf32>
    %cst_99 = arith.constant dense<0.000000e+00> : vector<2x128xf32>
    %342 = tpu.matmul %307, %341, %cst_99 {dimension_numbers = #tpu.dot_dimension_numbers<[1], [0], [0], [1], [0, 0, 1, 1], [], []>} : vector<2x32xf32>, vector<32x128xf32>, vector<2x128xf32> -> vector<2x128xf32>
    %343 = arith.addf %340, %342 : vector<2x128xf32>
    %344 = vector.extract_strided_slice %339 {offsets = [0, 128], sizes = [2, 128], strides = [1, 1]} : vector<2x256xf32> to vector<2x128xf32>
    %c0_100 = arith.constant 0 : index
    %c0_101 = arith.constant 0 : index
    %345 = vector.load %arg3[%c0_100, %c0_101] : memref<32x128xf32, #tpu.memory_space<vmem>>, vector<32x128xf32>
    %cst_102 = arith.constant dense<0.000000e+00> : vector<2x128xf32>
    %346 = tpu.matmul %332, %345, %cst_102 {dimension_numbers = #tpu.dot_dimension_numbers<[1], [0], [0], [1], [0, 0, 1, 1], [], []>} : vector<2x32xf32>, vector<32x128xf32>, vector<2x128xf32> -> vector<2x128xf32>
    %347 = arith.addf %344, %346 : vector<2x128xf32>
    %348 = vector.extract_strided_slice %343 {offsets = [0, 0], sizes = [2, 32], strides = [1, 1]} : vector<2x128xf32> to vector<2x32xf32>
    %349 = arith.negf %348 : vector<2x32xf32>
    %350 = math.exp %349 : vector<2x32xf32>
    %cst_103 = arith.constant 1.000000e+00 : f32
    %351 = vector.broadcast %cst_103 : f32 to vector<2x32xf32>
    %352 = arith.addf %351, %350 : vector<2x32xf32>
    %353 = arith.divf %351, %352 : vector<2x32xf32>
    %354 = vector.extract_strided_slice %343 {offsets = [0, 32], sizes = [2, 32], strides = [1, 1]} : vector<2x128xf32> to vector<2x32xf32>
    %355 = arith.negf %354 : vector<2x32xf32>
    %356 = math.exp %355 : vector<2x32xf32>
    %cst_104 = arith.constant 1.000000e+00 : f32
    %357 = vector.broadcast %cst_104 : f32 to vector<2x32xf32>
    %358 = arith.addf %357, %356 : vector<2x32xf32>
    %359 = arith.divf %357, %358 : vector<2x32xf32>
    %360 = vector.extract_strided_slice %343 {offsets = [0, 64], sizes = [2, 32], strides = [1, 1]} : vector<2x128xf32> to vector<2x32xf32>
    %361 = math.tanh %360 : vector<2x32xf32>
    %362 = vector.extract_strided_slice %343 {offsets = [0, 96], sizes = [2, 32], strides = [1, 1]} : vector<2x128xf32> to vector<2x32xf32>
    %363 = arith.negf %362 : vector<2x32xf32>
    %364 = math.exp %363 : vector<2x32xf32>
    %cst_105 = arith.constant 1.000000e+00 : f32
    %365 = vector.broadcast %cst_105 : f32 to vector<2x32xf32>
    %366 = arith.addf %365, %364 : vector<2x32xf32>
    %367 = arith.divf %365, %366 : vector<2x32xf32>
    %368 = arith.mulf %359, %305 : vector<2x32xf32>
    %369 = arith.mulf %353, %361 : vector<2x32xf32>
    %370 = arith.addf %368, %369 : vector<2x32xf32>
    %371 = math.tanh %370 : vector<2x32xf32>
    %372 = arith.mulf %367, %371 : vector<2x32xf32>
    %373 = vector.extract_strided_slice %347 {offsets = [0, 0], sizes = [2, 32], strides = [1, 1]} : vector<2x128xf32> to vector<2x32xf32>
    %374 = arith.negf %373 : vector<2x32xf32>
    %375 = math.exp %374 : vector<2x32xf32>
    %cst_106 = arith.constant 1.000000e+00 : f32
    %376 = vector.broadcast %cst_106 : f32 to vector<2x32xf32>
    %377 = arith.addf %376, %375 : vector<2x32xf32>
    %378 = arith.divf %376, %377 : vector<2x32xf32>
    %379 = vector.extract_strided_slice %347 {offsets = [0, 32], sizes = [2, 32], strides = [1, 1]} : vector<2x128xf32> to vector<2x32xf32>
    %380 = arith.negf %379 : vector<2x32xf32>
    %381 = math.exp %380 : vector<2x32xf32>
    %cst_107 = arith.constant 1.000000e+00 : f32
    %382 = vector.broadcast %cst_107 : f32 to vector<2x32xf32>
    %383 = arith.addf %382, %381 : vector<2x32xf32>
    %384 = arith.divf %382, %383 : vector<2x32xf32>
    %385 = vector.extract_strided_slice %347 {offsets = [0, 64], sizes = [2, 32], strides = [1, 1]} : vector<2x128xf32> to vector<2x32xf32>
    %386 = math.tanh %385 : vector<2x32xf32>
    %387 = vector.extract_strided_slice %347 {offsets = [0, 96], sizes = [2, 32], strides = [1, 1]} : vector<2x128xf32> to vector<2x32xf32>
    %388 = arith.negf %387 : vector<2x32xf32>
    %389 = math.exp %388 : vector<2x32xf32>
    %cst_108 = arith.constant 1.000000e+00 : f32
    %390 = vector.broadcast %cst_108 : f32 to vector<2x32xf32>
    %391 = arith.addf %390, %389 : vector<2x32xf32>
    %392 = arith.divf %390, %391 : vector<2x32xf32>
    %393 = arith.mulf %384, %330 : vector<2x32xf32>
    %394 = arith.mulf %378, %386 : vector<2x32xf32>
    %395 = arith.addf %393, %394 : vector<2x32xf32>
    %396 = math.tanh %395 : vector<2x32xf32>
    %397 = arith.mulf %392, %396 : vector<2x32xf32>
    %c6_i32 = arith.constant 6 : i32
    %c2_i32_109 = arith.constant 2 : i32
    %398 = arith.muli %c6_i32, %c2_i32_109 : i32
    %c7_i32_110 = arith.constant 7 : i32
    %399 = arith.subi %c7_i32_110, %c6_i32 : i32
    %c2_i32_111 = arith.constant 2 : i32
    %400 = arith.muli %399, %c2_i32_111 : i32
    %401 = arith.index_cast %398 : i32 to index
    %c0_112 = arith.constant 0 : index
    %402 = vector.load %arg8[%401, %c0_112] : memref<16x256xf32, #tpu.memory_space<vmem>>, vector<2x256xf32>
    %403 = arith.index_cast %400 : i32 to index
    %c0_113 = arith.constant 0 : index
    %404 = vector.load %arg8[%403, %c0_113] : memref<16x256xf32, #tpu.memory_space<vmem>>, vector<2x256xf32>
    %405 = vector.extract_strided_slice %402 {offsets = [0, 0], sizes = [2, 128], strides = [1, 1]} : vector<2x256xf32> to vector<2x128xf32>
    %c0_114 = arith.constant 0 : index
    %c0_115 = arith.constant 0 : index
    %406 = vector.load %arg2[%c0_114, %c0_115] : memref<32x128xf32, #tpu.memory_space<vmem>>, vector<32x128xf32>
    %cst_116 = arith.constant dense<0.000000e+00> : vector<2x128xf32>
    %407 = tpu.matmul %372, %406, %cst_116 {dimension_numbers = #tpu.dot_dimension_numbers<[1], [0], [0], [1], [0, 0, 1, 1], [], []>} : vector<2x32xf32>, vector<32x128xf32>, vector<2x128xf32> -> vector<2x128xf32>
    %408 = arith.addf %405, %407 : vector<2x128xf32>
    %409 = vector.extract_strided_slice %404 {offsets = [0, 128], sizes = [2, 128], strides = [1, 1]} : vector<2x256xf32> to vector<2x128xf32>
    %c0_117 = arith.constant 0 : index
    %c0_118 = arith.constant 0 : index
    %410 = vector.load %arg3[%c0_117, %c0_118] : memref<32x128xf32, #tpu.memory_space<vmem>>, vector<32x128xf32>
    %cst_119 = arith.constant dense<0.000000e+00> : vector<2x128xf32>
    %411 = tpu.matmul %397, %410, %cst_119 {dimension_numbers = #tpu.dot_dimension_numbers<[1], [0], [0], [1], [0, 0, 1, 1], [], []>} : vector<2x32xf32>, vector<32x128xf32>, vector<2x128xf32> -> vector<2x128xf32>
    %412 = arith.addf %409, %411 : vector<2x128xf32>
    %413 = vector.extract_strided_slice %408 {offsets = [0, 0], sizes = [2, 32], strides = [1, 1]} : vector<2x128xf32> to vector<2x32xf32>
    %414 = arith.negf %413 : vector<2x32xf32>
    %415 = math.exp %414 : vector<2x32xf32>
    %cst_120 = arith.constant 1.000000e+00 : f32
    %416 = vector.broadcast %cst_120 : f32 to vector<2x32xf32>
    %417 = arith.addf %416, %415 : vector<2x32xf32>
    %418 = arith.divf %416, %417 : vector<2x32xf32>
    %419 = vector.extract_strided_slice %408 {offsets = [0, 32], sizes = [2, 32], strides = [1, 1]} : vector<2x128xf32> to vector<2x32xf32>
    %420 = arith.negf %419 : vector<2x32xf32>
    %421 = math.exp %420 : vector<2x32xf32>
    %cst_121 = arith.constant 1.000000e+00 : f32
    %422 = vector.broadcast %cst_121 : f32 to vector<2x32xf32>
    %423 = arith.addf %422, %421 : vector<2x32xf32>
    %424 = arith.divf %422, %423 : vector<2x32xf32>
    %425 = vector.extract_strided_slice %408 {offsets = [0, 64], sizes = [2, 32], strides = [1, 1]} : vector<2x128xf32> to vector<2x32xf32>
    %426 = math.tanh %425 : vector<2x32xf32>
    %427 = vector.extract_strided_slice %408 {offsets = [0, 96], sizes = [2, 32], strides = [1, 1]} : vector<2x128xf32> to vector<2x32xf32>
    %428 = arith.negf %427 : vector<2x32xf32>
    %429 = math.exp %428 : vector<2x32xf32>
    %cst_122 = arith.constant 1.000000e+00 : f32
    %430 = vector.broadcast %cst_122 : f32 to vector<2x32xf32>
    %431 = arith.addf %430, %429 : vector<2x32xf32>
    %432 = arith.divf %430, %431 : vector<2x32xf32>
    %433 = arith.mulf %424, %370 : vector<2x32xf32>
    %434 = arith.mulf %418, %426 : vector<2x32xf32>
    %435 = arith.addf %433, %434 : vector<2x32xf32>
    %436 = math.tanh %435 : vector<2x32xf32>
    %437 = arith.mulf %432, %436 : vector<2x32xf32>
    %438 = vector.extract_strided_slice %412 {offsets = [0, 0], sizes = [2, 32], strides = [1, 1]} : vector<2x128xf32> to vector<2x32xf32>
    %439 = arith.negf %438 : vector<2x32xf32>
    %440 = math.exp %439 : vector<2x32xf32>
    %cst_123 = arith.constant 1.000000e+00 : f32
    %441 = vector.broadcast %cst_123 : f32 to vector<2x32xf32>
    %442 = arith.addf %441, %440 : vector<2x32xf32>
    %443 = arith.divf %441, %442 : vector<2x32xf32>
    %444 = vector.extract_strided_slice %412 {offsets = [0, 32], sizes = [2, 32], strides = [1, 1]} : vector<2x128xf32> to vector<2x32xf32>
    %445 = arith.negf %444 : vector<2x32xf32>
    %446 = math.exp %445 : vector<2x32xf32>
    %cst_124 = arith.constant 1.000000e+00 : f32
    %447 = vector.broadcast %cst_124 : f32 to vector<2x32xf32>
    %448 = arith.addf %447, %446 : vector<2x32xf32>
    %449 = arith.divf %447, %448 : vector<2x32xf32>
    %450 = vector.extract_strided_slice %412 {offsets = [0, 64], sizes = [2, 32], strides = [1, 1]} : vector<2x128xf32> to vector<2x32xf32>
    %451 = math.tanh %450 : vector<2x32xf32>
    %452 = vector.extract_strided_slice %412 {offsets = [0, 96], sizes = [2, 32], strides = [1, 1]} : vector<2x128xf32> to vector<2x32xf32>
    %453 = arith.negf %452 : vector<2x32xf32>
    %454 = math.exp %453 : vector<2x32xf32>
    %cst_125 = arith.constant 1.000000e+00 : f32
    %455 = vector.broadcast %cst_125 : f32 to vector<2x32xf32>
    %456 = arith.addf %455, %454 : vector<2x32xf32>
    %457 = arith.divf %455, %456 : vector<2x32xf32>
    %458 = arith.mulf %449, %395 : vector<2x32xf32>
    %459 = arith.mulf %443, %451 : vector<2x32xf32>
    %460 = arith.addf %458, %459 : vector<2x32xf32>
    %461 = math.tanh %460 : vector<2x32xf32>
    %462 = arith.mulf %457, %461 : vector<2x32xf32>
    %c7_i32_126 = arith.constant 7 : i32
    %c2_i32_127 = arith.constant 2 : i32
    %463 = arith.muli %c7_i32_126, %c2_i32_127 : i32
    %c7_i32_128 = arith.constant 7 : i32
    %464 = arith.subi %c7_i32_128, %c7_i32_126 : i32
    %c2_i32_129 = arith.constant 2 : i32
    %465 = arith.muli %464, %c2_i32_129 : i32
    %466 = arith.index_cast %463 : i32 to index
    %c0_130 = arith.constant 0 : index
    %467 = vector.load %arg8[%466, %c0_130] : memref<16x256xf32, #tpu.memory_space<vmem>>, vector<2x256xf32>
    %468 = arith.index_cast %465 : i32 to index
    %c0_131 = arith.constant 0 : index
    %469 = vector.load %arg8[%468, %c0_131] : memref<16x256xf32, #tpu.memory_space<vmem>>, vector<2x256xf32>
    %470 = vector.extract_strided_slice %467 {offsets = [0, 0], sizes = [2, 128], strides = [1, 1]} : vector<2x256xf32> to vector<2x128xf32>
    %c0_132 = arith.constant 0 : index
    %c0_133 = arith.constant 0 : index
    %471 = vector.load %arg2[%c0_132, %c0_133] : memref<32x128xf32, #tpu.memory_space<vmem>>, vector<32x128xf32>
    %cst_134 = arith.constant dense<0.000000e+00> : vector<2x128xf32>
    %472 = tpu.matmul %437, %471, %cst_134 {dimension_numbers = #tpu.dot_dimension_numbers<[1], [0], [0], [1], [0, 0, 1, 1], [], []>} : vector<2x32xf32>, vector<32x128xf32>, vector<2x128xf32> -> vector<2x128xf32>
    %473 = arith.addf %470, %472 : vector<2x128xf32>
    %474 = vector.extract_strided_slice %469 {offsets = [0, 128], sizes = [2, 128], strides = [1, 1]} : vector<2x256xf32> to vector<2x128xf32>
    %c0_135 = arith.constant 0 : index
    %c0_136 = arith.constant 0 : index
    %475 = vector.load %arg3[%c0_135, %c0_136] : memref<32x128xf32, #tpu.memory_space<vmem>>, vector<32x128xf32>
    %cst_137 = arith.constant dense<0.000000e+00> : vector<2x128xf32>
    %476 = tpu.matmul %462, %475, %cst_137 {dimension_numbers = #tpu.dot_dimension_numbers<[1], [0], [0], [1], [0, 0, 1, 1], [], []>} : vector<2x32xf32>, vector<32x128xf32>, vector<2x128xf32> -> vector<2x128xf32>
    %477 = arith.addf %474, %476 : vector<2x128xf32>
    %478 = vector.extract_strided_slice %473 {offsets = [0, 0], sizes = [2, 32], strides = [1, 1]} : vector<2x128xf32> to vector<2x32xf32>
    %479 = arith.negf %478 : vector<2x32xf32>
    %480 = math.exp %479 : vector<2x32xf32>
    %cst_138 = arith.constant 1.000000e+00 : f32
    %481 = vector.broadcast %cst_138 : f32 to vector<2x32xf32>
    %482 = arith.addf %481, %480 : vector<2x32xf32>
    %483 = arith.divf %481, %482 : vector<2x32xf32>
    %484 = vector.extract_strided_slice %473 {offsets = [0, 32], sizes = [2, 32], strides = [1, 1]} : vector<2x128xf32> to vector<2x32xf32>
    %485 = arith.negf %484 : vector<2x32xf32>
    %486 = math.exp %485 : vector<2x32xf32>
    %cst_139 = arith.constant 1.000000e+00 : f32
    %487 = vector.broadcast %cst_139 : f32 to vector<2x32xf32>
    %488 = arith.addf %487, %486 : vector<2x32xf32>
    %489 = arith.divf %487, %488 : vector<2x32xf32>
    %490 = vector.extract_strided_slice %473 {offsets = [0, 64], sizes = [2, 32], strides = [1, 1]} : vector<2x128xf32> to vector<2x32xf32>
    %491 = math.tanh %490 : vector<2x32xf32>
    %492 = vector.extract_strided_slice %473 {offsets = [0, 96], sizes = [2, 32], strides = [1, 1]} : vector<2x128xf32> to vector<2x32xf32>
    %493 = arith.negf %492 : vector<2x32xf32>
    %494 = math.exp %493 : vector<2x32xf32>
    %cst_140 = arith.constant 1.000000e+00 : f32
    %495 = vector.broadcast %cst_140 : f32 to vector<2x32xf32>
    %496 = arith.addf %495, %494 : vector<2x32xf32>
    %497 = arith.divf %495, %496 : vector<2x32xf32>
    %498 = arith.mulf %489, %435 : vector<2x32xf32>
    %499 = arith.mulf %483, %491 : vector<2x32xf32>
    %500 = arith.addf %498, %499 : vector<2x32xf32>
    %501 = math.tanh %500 : vector<2x32xf32>
    %502 = arith.mulf %497, %501 : vector<2x32xf32>
    %503 = vector.extract_strided_slice %477 {offsets = [0, 0], sizes = [2, 32], strides = [1, 1]} : vector<2x128xf32> to vector<2x32xf32>
    %504 = arith.negf %503 : vector<2x32xf32>
    %505 = math.exp %504 : vector<2x32xf32>
    %cst_141 = arith.constant 1.000000e+00 : f32
    %506 = vector.broadcast %cst_141 : f32 to vector<2x32xf32>
    %507 = arith.addf %506, %505 : vector<2x32xf32>
    %508 = arith.divf %506, %507 : vector<2x32xf32>
    %509 = vector.extract_strided_slice %477 {offsets = [0, 32], sizes = [2, 32], strides = [1, 1]} : vector<2x128xf32> to vector<2x32xf32>
    %510 = arith.negf %509 : vector<2x32xf32>
    %511 = math.exp %510 : vector<2x32xf32>
    %cst_142 = arith.constant 1.000000e+00 : f32
    %512 = vector.broadcast %cst_142 : f32 to vector<2x32xf32>
    %513 = arith.addf %512, %511 : vector<2x32xf32>
    %514 = arith.divf %512, %513 : vector<2x32xf32>
    %515 = vector.extract_strided_slice %477 {offsets = [0, 64], sizes = [2, 32], strides = [1, 1]} : vector<2x128xf32> to vector<2x32xf32>
    %516 = math.tanh %515 : vector<2x32xf32>
    %517 = vector.extract_strided_slice %477 {offsets = [0, 96], sizes = [2, 32], strides = [1, 1]} : vector<2x128xf32> to vector<2x32xf32>
    %518 = arith.negf %517 : vector<2x32xf32>
    %519 = math.exp %518 : vector<2x32xf32>
    %cst_143 = arith.constant 1.000000e+00 : f32
    %520 = vector.broadcast %cst_143 : f32 to vector<2x32xf32>
    %521 = arith.addf %520, %519 : vector<2x32xf32>
    %522 = arith.divf %520, %521 : vector<2x32xf32>
    %523 = arith.mulf %514, %460 : vector<2x32xf32>
    %524 = arith.mulf %508, %516 : vector<2x32xf32>
    %525 = arith.addf %523, %524 : vector<2x32xf32>
    %526 = math.tanh %525 : vector<2x32xf32>
    %527 = arith.mulf %522, %526 : vector<2x32xf32>
    %c8_i32 = arith.constant 8 : i32
    %528 = tpu.concatenate %502, %527 in 1 : vector<2x32xf32>, vector<2x32xf32> -> vector<2x64xf32>
    %c0_144 = arith.constant 0 : index
    %c0_145 = arith.constant 0 : index
    %529 = vector.load %arg5[%c0_144, %c0_145] : memref<64x4xf32, #tpu.memory_space<vmem>>, vector<64x4xf32>
    %cst_146 = arith.constant dense<0.000000e+00> : vector<2x4xf32>
    %530 = tpu.matmul %528, %529, %cst_146 {dimension_numbers = #tpu.dot_dimension_numbers<[1], [0], [0], [1], [0, 0, 1, 1], [], []>} : vector<2x64xf32>, vector<64x4xf32>, vector<2x4xf32> -> vector<2x4xf32>
    %c0_147 = arith.constant 0 : index
    %c0_148 = arith.constant 0 : index
    %531 = vector.load %arg6[%c0_147, %c0_148] : memref<1x4xf32, #tpu.memory_space<vmem>>, vector<1x4xf32>
    %532 = vector.broadcast %531 : vector<1x4xf32> to vector<2x4xf32>
    %533 = arith.addf %530, %532 : vector<2x4xf32>
    %c0_149 = arith.constant 0 : index
    %c0_150 = arith.constant 0 : index
    %534 = vector.load %arg7[%c0_149, %c0_150] : memref<2x4xf32, #tpu.memory_space<vmem>>, vector<2x4xf32>
    tpu.vector_store %arg7[%c0_149, %c0_150], %533 {strides = array<i32>} : memref<2x4xf32, #tpu.memory_space<vmem>>, vector<2x4xf32>,
    return
  }
}

module attributes {stable_mosaic.version = 11 : i64} {
  func.func @_bilstm_seq_kernel(%arg0: memref<16x16xf32, #tpu.memory_space<vmem>>, %arg1: memref<16x256xf32, #tpu.memory_space<vmem>>, %arg2: memref<32x128xf32, #tpu.memory_space<vmem>>, %arg3: memref<32x128xf32, #tpu.memory_space<vmem>>, %arg4: memref<1x256xf32, #tpu.memory_space<vmem>>, %arg5: memref<16x64xf32, #tpu.memory_space<vmem>>, %arg6: memref<16x256xf32, #tpu.memory_space<vmem>>, %arg7: memref<16x32xf32, #tpu.memory_space<vmem>>, %arg8: memref<16x32xf32, #tpu.memory_space<vmem>>) attributes {dimension_semantics = [], scalar_prefetch = 0 : i64, scratch_operands = 3 : i64, tpu.core_type = #tpu.core_type<tc>} {
    %c0 = arith.constant 0 : index
    %c0_0 = arith.constant 0 : index
    %0 = vector.load %arg0[%c0, %c0_0] : memref<16x16xf32, #tpu.memory_space<vmem>>, vector<16x16xf32>
    %c0_1 = arith.constant 0 : index
    %c0_2 = arith.constant 0 : index
    %1 = vector.load %arg1[%c0_1, %c0_2] : memref<16x256xf32, #tpu.memory_space<vmem>>, vector<16x256xf32>
    %cst = arith.constant dense<0.000000e+00> : vector<16x256xf32>
    %2 = tpu.matmul %0, %1, %cst {dimension_numbers = #tpu.dot_dimension_numbers<[1], [0], [0], [1], [0, 0, 1, 1], [], []>} : vector<16x16xf32>, vector<16x256xf32>, vector<16x256xf32> -> vector<16x256xf32>
    %c0_3 = arith.constant 0 : index
    %c0_4 = arith.constant 0 : index
    %3 = vector.load %arg4[%c0_3, %c0_4] : memref<1x256xf32, #tpu.memory_space<vmem>>, vector<1x256xf32>
    %4 = vector.broadcast %3 : vector<1x256xf32> to vector<16x256xf32>
    %5 = arith.addf %2, %4 : vector<16x256xf32>
    %c0_5 = arith.constant 0 : index
    %c0_6 = arith.constant 0 : index
    %6 = vector.load %arg6[%c0_5, %c0_6] : memref<16x256xf32, #tpu.memory_space<vmem>>, vector<16x256xf32>
    tpu.vector_store %arg6[%c0_5, %c0_6], %5 {strides = array<i32>} : memref<16x256xf32, #tpu.memory_space<vmem>>, vector<16x256xf32>,
    %cst_7 = arith.constant 0.000000e+00 : f32
    %7 = vector.broadcast %cst_7 : f32 to vector<2x32xf32>
    %c0_i32 = arith.constant 0 : i32
    %c2_i32 = arith.constant 2 : i32
    %8 = arith.muli %c0_i32, %c2_i32 : i32
    %c7_i32 = arith.constant 7 : i32
    %9 = arith.subi %c7_i32, %c0_i32 : i32
    %c2_i32_8 = arith.constant 2 : i32
    %10 = arith.muli %9, %c2_i32_8 : i32
    %11 = arith.index_cast %8 : i32 to index
    %c0_9 = arith.constant 0 : index
    %12 = vector.load %arg6[%11, %c0_9] : memref<16x256xf32, #tpu.memory_space<vmem>>, vector<2x256xf32>
    %13 = arith.index_cast %10 : i32 to index
    %c0_10 = arith.constant 0 : index
    %14 = vector.load %arg6[%13, %c0_10] : memref<16x256xf32, #tpu.memory_space<vmem>>, vector<2x256xf32>
    %15 = vector.extract_strided_slice %12 {offsets = [0, 0], sizes = [2, 128], strides = [1, 1]} : vector<2x256xf32> to vector<2x128xf32>
    %c0_11 = arith.constant 0 : index
    %c0_12 = arith.constant 0 : index
    %16 = vector.load %arg2[%c0_11, %c0_12] : memref<32x128xf32, #tpu.memory_space<vmem>>, vector<32x128xf32>
    %cst_13 = arith.constant dense<0.000000e+00> : vector<2x128xf32>
    %17 = tpu.matmul %7, %16, %cst_13 {dimension_numbers = #tpu.dot_dimension_numbers<[1], [0], [0], [1], [0, 0, 1, 1], [], []>} : vector<2x32xf32>, vector<32x128xf32>, vector<2x128xf32> -> vector<2x128xf32>
    %18 = arith.addf %15, %17 : vector<2x128xf32>
    %19 = vector.extract_strided_slice %14 {offsets = [0, 128], sizes = [2, 128], strides = [1, 1]} : vector<2x256xf32> to vector<2x128xf32>
    %c0_14 = arith.constant 0 : index
    %c0_15 = arith.constant 0 : index
    %20 = vector.load %arg3[%c0_14, %c0_15] : memref<32x128xf32, #tpu.memory_space<vmem>>, vector<32x128xf32>
    %cst_16 = arith.constant dense<0.000000e+00> : vector<2x128xf32>
    %21 = tpu.matmul %7, %20, %cst_16 {dimension_numbers = #tpu.dot_dimension_numbers<[1], [0], [0], [1], [0, 0, 1, 1], [], []>} : vector<2x32xf32>, vector<32x128xf32>, vector<2x128xf32> -> vector<2x128xf32>
    %22 = arith.addf %19, %21 : vector<2x128xf32>
    %23 = vector.extract_strided_slice %18 {offsets = [0, 0], sizes = [2, 32], strides = [1, 1]} : vector<2x128xf32> to vector<2x32xf32>
    %24 = arith.negf %23 : vector<2x32xf32>
    %25 = math.exp %24 : vector<2x32xf32>
    %cst_17 = arith.constant 1.000000e+00 : f32
    %26 = vector.broadcast %cst_17 : f32 to vector<2x32xf32>
    %27 = arith.addf %26, %25 : vector<2x32xf32>
    %28 = arith.divf %26, %27 : vector<2x32xf32>
    %29 = vector.extract_strided_slice %18 {offsets = [0, 32], sizes = [2, 32], strides = [1, 1]} : vector<2x128xf32> to vector<2x32xf32>
    %30 = arith.negf %29 : vector<2x32xf32>
    %31 = math.exp %30 : vector<2x32xf32>
    %cst_18 = arith.constant 1.000000e+00 : f32
    %32 = vector.broadcast %cst_18 : f32 to vector<2x32xf32>
    %33 = arith.addf %32, %31 : vector<2x32xf32>
    %34 = arith.divf %32, %33 : vector<2x32xf32>
    %35 = vector.extract_strided_slice %18 {offsets = [0, 64], sizes = [2, 32], strides = [1, 1]} : vector<2x128xf32> to vector<2x32xf32>
    %36 = math.tanh %35 : vector<2x32xf32>
    %37 = vector.extract_strided_slice %18 {offsets = [0, 96], sizes = [2, 32], strides = [1, 1]} : vector<2x128xf32> to vector<2x32xf32>
    %38 = arith.negf %37 : vector<2x32xf32>
    %39 = math.exp %38 : vector<2x32xf32>
    %cst_19 = arith.constant 1.000000e+00 : f32
    %40 = vector.broadcast %cst_19 : f32 to vector<2x32xf32>
    %41 = arith.addf %40, %39 : vector<2x32xf32>
    %42 = arith.divf %40, %41 : vector<2x32xf32>
    %43 = arith.mulf %34, %7 : vector<2x32xf32>
    %44 = arith.mulf %28, %36 : vector<2x32xf32>
    %45 = arith.addf %43, %44 : vector<2x32xf32>
    %46 = math.tanh %45 : vector<2x32xf32>
    %47 = arith.mulf %42, %46 : vector<2x32xf32>
    %48 = vector.extract_strided_slice %22 {offsets = [0, 0], sizes = [2, 32], strides = [1, 1]} : vector<2x128xf32> to vector<2x32xf32>
    %49 = arith.negf %48 : vector<2x32xf32>
    %50 = math.exp %49 : vector<2x32xf32>
    %cst_20 = arith.constant 1.000000e+00 : f32
    %51 = vector.broadcast %cst_20 : f32 to vector<2x32xf32>
    %52 = arith.addf %51, %50 : vector<2x32xf32>
    %53 = arith.divf %51, %52 : vector<2x32xf32>
    %54 = vector.extract_strided_slice %22 {offsets = [0, 32], sizes = [2, 32], strides = [1, 1]} : vector<2x128xf32> to vector<2x32xf32>
    %55 = arith.negf %54 : vector<2x32xf32>
    %56 = math.exp %55 : vector<2x32xf32>
    %cst_21 = arith.constant 1.000000e+00 : f32
    %57 = vector.broadcast %cst_21 : f32 to vector<2x32xf32>
    %58 = arith.addf %57, %56 : vector<2x32xf32>
    %59 = arith.divf %57, %58 : vector<2x32xf32>
    %60 = vector.extract_strided_slice %22 {offsets = [0, 64], sizes = [2, 32], strides = [1, 1]} : vector<2x128xf32> to vector<2x32xf32>
    %61 = math.tanh %60 : vector<2x32xf32>
    %62 = vector.extract_strided_slice %22 {offsets = [0, 96], sizes = [2, 32], strides = [1, 1]} : vector<2x128xf32> to vector<2x32xf32>
    %63 = arith.negf %62 : vector<2x32xf32>
    %64 = math.exp %63 : vector<2x32xf32>
    %cst_22 = arith.constant 1.000000e+00 : f32
    %65 = vector.broadcast %cst_22 : f32 to vector<2x32xf32>
    %66 = arith.addf %65, %64 : vector<2x32xf32>
    %67 = arith.divf %65, %66 : vector<2x32xf32>
    %68 = arith.mulf %59, %7 : vector<2x32xf32>
    %69 = arith.mulf %53, %61 : vector<2x32xf32>
    %70 = arith.addf %68, %69 : vector<2x32xf32>
    %71 = math.tanh %70 : vector<2x32xf32>
    %72 = arith.mulf %67, %71 : vector<2x32xf32>
    %73 = arith.index_cast %8 : i32 to index
    %c0_23 = arith.constant 0 : index
    %74 = vector.load %arg7[%73, %c0_23] : memref<16x32xf32, #tpu.memory_space<vmem>>, vector<2x32xf32>
    tpu.vector_store %arg7[%73, %c0_23], %47 {strides = array<i32>} : memref<16x32xf32, #tpu.memory_space<vmem>>, vector<2x32xf32>,
    %75 = arith.index_cast %10 : i32 to index
    %c0_24 = arith.constant 0 : index
    %76 = vector.load %arg8[%75, %c0_24] : memref<16x32xf32, #tpu.memory_space<vmem>>, vector<2x32xf32>
    tpu.vector_store %arg8[%75, %c0_24], %72 {strides = array<i32>} : memref<16x32xf32, #tpu.memory_space<vmem>>, vector<2x32xf32>,
    %c1_i32 = arith.constant 1 : i32
    %c2_i32_25 = arith.constant 2 : i32
    %77 = arith.muli %c1_i32, %c2_i32_25 : i32
    %c7_i32_26 = arith.constant 7 : i32
    %78 = arith.subi %c7_i32_26, %c1_i32 : i32
    %c2_i32_27 = arith.constant 2 : i32
    %79 = arith.muli %78, %c2_i32_27 : i32
    %80 = arith.index_cast %77 : i32 to index
    %c0_28 = arith.constant 0 : index
    %81 = vector.load %arg6[%80, %c0_28] : memref<16x256xf32, #tpu.memory_space<vmem>>, vector<2x256xf32>
    %82 = arith.index_cast %79 : i32 to index
    %c0_29 = arith.constant 0 : index
    %83 = vector.load %arg6[%82, %c0_29] : memref<16x256xf32, #tpu.memory_space<vmem>>, vector<2x256xf32>
    %84 = vector.extract_strided_slice %81 {offsets = [0, 0], sizes = [2, 128], strides = [1, 1]} : vector<2x256xf32> to vector<2x128xf32>
    %c0_30 = arith.constant 0 : index
    %c0_31 = arith.constant 0 : index
    %85 = vector.load %arg2[%c0_30, %c0_31] : memref<32x128xf32, #tpu.memory_space<vmem>>, vector<32x128xf32>
    %cst_32 = arith.constant dense<0.000000e+00> : vector<2x128xf32>
    %86 = tpu.matmul %47, %85, %cst_32 {dimension_numbers = #tpu.dot_dimension_numbers<[1], [0], [0], [1], [0, 0, 1, 1], [], []>} : vector<2x32xf32>, vector<32x128xf32>, vector<2x128xf32> -> vector<2x128xf32>
    %87 = arith.addf %84, %86 : vector<2x128xf32>
    %88 = vector.extract_strided_slice %83 {offsets = [0, 128], sizes = [2, 128], strides = [1, 1]} : vector<2x256xf32> to vector<2x128xf32>
    %c0_33 = arith.constant 0 : index
    %c0_34 = arith.constant 0 : index
    %89 = vector.load %arg3[%c0_33, %c0_34] : memref<32x128xf32, #tpu.memory_space<vmem>>, vector<32x128xf32>
    %cst_35 = arith.constant dense<0.000000e+00> : vector<2x128xf32>
    %90 = tpu.matmul %72, %89, %cst_35 {dimension_numbers = #tpu.dot_dimension_numbers<[1], [0], [0], [1], [0, 0, 1, 1], [], []>} : vector<2x32xf32>, vector<32x128xf32>, vector<2x128xf32> -> vector<2x128xf32>
    %91 = arith.addf %88, %90 : vector<2x128xf32>
    %92 = vector.extract_strided_slice %87 {offsets = [0, 0], sizes = [2, 32], strides = [1, 1]} : vector<2x128xf32> to vector<2x32xf32>
    %93 = arith.negf %92 : vector<2x32xf32>
    %94 = math.exp %93 : vector<2x32xf32>
    %cst_36 = arith.constant 1.000000e+00 : f32
    %95 = vector.broadcast %cst_36 : f32 to vector<2x32xf32>
    %96 = arith.addf %95, %94 : vector<2x32xf32>
    %97 = arith.divf %95, %96 : vector<2x32xf32>
    %98 = vector.extract_strided_slice %87 {offsets = [0, 32], sizes = [2, 32], strides = [1, 1]} : vector<2x128xf32> to vector<2x32xf32>
    %99 = arith.negf %98 : vector<2x32xf32>
    %100 = math.exp %99 : vector<2x32xf32>
    %cst_37 = arith.constant 1.000000e+00 : f32
    %101 = vector.broadcast %cst_37 : f32 to vector<2x32xf32>
    %102 = arith.addf %101, %100 : vector<2x32xf32>
    %103 = arith.divf %101, %102 : vector<2x32xf32>
    %104 = vector.extract_strided_slice %87 {offsets = [0, 64], sizes = [2, 32], strides = [1, 1]} : vector<2x128xf32> to vector<2x32xf32>
    %105 = math.tanh %104 : vector<2x32xf32>
    %106 = vector.extract_strided_slice %87 {offsets = [0, 96], sizes = [2, 32], strides = [1, 1]} : vector<2x128xf32> to vector<2x32xf32>
    %107 = arith.negf %106 : vector<2x32xf32>
    %108 = math.exp %107 : vector<2x32xf32>
    %cst_38 = arith.constant 1.000000e+00 : f32
    %109 = vector.broadcast %cst_38 : f32 to vector<2x32xf32>
    %110 = arith.addf %109, %108 : vector<2x32xf32>
    %111 = arith.divf %109, %110 : vector<2x32xf32>
    %112 = arith.mulf %103, %45 : vector<2x32xf32>
    %113 = arith.mulf %97, %105 : vector<2x32xf32>
    %114 = arith.addf %112, %113 : vector<2x32xf32>
    %115 = math.tanh %114 : vector<2x32xf32>
    %116 = arith.mulf %111, %115 : vector<2x32xf32>
    %117 = vector.extract_strided_slice %91 {offsets = [0, 0], sizes = [2, 32], strides = [1, 1]} : vector<2x128xf32> to vector<2x32xf32>
    %118 = arith.negf %117 : vector<2x32xf32>
    %119 = math.exp %118 : vector<2x32xf32>
    %cst_39 = arith.constant 1.000000e+00 : f32
    %120 = vector.broadcast %cst_39 : f32 to vector<2x32xf32>
    %121 = arith.addf %120, %119 : vector<2x32xf32>
    %122 = arith.divf %120, %121 : vector<2x32xf32>
    %123 = vector.extract_strided_slice %91 {offsets = [0, 32], sizes = [2, 32], strides = [1, 1]} : vector<2x128xf32> to vector<2x32xf32>
    %124 = arith.negf %123 : vector<2x32xf32>
    %125 = math.exp %124 : vector<2x32xf32>
    %cst_40 = arith.constant 1.000000e+00 : f32
    %126 = vector.broadcast %cst_40 : f32 to vector<2x32xf32>
    %127 = arith.addf %126, %125 : vector<2x32xf32>
    %128 = arith.divf %126, %127 : vector<2x32xf32>
    %129 = vector.extract_strided_slice %91 {offsets = [0, 64], sizes = [2, 32], strides = [1, 1]} : vector<2x128xf32> to vector<2x32xf32>
    %130 = math.tanh %129 : vector<2x32xf32>
    %131 = vector.extract_strided_slice %91 {offsets = [0, 96], sizes = [2, 32], strides = [1, 1]} : vector<2x128xf32> to vector<2x32xf32>
    %132 = arith.negf %131 : vector<2x32xf32>
    %133 = math.exp %132 : vector<2x32xf32>
    %cst_41 = arith.constant 1.000000e+00 : f32
    %134 = vector.broadcast %cst_41 : f32 to vector<2x32xf32>
    %135 = arith.addf %134, %133 : vector<2x32xf32>
    %136 = arith.divf %134, %135 : vector<2x32xf32>
    %137 = arith.mulf %128, %70 : vector<2x32xf32>
    %138 = arith.mulf %122, %130 : vector<2x32xf32>
    %139 = arith.addf %137, %138 : vector<2x32xf32>
    %140 = math.tanh %139 : vector<2x32xf32>
    %141 = arith.mulf %136, %140 : vector<2x32xf32>
    %142 = arith.index_cast %77 : i32 to index
    %c0_42 = arith.constant 0 : index
    %143 = vector.load %arg7[%142, %c0_42] : memref<16x32xf32, #tpu.memory_space<vmem>>, vector<2x32xf32>
    tpu.vector_store %arg7[%142, %c0_42], %116 {strides = array<i32>} : memref<16x32xf32, #tpu.memory_space<vmem>>, vector<2x32xf32>,
    %144 = arith.index_cast %79 : i32 to index
    %c0_43 = arith.constant 0 : index
    %145 = vector.load %arg8[%144, %c0_43] : memref<16x32xf32, #tpu.memory_space<vmem>>, vector<2x32xf32>
    tpu.vector_store %arg8[%144, %c0_43], %141 {strides = array<i32>} : memref<16x32xf32, #tpu.memory_space<vmem>>, vector<2x32xf32>,
    %c2_i32_44 = arith.constant 2 : i32
    %c2_i32_45 = arith.constant 2 : i32
    %146 = arith.muli %c2_i32_44, %c2_i32_45 : i32
    %c7_i32_46 = arith.constant 7 : i32
    %147 = arith.subi %c7_i32_46, %c2_i32_44 : i32
    %c2_i32_47 = arith.constant 2 : i32
    %148 = arith.muli %147, %c2_i32_47 : i32
    %149 = arith.index_cast %146 : i32 to index
    %c0_48 = arith.constant 0 : index
    %150 = vector.load %arg6[%149, %c0_48] : memref<16x256xf32, #tpu.memory_space<vmem>>, vector<2x256xf32>
    %151 = arith.index_cast %148 : i32 to index
    %c0_49 = arith.constant 0 : index
    %152 = vector.load %arg6[%151, %c0_49] : memref<16x256xf32, #tpu.memory_space<vmem>>, vector<2x256xf32>
    %153 = vector.extract_strided_slice %150 {offsets = [0, 0], sizes = [2, 128], strides = [1, 1]} : vector<2x256xf32> to vector<2x128xf32>
    %c0_50 = arith.constant 0 : index
    %c0_51 = arith.constant 0 : index
    %154 = vector.load %arg2[%c0_50, %c0_51] : memref<32x128xf32, #tpu.memory_space<vmem>>, vector<32x128xf32>
    %cst_52 = arith.constant dense<0.000000e+00> : vector<2x128xf32>
    %155 = tpu.matmul %116, %154, %cst_52 {dimension_numbers = #tpu.dot_dimension_numbers<[1], [0], [0], [1], [0, 0, 1, 1], [], []>} : vector<2x32xf32>, vector<32x128xf32>, vector<2x128xf32> -> vector<2x128xf32>
    %156 = arith.addf %153, %155 : vector<2x128xf32>
    %157 = vector.extract_strided_slice %152 {offsets = [0, 128], sizes = [2, 128], strides = [1, 1]} : vector<2x256xf32> to vector<2x128xf32>
    %c0_53 = arith.constant 0 : index
    %c0_54 = arith.constant 0 : index
    %158 = vector.load %arg3[%c0_53, %c0_54] : memref<32x128xf32, #tpu.memory_space<vmem>>, vector<32x128xf32>
    %cst_55 = arith.constant dense<0.000000e+00> : vector<2x128xf32>
    %159 = tpu.matmul %141, %158, %cst_55 {dimension_numbers = #tpu.dot_dimension_numbers<[1], [0], [0], [1], [0, 0, 1, 1], [], []>} : vector<2x32xf32>, vector<32x128xf32>, vector<2x128xf32> -> vector<2x128xf32>
    %160 = arith.addf %157, %159 : vector<2x128xf32>
    %161 = vector.extract_strided_slice %156 {offsets = [0, 0], sizes = [2, 32], strides = [1, 1]} : vector<2x128xf32> to vector<2x32xf32>
    %162 = arith.negf %161 : vector<2x32xf32>
    %163 = math.exp %162 : vector<2x32xf32>
    %cst_56 = arith.constant 1.000000e+00 : f32
    %164 = vector.broadcast %cst_56 : f32 to vector<2x32xf32>
    %165 = arith.addf %164, %163 : vector<2x32xf32>
    %166 = arith.divf %164, %165 : vector<2x32xf32>
    %167 = vector.extract_strided_slice %156 {offsets = [0, 32], sizes = [2, 32], strides = [1, 1]} : vector<2x128xf32> to vector<2x32xf32>
    %168 = arith.negf %167 : vector<2x32xf32>
    %169 = math.exp %168 : vector<2x32xf32>
    %cst_57 = arith.constant 1.000000e+00 : f32
    %170 = vector.broadcast %cst_57 : f32 to vector<2x32xf32>
    %171 = arith.addf %170, %169 : vector<2x32xf32>
    %172 = arith.divf %170, %171 : vector<2x32xf32>
    %173 = vector.extract_strided_slice %156 {offsets = [0, 64], sizes = [2, 32], strides = [1, 1]} : vector<2x128xf32> to vector<2x32xf32>
    %174 = math.tanh %173 : vector<2x32xf32>
    %175 = vector.extract_strided_slice %156 {offsets = [0, 96], sizes = [2, 32], strides = [1, 1]} : vector<2x128xf32> to vector<2x32xf32>
    %176 = arith.negf %175 : vector<2x32xf32>
    %177 = math.exp %176 : vector<2x32xf32>
    %cst_58 = arith.constant 1.000000e+00 : f32
    %178 = vector.broadcast %cst_58 : f32 to vector<2x32xf32>
    %179 = arith.addf %178, %177 : vector<2x32xf32>
    %180 = arith.divf %178, %179 : vector<2x32xf32>
    %181 = arith.mulf %172, %114 : vector<2x32xf32>
    %182 = arith.mulf %166, %174 : vector<2x32xf32>
    %183 = arith.addf %181, %182 : vector<2x32xf32>
    %184 = math.tanh %183 : vector<2x32xf32>
    %185 = arith.mulf %180, %184 : vector<2x32xf32>
    %186 = vector.extract_strided_slice %160 {offsets = [0, 0], sizes = [2, 32], strides = [1, 1]} : vector<2x128xf32> to vector<2x32xf32>
    %187 = arith.negf %186 : vector<2x32xf32>
    %188 = math.exp %187 : vector<2x32xf32>
    %cst_59 = arith.constant 1.000000e+00 : f32
    %189 = vector.broadcast %cst_59 : f32 to vector<2x32xf32>
    %190 = arith.addf %189, %188 : vector<2x32xf32>
    %191 = arith.divf %189, %190 : vector<2x32xf32>
    %192 = vector.extract_strided_slice %160 {offsets = [0, 32], sizes = [2, 32], strides = [1, 1]} : vector<2x128xf32> to vector<2x32xf32>
    %193 = arith.negf %192 : vector<2x32xf32>
    %194 = math.exp %193 : vector<2x32xf32>
    %cst_60 = arith.constant 1.000000e+00 : f32
    %195 = vector.broadcast %cst_60 : f32 to vector<2x32xf32>
    %196 = arith.addf %195, %194 : vector<2x32xf32>
    %197 = arith.divf %195, %196 : vector<2x32xf32>
    %198 = vector.extract_strided_slice %160 {offsets = [0, 64], sizes = [2, 32], strides = [1, 1]} : vector<2x128xf32> to vector<2x32xf32>
    %199 = math.tanh %198 : vector<2x32xf32>
    %200 = vector.extract_strided_slice %160 {offsets = [0, 96], sizes = [2, 32], strides = [1, 1]} : vector<2x128xf32> to vector<2x32xf32>
    %201 = arith.negf %200 : vector<2x32xf32>
    %202 = math.exp %201 : vector<2x32xf32>
    %cst_61 = arith.constant 1.000000e+00 : f32
    %203 = vector.broadcast %cst_61 : f32 to vector<2x32xf32>
    %204 = arith.addf %203, %202 : vector<2x32xf32>
    %205 = arith.divf %203, %204 : vector<2x32xf32>
    %206 = arith.mulf %197, %139 : vector<2x32xf32>
    %207 = arith.mulf %191, %199 : vector<2x32xf32>
    %208 = arith.addf %206, %207 : vector<2x32xf32>
    %209 = math.tanh %208 : vector<2x32xf32>
    %210 = arith.mulf %205, %209 : vector<2x32xf32>
    %211 = arith.index_cast %146 : i32 to index
    %c0_62 = arith.constant 0 : index
    %212 = vector.load %arg7[%211, %c0_62] : memref<16x32xf32, #tpu.memory_space<vmem>>, vector<2x32xf32>
    tpu.vector_store %arg7[%211, %c0_62], %185 {strides = array<i32>} : memref<16x32xf32, #tpu.memory_space<vmem>>, vector<2x32xf32>,
    %213 = arith.index_cast %148 : i32 to index
    %c0_63 = arith.constant 0 : index
    %214 = vector.load %arg8[%213, %c0_63] : memref<16x32xf32, #tpu.memory_space<vmem>>, vector<2x32xf32>
    tpu.vector_store %arg8[%213, %c0_63], %210 {strides = array<i32>} : memref<16x32xf32, #tpu.memory_space<vmem>>, vector<2x32xf32>,
    %c3_i32 = arith.constant 3 : i32
    %c2_i32_64 = arith.constant 2 : i32
    %215 = arith.muli %c3_i32, %c2_i32_64 : i32
    %c7_i32_65 = arith.constant 7 : i32
    %216 = arith.subi %c7_i32_65, %c3_i32 : i32
    %c2_i32_66 = arith.constant 2 : i32
    %217 = arith.muli %216, %c2_i32_66 : i32
    %218 = arith.index_cast %215 : i32 to index
    %c0_67 = arith.constant 0 : index
    %219 = vector.load %arg6[%218, %c0_67] : memref<16x256xf32, #tpu.memory_space<vmem>>, vector<2x256xf32>
    %220 = arith.index_cast %217 : i32 to index
    %c0_68 = arith.constant 0 : index
    %221 = vector.load %arg6[%220, %c0_68] : memref<16x256xf32, #tpu.memory_space<vmem>>, vector<2x256xf32>
    %222 = vector.extract_strided_slice %219 {offsets = [0, 0], sizes = [2, 128], strides = [1, 1]} : vector<2x256xf32> to vector<2x128xf32>
    %c0_69 = arith.constant 0 : index
    %c0_70 = arith.constant 0 : index
    %223 = vector.load %arg2[%c0_69, %c0_70] : memref<32x128xf32, #tpu.memory_space<vmem>>, vector<32x128xf32>
    %cst_71 = arith.constant dense<0.000000e+00> : vector<2x128xf32>
    %224 = tpu.matmul %185, %223, %cst_71 {dimension_numbers = #tpu.dot_dimension_numbers<[1], [0], [0], [1], [0, 0, 1, 1], [], []>} : vector<2x32xf32>, vector<32x128xf32>, vector<2x128xf32> -> vector<2x128xf32>
    %225 = arith.addf %222, %224 : vector<2x128xf32>
    %226 = vector.extract_strided_slice %221 {offsets = [0, 128], sizes = [2, 128], strides = [1, 1]} : vector<2x256xf32> to vector<2x128xf32>
    %c0_72 = arith.constant 0 : index
    %c0_73 = arith.constant 0 : index
    %227 = vector.load %arg3[%c0_72, %c0_73] : memref<32x128xf32, #tpu.memory_space<vmem>>, vector<32x128xf32>
    %cst_74 = arith.constant dense<0.000000e+00> : vector<2x128xf32>
    %228 = tpu.matmul %210, %227, %cst_74 {dimension_numbers = #tpu.dot_dimension_numbers<[1], [0], [0], [1], [0, 0, 1, 1], [], []>} : vector<2x32xf32>, vector<32x128xf32>, vector<2x128xf32> -> vector<2x128xf32>
    %229 = arith.addf %226, %228 : vector<2x128xf32>
    %230 = vector.extract_strided_slice %225 {offsets = [0, 0], sizes = [2, 32], strides = [1, 1]} : vector<2x128xf32> to vector<2x32xf32>
    %231 = arith.negf %230 : vector<2x32xf32>
    %232 = math.exp %231 : vector<2x32xf32>
    %cst_75 = arith.constant 1.000000e+00 : f32
    %233 = vector.broadcast %cst_75 : f32 to vector<2x32xf32>
    %234 = arith.addf %233, %232 : vector<2x32xf32>
    %235 = arith.divf %233, %234 : vector<2x32xf32>
    %236 = vector.extract_strided_slice %225 {offsets = [0, 32], sizes = [2, 32], strides = [1, 1]} : vector<2x128xf32> to vector<2x32xf32>
    %237 = arith.negf %236 : vector<2x32xf32>
    %238 = math.exp %237 : vector<2x32xf32>
    %cst_76 = arith.constant 1.000000e+00 : f32
    %239 = vector.broadcast %cst_76 : f32 to vector<2x32xf32>
    %240 = arith.addf %239, %238 : vector<2x32xf32>
    %241 = arith.divf %239, %240 : vector<2x32xf32>
    %242 = vector.extract_strided_slice %225 {offsets = [0, 64], sizes = [2, 32], strides = [1, 1]} : vector<2x128xf32> to vector<2x32xf32>
    %243 = math.tanh %242 : vector<2x32xf32>
    %244 = vector.extract_strided_slice %225 {offsets = [0, 96], sizes = [2, 32], strides = [1, 1]} : vector<2x128xf32> to vector<2x32xf32>
    %245 = arith.negf %244 : vector<2x32xf32>
    %246 = math.exp %245 : vector<2x32xf32>
    %cst_77 = arith.constant 1.000000e+00 : f32
    %247 = vector.broadcast %cst_77 : f32 to vector<2x32xf32>
    %248 = arith.addf %247, %246 : vector<2x32xf32>
    %249 = arith.divf %247, %248 : vector<2x32xf32>
    %250 = arith.mulf %241, %183 : vector<2x32xf32>
    %251 = arith.mulf %235, %243 : vector<2x32xf32>
    %252 = arith.addf %250, %251 : vector<2x32xf32>
    %253 = math.tanh %252 : vector<2x32xf32>
    %254 = arith.mulf %249, %253 : vector<2x32xf32>
    %255 = vector.extract_strided_slice %229 {offsets = [0, 0], sizes = [2, 32], strides = [1, 1]} : vector<2x128xf32> to vector<2x32xf32>
    %256 = arith.negf %255 : vector<2x32xf32>
    %257 = math.exp %256 : vector<2x32xf32>
    %cst_78 = arith.constant 1.000000e+00 : f32
    %258 = vector.broadcast %cst_78 : f32 to vector<2x32xf32>
    %259 = arith.addf %258, %257 : vector<2x32xf32>
    %260 = arith.divf %258, %259 : vector<2x32xf32>
    %261 = vector.extract_strided_slice %229 {offsets = [0, 32], sizes = [2, 32], strides = [1, 1]} : vector<2x128xf32> to vector<2x32xf32>
    %262 = arith.negf %261 : vector<2x32xf32>
    %263 = math.exp %262 : vector<2x32xf32>
    %cst_79 = arith.constant 1.000000e+00 : f32
    %264 = vector.broadcast %cst_79 : f32 to vector<2x32xf32>
    %265 = arith.addf %264, %263 : vector<2x32xf32>
    %266 = arith.divf %264, %265 : vector<2x32xf32>
    %267 = vector.extract_strided_slice %229 {offsets = [0, 64], sizes = [2, 32], strides = [1, 1]} : vector<2x128xf32> to vector<2x32xf32>
    %268 = math.tanh %267 : vector<2x32xf32>
    %269 = vector.extract_strided_slice %229 {offsets = [0, 96], sizes = [2, 32], strides = [1, 1]} : vector<2x128xf32> to vector<2x32xf32>
    %270 = arith.negf %269 : vector<2x32xf32>
    %271 = math.exp %270 : vector<2x32xf32>
    %cst_80 = arith.constant 1.000000e+00 : f32
    %272 = vector.broadcast %cst_80 : f32 to vector<2x32xf32>
    %273 = arith.addf %272, %271 : vector<2x32xf32>
    %274 = arith.divf %272, %273 : vector<2x32xf32>
    %275 = arith.mulf %266, %208 : vector<2x32xf32>
    %276 = arith.mulf %260, %268 : vector<2x32xf32>
    %277 = arith.addf %275, %276 : vector<2x32xf32>
    %278 = math.tanh %277 : vector<2x32xf32>
    %279 = arith.mulf %274, %278 : vector<2x32xf32>
    %280 = arith.index_cast %215 : i32 to index
    %c0_81 = arith.constant 0 : index
    %281 = vector.load %arg7[%280, %c0_81] : memref<16x32xf32, #tpu.memory_space<vmem>>, vector<2x32xf32>
    tpu.vector_store %arg7[%280, %c0_81], %254 {strides = array<i32>} : memref<16x32xf32, #tpu.memory_space<vmem>>, vector<2x32xf32>,
    %282 = arith.index_cast %217 : i32 to index
    %c0_82 = arith.constant 0 : index
    %283 = vector.load %arg8[%282, %c0_82] : memref<16x32xf32, #tpu.memory_space<vmem>>, vector<2x32xf32>
    tpu.vector_store %arg8[%282, %c0_82], %279 {strides = array<i32>} : memref<16x32xf32, #tpu.memory_space<vmem>>, vector<2x32xf32>,
    %c4_i32 = arith.constant 4 : i32
    %c2_i32_83 = arith.constant 2 : i32
    %284 = arith.muli %c4_i32, %c2_i32_83 : i32
    %c7_i32_84 = arith.constant 7 : i32
    %285 = arith.subi %c7_i32_84, %c4_i32 : i32
    %c2_i32_85 = arith.constant 2 : i32
    %286 = arith.muli %285, %c2_i32_85 : i32
    %287 = arith.index_cast %284 : i32 to index
    %c0_86 = arith.constant 0 : index
    %288 = vector.load %arg6[%287, %c0_86] : memref<16x256xf32, #tpu.memory_space<vmem>>, vector<2x256xf32>
    %289 = arith.index_cast %286 : i32 to index
    %c0_87 = arith.constant 0 : index
    %290 = vector.load %arg6[%289, %c0_87] : memref<16x256xf32, #tpu.memory_space<vmem>>, vector<2x256xf32>
    %291 = vector.extract_strided_slice %288 {offsets = [0, 0], sizes = [2, 128], strides = [1, 1]} : vector<2x256xf32> to vector<2x128xf32>
    %c0_88 = arith.constant 0 : index
    %c0_89 = arith.constant 0 : index
    %292 = vector.load %arg2[%c0_88, %c0_89] : memref<32x128xf32, #tpu.memory_space<vmem>>, vector<32x128xf32>
    %cst_90 = arith.constant dense<0.000000e+00> : vector<2x128xf32>
    %293 = tpu.matmul %254, %292, %cst_90 {dimension_numbers = #tpu.dot_dimension_numbers<[1], [0], [0], [1], [0, 0, 1, 1], [], []>} : vector<2x32xf32>, vector<32x128xf32>, vector<2x128xf32> -> vector<2x128xf32>
    %294 = arith.addf %291, %293 : vector<2x128xf32>
    %295 = vector.extract_strided_slice %290 {offsets = [0, 128], sizes = [2, 128], strides = [1, 1]} : vector<2x256xf32> to vector<2x128xf32>
    %c0_91 = arith.constant 0 : index
    %c0_92 = arith.constant 0 : index
    %296 = vector.load %arg3[%c0_91, %c0_92] : memref<32x128xf32, #tpu.memory_space<vmem>>, vector<32x128xf32>
    %cst_93 = arith.constant dense<0.000000e+00> : vector<2x128xf32>
    %297 = tpu.matmul %279, %296, %cst_93 {dimension_numbers = #tpu.dot_dimension_numbers<[1], [0], [0], [1], [0, 0, 1, 1], [], []>} : vector<2x32xf32>, vector<32x128xf32>, vector<2x128xf32> -> vector<2x128xf32>
    %298 = arith.addf %295, %297 : vector<2x128xf32>
    %299 = vector.extract_strided_slice %294 {offsets = [0, 0], sizes = [2, 32], strides = [1, 1]} : vector<2x128xf32> to vector<2x32xf32>
    %300 = arith.negf %299 : vector<2x32xf32>
    %301 = math.exp %300 : vector<2x32xf32>
    %cst_94 = arith.constant 1.000000e+00 : f32
    %302 = vector.broadcast %cst_94 : f32 to vector<2x32xf32>
    %303 = arith.addf %302, %301 : vector<2x32xf32>
    %304 = arith.divf %302, %303 : vector<2x32xf32>
    %305 = vector.extract_strided_slice %294 {offsets = [0, 32], sizes = [2, 32], strides = [1, 1]} : vector<2x128xf32> to vector<2x32xf32>
    %306 = arith.negf %305 : vector<2x32xf32>
    %307 = math.exp %306 : vector<2x32xf32>
    %cst_95 = arith.constant 1.000000e+00 : f32
    %308 = vector.broadcast %cst_95 : f32 to vector<2x32xf32>
    %309 = arith.addf %308, %307 : vector<2x32xf32>
    %310 = arith.divf %308, %309 : vector<2x32xf32>
    %311 = vector.extract_strided_slice %294 {offsets = [0, 64], sizes = [2, 32], strides = [1, 1]} : vector<2x128xf32> to vector<2x32xf32>
    %312 = math.tanh %311 : vector<2x32xf32>
    %313 = vector.extract_strided_slice %294 {offsets = [0, 96], sizes = [2, 32], strides = [1, 1]} : vector<2x128xf32> to vector<2x32xf32>
    %314 = arith.negf %313 : vector<2x32xf32>
    %315 = math.exp %314 : vector<2x32xf32>
    %cst_96 = arith.constant 1.000000e+00 : f32
    %316 = vector.broadcast %cst_96 : f32 to vector<2x32xf32>
    %317 = arith.addf %316, %315 : vector<2x32xf32>
    %318 = arith.divf %316, %317 : vector<2x32xf32>
    %319 = arith.mulf %310, %252 : vector<2x32xf32>
    %320 = arith.mulf %304, %312 : vector<2x32xf32>
    %321 = arith.addf %319, %320 : vector<2x32xf32>
    %322 = math.tanh %321 : vector<2x32xf32>
    %323 = arith.mulf %318, %322 : vector<2x32xf32>
    %324 = vector.extract_strided_slice %298 {offsets = [0, 0], sizes = [2, 32], strides = [1, 1]} : vector<2x128xf32> to vector<2x32xf32>
    %325 = arith.negf %324 : vector<2x32xf32>
    %326 = math.exp %325 : vector<2x32xf32>
    %cst_97 = arith.constant 1.000000e+00 : f32
    %327 = vector.broadcast %cst_97 : f32 to vector<2x32xf32>
    %328 = arith.addf %327, %326 : vector<2x32xf32>
    %329 = arith.divf %327, %328 : vector<2x32xf32>
    %330 = vector.extract_strided_slice %298 {offsets = [0, 32], sizes = [2, 32], strides = [1, 1]} : vector<2x128xf32> to vector<2x32xf32>
    %331 = arith.negf %330 : vector<2x32xf32>
    %332 = math.exp %331 : vector<2x32xf32>
    %cst_98 = arith.constant 1.000000e+00 : f32
    %333 = vector.broadcast %cst_98 : f32 to vector<2x32xf32>
    %334 = arith.addf %333, %332 : vector<2x32xf32>
    %335 = arith.divf %333, %334 : vector<2x32xf32>
    %336 = vector.extract_strided_slice %298 {offsets = [0, 64], sizes = [2, 32], strides = [1, 1]} : vector<2x128xf32> to vector<2x32xf32>
    %337 = math.tanh %336 : vector<2x32xf32>
    %338 = vector.extract_strided_slice %298 {offsets = [0, 96], sizes = [2, 32], strides = [1, 1]} : vector<2x128xf32> to vector<2x32xf32>
    %339 = arith.negf %338 : vector<2x32xf32>
    %340 = math.exp %339 : vector<2x32xf32>
    %cst_99 = arith.constant 1.000000e+00 : f32
    %341 = vector.broadcast %cst_99 : f32 to vector<2x32xf32>
    %342 = arith.addf %341, %340 : vector<2x32xf32>
    %343 = arith.divf %341, %342 : vector<2x32xf32>
    %344 = arith.mulf %335, %277 : vector<2x32xf32>
    %345 = arith.mulf %329, %337 : vector<2x32xf32>
    %346 = arith.addf %344, %345 : vector<2x32xf32>
    %347 = math.tanh %346 : vector<2x32xf32>
    %348 = arith.mulf %343, %347 : vector<2x32xf32>
    %349 = arith.index_cast %284 : i32 to index
    %c0_100 = arith.constant 0 : index
    %350 = vector.load %arg7[%349, %c0_100] : memref<16x32xf32, #tpu.memory_space<vmem>>, vector<2x32xf32>
    tpu.vector_store %arg7[%349, %c0_100], %323 {strides = array<i32>} : memref<16x32xf32, #tpu.memory_space<vmem>>, vector<2x32xf32>,
    %351 = arith.index_cast %286 : i32 to index
    %c0_101 = arith.constant 0 : index
    %352 = vector.load %arg8[%351, %c0_101] : memref<16x32xf32, #tpu.memory_space<vmem>>, vector<2x32xf32>
    tpu.vector_store %arg8[%351, %c0_101], %348 {strides = array<i32>} : memref<16x32xf32, #tpu.memory_space<vmem>>, vector<2x32xf32>,
    %c5_i32 = arith.constant 5 : i32
    %c2_i32_102 = arith.constant 2 : i32
    %353 = arith.muli %c5_i32, %c2_i32_102 : i32
    %c7_i32_103 = arith.constant 7 : i32
    %354 = arith.subi %c7_i32_103, %c5_i32 : i32
    %c2_i32_104 = arith.constant 2 : i32
    %355 = arith.muli %354, %c2_i32_104 : i32
    %356 = arith.index_cast %353 : i32 to index
    %c0_105 = arith.constant 0 : index
    %357 = vector.load %arg6[%356, %c0_105] : memref<16x256xf32, #tpu.memory_space<vmem>>, vector<2x256xf32>
    %358 = arith.index_cast %355 : i32 to index
    %c0_106 = arith.constant 0 : index
    %359 = vector.load %arg6[%358, %c0_106] : memref<16x256xf32, #tpu.memory_space<vmem>>, vector<2x256xf32>
    %360 = vector.extract_strided_slice %357 {offsets = [0, 0], sizes = [2, 128], strides = [1, 1]} : vector<2x256xf32> to vector<2x128xf32>
    %c0_107 = arith.constant 0 : index
    %c0_108 = arith.constant 0 : index
    %361 = vector.load %arg2[%c0_107, %c0_108] : memref<32x128xf32, #tpu.memory_space<vmem>>, vector<32x128xf32>
    %cst_109 = arith.constant dense<0.000000e+00> : vector<2x128xf32>
    %362 = tpu.matmul %323, %361, %cst_109 {dimension_numbers = #tpu.dot_dimension_numbers<[1], [0], [0], [1], [0, 0, 1, 1], [], []>} : vector<2x32xf32>, vector<32x128xf32>, vector<2x128xf32> -> vector<2x128xf32>
    %363 = arith.addf %360, %362 : vector<2x128xf32>
    %364 = vector.extract_strided_slice %359 {offsets = [0, 128], sizes = [2, 128], strides = [1, 1]} : vector<2x256xf32> to vector<2x128xf32>
    %c0_110 = arith.constant 0 : index
    %c0_111 = arith.constant 0 : index
    %365 = vector.load %arg3[%c0_110, %c0_111] : memref<32x128xf32, #tpu.memory_space<vmem>>, vector<32x128xf32>
    %cst_112 = arith.constant dense<0.000000e+00> : vector<2x128xf32>
    %366 = tpu.matmul %348, %365, %cst_112 {dimension_numbers = #tpu.dot_dimension_numbers<[1], [0], [0], [1], [0, 0, 1, 1], [], []>} : vector<2x32xf32>, vector<32x128xf32>, vector<2x128xf32> -> vector<2x128xf32>
    %367 = arith.addf %364, %366 : vector<2x128xf32>
    %368 = vector.extract_strided_slice %363 {offsets = [0, 0], sizes = [2, 32], strides = [1, 1]} : vector<2x128xf32> to vector<2x32xf32>
    %369 = arith.negf %368 : vector<2x32xf32>
    %370 = math.exp %369 : vector<2x32xf32>
    %cst_113 = arith.constant 1.000000e+00 : f32
    %371 = vector.broadcast %cst_113 : f32 to vector<2x32xf32>
    %372 = arith.addf %371, %370 : vector<2x32xf32>
    %373 = arith.divf %371, %372 : vector<2x32xf32>
    %374 = vector.extract_strided_slice %363 {offsets = [0, 32], sizes = [2, 32], strides = [1, 1]} : vector<2x128xf32> to vector<2x32xf32>
    %375 = arith.negf %374 : vector<2x32xf32>
    %376 = math.exp %375 : vector<2x32xf32>
    %cst_114 = arith.constant 1.000000e+00 : f32
    %377 = vector.broadcast %cst_114 : f32 to vector<2x32xf32>
    %378 = arith.addf %377, %376 : vector<2x32xf32>
    %379 = arith.divf %377, %378 : vector<2x32xf32>
    %380 = vector.extract_strided_slice %363 {offsets = [0, 64], sizes = [2, 32], strides = [1, 1]} : vector<2x128xf32> to vector<2x32xf32>
    %381 = math.tanh %380 : vector<2x32xf32>
    %382 = vector.extract_strided_slice %363 {offsets = [0, 96], sizes = [2, 32], strides = [1, 1]} : vector<2x128xf32> to vector<2x32xf32>
    %383 = arith.negf %382 : vector<2x32xf32>
    %384 = math.exp %383 : vector<2x32xf32>
    %cst_115 = arith.constant 1.000000e+00 : f32
    %385 = vector.broadcast %cst_115 : f32 to vector<2x32xf32>
    %386 = arith.addf %385, %384 : vector<2x32xf32>
    %387 = arith.divf %385, %386 : vector<2x32xf32>
    %388 = arith.mulf %379, %321 : vector<2x32xf32>
    %389 = arith.mulf %373, %381 : vector<2x32xf32>
    %390 = arith.addf %388, %389 : vector<2x32xf32>
    %391 = math.tanh %390 : vector<2x32xf32>
    %392 = arith.mulf %387, %391 : vector<2x32xf32>
    %393 = vector.extract_strided_slice %367 {offsets = [0, 0], sizes = [2, 32], strides = [1, 1]} : vector<2x128xf32> to vector<2x32xf32>
    %394 = arith.negf %393 : vector<2x32xf32>
    %395 = math.exp %394 : vector<2x32xf32>
    %cst_116 = arith.constant 1.000000e+00 : f32
    %396 = vector.broadcast %cst_116 : f32 to vector<2x32xf32>
    %397 = arith.addf %396, %395 : vector<2x32xf32>
    %398 = arith.divf %396, %397 : vector<2x32xf32>
    %399 = vector.extract_strided_slice %367 {offsets = [0, 32], sizes = [2, 32], strides = [1, 1]} : vector<2x128xf32> to vector<2x32xf32>
    %400 = arith.negf %399 : vector<2x32xf32>
    %401 = math.exp %400 : vector<2x32xf32>
    %cst_117 = arith.constant 1.000000e+00 : f32
    %402 = vector.broadcast %cst_117 : f32 to vector<2x32xf32>
    %403 = arith.addf %402, %401 : vector<2x32xf32>
    %404 = arith.divf %402, %403 : vector<2x32xf32>
    %405 = vector.extract_strided_slice %367 {offsets = [0, 64], sizes = [2, 32], strides = [1, 1]} : vector<2x128xf32> to vector<2x32xf32>
    %406 = math.tanh %405 : vector<2x32xf32>
    %407 = vector.extract_strided_slice %367 {offsets = [0, 96], sizes = [2, 32], strides = [1, 1]} : vector<2x128xf32> to vector<2x32xf32>
    %408 = arith.negf %407 : vector<2x32xf32>
    %409 = math.exp %408 : vector<2x32xf32>
    %cst_118 = arith.constant 1.000000e+00 : f32
    %410 = vector.broadcast %cst_118 : f32 to vector<2x32xf32>
    %411 = arith.addf %410, %409 : vector<2x32xf32>
    %412 = arith.divf %410, %411 : vector<2x32xf32>
    %413 = arith.mulf %404, %346 : vector<2x32xf32>
    %414 = arith.mulf %398, %406 : vector<2x32xf32>
    %415 = arith.addf %413, %414 : vector<2x32xf32>
    %416 = math.tanh %415 : vector<2x32xf32>
    %417 = arith.mulf %412, %416 : vector<2x32xf32>
    %418 = arith.index_cast %353 : i32 to index
    %c0_119 = arith.constant 0 : index
    %419 = vector.load %arg7[%418, %c0_119] : memref<16x32xf32, #tpu.memory_space<vmem>>, vector<2x32xf32>
    tpu.vector_store %arg7[%418, %c0_119], %392 {strides = array<i32>} : memref<16x32xf32, #tpu.memory_space<vmem>>, vector<2x32xf32>,
    %420 = arith.index_cast %355 : i32 to index
    %c0_120 = arith.constant 0 : index
    %421 = vector.load %arg8[%420, %c0_120] : memref<16x32xf32, #tpu.memory_space<vmem>>, vector<2x32xf32>
    tpu.vector_store %arg8[%420, %c0_120], %417 {strides = array<i32>} : memref<16x32xf32, #tpu.memory_space<vmem>>, vector<2x32xf32>,
    %c6_i32 = arith.constant 6 : i32
    %c2_i32_121 = arith.constant 2 : i32
    %422 = arith.muli %c6_i32, %c2_i32_121 : i32
    %c7_i32_122 = arith.constant 7 : i32
    %423 = arith.subi %c7_i32_122, %c6_i32 : i32
    %c2_i32_123 = arith.constant 2 : i32
    %424 = arith.muli %423, %c2_i32_123 : i32
    %425 = arith.index_cast %422 : i32 to index
    %c0_124 = arith.constant 0 : index
    %426 = vector.load %arg6[%425, %c0_124] : memref<16x256xf32, #tpu.memory_space<vmem>>, vector<2x256xf32>
    %427 = arith.index_cast %424 : i32 to index
    %c0_125 = arith.constant 0 : index
    %428 = vector.load %arg6[%427, %c0_125] : memref<16x256xf32, #tpu.memory_space<vmem>>, vector<2x256xf32>
    %429 = vector.extract_strided_slice %426 {offsets = [0, 0], sizes = [2, 128], strides = [1, 1]} : vector<2x256xf32> to vector<2x128xf32>
    %c0_126 = arith.constant 0 : index
    %c0_127 = arith.constant 0 : index
    %430 = vector.load %arg2[%c0_126, %c0_127] : memref<32x128xf32, #tpu.memory_space<vmem>>, vector<32x128xf32>
    %cst_128 = arith.constant dense<0.000000e+00> : vector<2x128xf32>
    %431 = tpu.matmul %392, %430, %cst_128 {dimension_numbers = #tpu.dot_dimension_numbers<[1], [0], [0], [1], [0, 0, 1, 1], [], []>} : vector<2x32xf32>, vector<32x128xf32>, vector<2x128xf32> -> vector<2x128xf32>
    %432 = arith.addf %429, %431 : vector<2x128xf32>
    %433 = vector.extract_strided_slice %428 {offsets = [0, 128], sizes = [2, 128], strides = [1, 1]} : vector<2x256xf32> to vector<2x128xf32>
    %c0_129 = arith.constant 0 : index
    %c0_130 = arith.constant 0 : index
    %434 = vector.load %arg3[%c0_129, %c0_130] : memref<32x128xf32, #tpu.memory_space<vmem>>, vector<32x128xf32>
    %cst_131 = arith.constant dense<0.000000e+00> : vector<2x128xf32>
    %435 = tpu.matmul %417, %434, %cst_131 {dimension_numbers = #tpu.dot_dimension_numbers<[1], [0], [0], [1], [0, 0, 1, 1], [], []>} : vector<2x32xf32>, vector<32x128xf32>, vector<2x128xf32> -> vector<2x128xf32>
    %436 = arith.addf %433, %435 : vector<2x128xf32>
    %437 = vector.extract_strided_slice %432 {offsets = [0, 0], sizes = [2, 32], strides = [1, 1]} : vector<2x128xf32> to vector<2x32xf32>
    %438 = arith.negf %437 : vector<2x32xf32>
    %439 = math.exp %438 : vector<2x32xf32>
    %cst_132 = arith.constant 1.000000e+00 : f32
    %440 = vector.broadcast %cst_132 : f32 to vector<2x32xf32>
    %441 = arith.addf %440, %439 : vector<2x32xf32>
    %442 = arith.divf %440, %441 : vector<2x32xf32>
    %443 = vector.extract_strided_slice %432 {offsets = [0, 32], sizes = [2, 32], strides = [1, 1]} : vector<2x128xf32> to vector<2x32xf32>
    %444 = arith.negf %443 : vector<2x32xf32>
    %445 = math.exp %444 : vector<2x32xf32>
    %cst_133 = arith.constant 1.000000e+00 : f32
    %446 = vector.broadcast %cst_133 : f32 to vector<2x32xf32>
    %447 = arith.addf %446, %445 : vector<2x32xf32>
    %448 = arith.divf %446, %447 : vector<2x32xf32>
    %449 = vector.extract_strided_slice %432 {offsets = [0, 64], sizes = [2, 32], strides = [1, 1]} : vector<2x128xf32> to vector<2x32xf32>
    %450 = math.tanh %449 : vector<2x32xf32>
    %451 = vector.extract_strided_slice %432 {offsets = [0, 96], sizes = [2, 32], strides = [1, 1]} : vector<2x128xf32> to vector<2x32xf32>
    %452 = arith.negf %451 : vector<2x32xf32>
    %453 = math.exp %452 : vector<2x32xf32>
    %cst_134 = arith.constant 1.000000e+00 : f32
    %454 = vector.broadcast %cst_134 : f32 to vector<2x32xf32>
    %455 = arith.addf %454, %453 : vector<2x32xf32>
    %456 = arith.divf %454, %455 : vector<2x32xf32>
    %457 = arith.mulf %448, %390 : vector<2x32xf32>
    %458 = arith.mulf %442, %450 : vector<2x32xf32>
    %459 = arith.addf %457, %458 : vector<2x32xf32>
    %460 = math.tanh %459 : vector<2x32xf32>
    %461 = arith.mulf %456, %460 : vector<2x32xf32>
    %462 = vector.extract_strided_slice %436 {offsets = [0, 0], sizes = [2, 32], strides = [1, 1]} : vector<2x128xf32> to vector<2x32xf32>
    %463 = arith.negf %462 : vector<2x32xf32>
    %464 = math.exp %463 : vector<2x32xf32>
    %cst_135 = arith.constant 1.000000e+00 : f32
    %465 = vector.broadcast %cst_135 : f32 to vector<2x32xf32>
    %466 = arith.addf %465, %464 : vector<2x32xf32>
    %467 = arith.divf %465, %466 : vector<2x32xf32>
    %468 = vector.extract_strided_slice %436 {offsets = [0, 32], sizes = [2, 32], strides = [1, 1]} : vector<2x128xf32> to vector<2x32xf32>
    %469 = arith.negf %468 : vector<2x32xf32>
    %470 = math.exp %469 : vector<2x32xf32>
    %cst_136 = arith.constant 1.000000e+00 : f32
    %471 = vector.broadcast %cst_136 : f32 to vector<2x32xf32>
    %472 = arith.addf %471, %470 : vector<2x32xf32>
    %473 = arith.divf %471, %472 : vector<2x32xf32>
    %474 = vector.extract_strided_slice %436 {offsets = [0, 64], sizes = [2, 32], strides = [1, 1]} : vector<2x128xf32> to vector<2x32xf32>
    %475 = math.tanh %474 : vector<2x32xf32>
    %476 = vector.extract_strided_slice %436 {offsets = [0, 96], sizes = [2, 32], strides = [1, 1]} : vector<2x128xf32> to vector<2x32xf32>
    %477 = arith.negf %476 : vector<2x32xf32>
    %478 = math.exp %477 : vector<2x32xf32>
    %cst_137 = arith.constant 1.000000e+00 : f32
    %479 = vector.broadcast %cst_137 : f32 to vector<2x32xf32>
    %480 = arith.addf %479, %478 : vector<2x32xf32>
    %481 = arith.divf %479, %480 : vector<2x32xf32>
    %482 = arith.mulf %473, %415 : vector<2x32xf32>
    %483 = arith.mulf %467, %475 : vector<2x32xf32>
    %484 = arith.addf %482, %483 : vector<2x32xf32>
    %485 = math.tanh %484 : vector<2x32xf32>
    %486 = arith.mulf %481, %485 : vector<2x32xf32>
    %487 = arith.index_cast %422 : i32 to index
    %c0_138 = arith.constant 0 : index
    %488 = vector.load %arg7[%487, %c0_138] : memref<16x32xf32, #tpu.memory_space<vmem>>, vector<2x32xf32>
    tpu.vector_store %arg7[%487, %c0_138], %461 {strides = array<i32>} : memref<16x32xf32, #tpu.memory_space<vmem>>, vector<2x32xf32>,
    %489 = arith.index_cast %424 : i32 to index
    %c0_139 = arith.constant 0 : index
    %490 = vector.load %arg8[%489, %c0_139] : memref<16x32xf32, #tpu.memory_space<vmem>>, vector<2x32xf32>
    tpu.vector_store %arg8[%489, %c0_139], %486 {strides = array<i32>} : memref<16x32xf32, #tpu.memory_space<vmem>>, vector<2x32xf32>,
    %c7_i32_140 = arith.constant 7 : i32
    %c2_i32_141 = arith.constant 2 : i32
    %491 = arith.muli %c7_i32_140, %c2_i32_141 : i32
    %c7_i32_142 = arith.constant 7 : i32
    %492 = arith.subi %c7_i32_142, %c7_i32_140 : i32
    %c2_i32_143 = arith.constant 2 : i32
    %493 = arith.muli %492, %c2_i32_143 : i32
    %494 = arith.index_cast %491 : i32 to index
    %c0_144 = arith.constant 0 : index
    %495 = vector.load %arg6[%494, %c0_144] : memref<16x256xf32, #tpu.memory_space<vmem>>, vector<2x256xf32>
    %496 = arith.index_cast %493 : i32 to index
    %c0_145 = arith.constant 0 : index
    %497 = vector.load %arg6[%496, %c0_145] : memref<16x256xf32, #tpu.memory_space<vmem>>, vector<2x256xf32>
    %498 = vector.extract_strided_slice %495 {offsets = [0, 0], sizes = [2, 128], strides = [1, 1]} : vector<2x256xf32> to vector<2x128xf32>
    %c0_146 = arith.constant 0 : index
    %c0_147 = arith.constant 0 : index
    %499 = vector.load %arg2[%c0_146, %c0_147] : memref<32x128xf32, #tpu.memory_space<vmem>>, vector<32x128xf32>
    %cst_148 = arith.constant dense<0.000000e+00> : vector<2x128xf32>
    %500 = tpu.matmul %461, %499, %cst_148 {dimension_numbers = #tpu.dot_dimension_numbers<[1], [0], [0], [1], [0, 0, 1, 1], [], []>} : vector<2x32xf32>, vector<32x128xf32>, vector<2x128xf32> -> vector<2x128xf32>
    %501 = arith.addf %498, %500 : vector<2x128xf32>
    %502 = vector.extract_strided_slice %497 {offsets = [0, 128], sizes = [2, 128], strides = [1, 1]} : vector<2x256xf32> to vector<2x128xf32>
    %c0_149 = arith.constant 0 : index
    %c0_150 = arith.constant 0 : index
    %503 = vector.load %arg3[%c0_149, %c0_150] : memref<32x128xf32, #tpu.memory_space<vmem>>, vector<32x128xf32>
    %cst_151 = arith.constant dense<0.000000e+00> : vector<2x128xf32>
    %504 = tpu.matmul %486, %503, %cst_151 {dimension_numbers = #tpu.dot_dimension_numbers<[1], [0], [0], [1], [0, 0, 1, 1], [], []>} : vector<2x32xf32>, vector<32x128xf32>, vector<2x128xf32> -> vector<2x128xf32>
    %505 = arith.addf %502, %504 : vector<2x128xf32>
    %506 = vector.extract_strided_slice %501 {offsets = [0, 0], sizes = [2, 32], strides = [1, 1]} : vector<2x128xf32> to vector<2x32xf32>
    %507 = arith.negf %506 : vector<2x32xf32>
    %508 = math.exp %507 : vector<2x32xf32>
    %cst_152 = arith.constant 1.000000e+00 : f32
    %509 = vector.broadcast %cst_152 : f32 to vector<2x32xf32>
    %510 = arith.addf %509, %508 : vector<2x32xf32>
    %511 = arith.divf %509, %510 : vector<2x32xf32>
    %512 = vector.extract_strided_slice %501 {offsets = [0, 32], sizes = [2, 32], strides = [1, 1]} : vector<2x128xf32> to vector<2x32xf32>
    %513 = arith.negf %512 : vector<2x32xf32>
    %514 = math.exp %513 : vector<2x32xf32>
    %cst_153 = arith.constant 1.000000e+00 : f32
    %515 = vector.broadcast %cst_153 : f32 to vector<2x32xf32>
    %516 = arith.addf %515, %514 : vector<2x32xf32>
    %517 = arith.divf %515, %516 : vector<2x32xf32>
    %518 = vector.extract_strided_slice %501 {offsets = [0, 64], sizes = [2, 32], strides = [1, 1]} : vector<2x128xf32> to vector<2x32xf32>
    %519 = math.tanh %518 : vector<2x32xf32>
    %520 = vector.extract_strided_slice %501 {offsets = [0, 96], sizes = [2, 32], strides = [1, 1]} : vector<2x128xf32> to vector<2x32xf32>
    %521 = arith.negf %520 : vector<2x32xf32>
    %522 = math.exp %521 : vector<2x32xf32>
    %cst_154 = arith.constant 1.000000e+00 : f32
    %523 = vector.broadcast %cst_154 : f32 to vector<2x32xf32>
    %524 = arith.addf %523, %522 : vector<2x32xf32>
    %525 = arith.divf %523, %524 : vector<2x32xf32>
    %526 = arith.mulf %517, %459 : vector<2x32xf32>
    %527 = arith.mulf %511, %519 : vector<2x32xf32>
    %528 = arith.addf %526, %527 : vector<2x32xf32>
    %529 = math.tanh %528 : vector<2x32xf32>
    %530 = arith.mulf %525, %529 : vector<2x32xf32>
    %531 = vector.extract_strided_slice %505 {offsets = [0, 0], sizes = [2, 32], strides = [1, 1]} : vector<2x128xf32> to vector<2x32xf32>
    %532 = arith.negf %531 : vector<2x32xf32>
    %533 = math.exp %532 : vector<2x32xf32>
    %cst_155 = arith.constant 1.000000e+00 : f32
    %534 = vector.broadcast %cst_155 : f32 to vector<2x32xf32>
    %535 = arith.addf %534, %533 : vector<2x32xf32>
    %536 = arith.divf %534, %535 : vector<2x32xf32>
    %537 = vector.extract_strided_slice %505 {offsets = [0, 32], sizes = [2, 32], strides = [1, 1]} : vector<2x128xf32> to vector<2x32xf32>
    %538 = arith.negf %537 : vector<2x32xf32>
    %539 = math.exp %538 : vector<2x32xf32>
    %cst_156 = arith.constant 1.000000e+00 : f32
    %540 = vector.broadcast %cst_156 : f32 to vector<2x32xf32>
    %541 = arith.addf %540, %539 : vector<2x32xf32>
    %542 = arith.divf %540, %541 : vector<2x32xf32>
    %543 = vector.extract_strided_slice %505 {offsets = [0, 64], sizes = [2, 32], strides = [1, 1]} : vector<2x128xf32> to vector<2x32xf32>
    %544 = math.tanh %543 : vector<2x32xf32>
    %545 = vector.extract_strided_slice %505 {offsets = [0, 96], sizes = [2, 32], strides = [1, 1]} : vector<2x128xf32> to vector<2x32xf32>
    %546 = arith.negf %545 : vector<2x32xf32>
    %547 = math.exp %546 : vector<2x32xf32>
    %cst_157 = arith.constant 1.000000e+00 : f32
    %548 = vector.broadcast %cst_157 : f32 to vector<2x32xf32>
    %549 = arith.addf %548, %547 : vector<2x32xf32>
    %550 = arith.divf %548, %549 : vector<2x32xf32>
    %551 = arith.mulf %542, %484 : vector<2x32xf32>
    %552 = arith.mulf %536, %544 : vector<2x32xf32>
    %553 = arith.addf %551, %552 : vector<2x32xf32>
    %554 = math.tanh %553 : vector<2x32xf32>
    %555 = arith.mulf %550, %554 : vector<2x32xf32>
    %556 = arith.index_cast %491 : i32 to index
    %c0_158 = arith.constant 0 : index
    %557 = vector.load %arg7[%556, %c0_158] : memref<16x32xf32, #tpu.memory_space<vmem>>, vector<2x32xf32>
    tpu.vector_store %arg7[%556, %c0_158], %530 {strides = array<i32>} : memref<16x32xf32, #tpu.memory_space<vmem>>, vector<2x32xf32>,
    %558 = arith.index_cast %493 : i32 to index
    %c0_159 = arith.constant 0 : index
    %559 = vector.load %arg8[%558, %c0_159] : memref<16x32xf32, #tpu.memory_space<vmem>>, vector<2x32xf32>
    tpu.vector_store %arg8[%558, %c0_159], %555 {strides = array<i32>} : memref<16x32xf32, #tpu.memory_space<vmem>>, vector<2x32xf32>,
    %c8_i32 = arith.constant 8 : i32
    %c0_160 = arith.constant 0 : index
    %c0_161 = arith.constant 0 : index
    %560 = vector.load %arg7[%c0_160, %c0_161] : memref<16x32xf32, #tpu.memory_space<vmem>>, vector<16x32xf32>
    %c0_162 = arith.constant 0 : index
    %c0_163 = arith.constant 0 : index
    %561 = vector.load %arg8[%c0_162, %c0_163] : memref<16x32xf32, #tpu.memory_space<vmem>>, vector<16x32xf32>
    %562 = tpu.concatenate %560, %561 in 1 : vector<16x32xf32>, vector<16x32xf32> -> vector<16x64xf32>
    %c0_164 = arith.constant 0 : index
    %c0_165 = arith.constant 0 : index
    %563 = vector.load %arg5[%c0_164, %c0_165] : memref<16x64xf32, #tpu.memory_space<vmem>>, vector<16x64xf32>
    tpu.vector_store %arg5[%c0_164, %c0_165], %562 {strides = array<i32>} : memref<16x64xf32, #tpu.memory_space<vmem>>, vector<16x64xf32>,
    return
  }
}

</mosaic_0001>

<bundles_post_ra>
// kernel: rnn_forward.3
= control target key start
LH: loop header
LB: loop body
LE: loop exit
PB: predicated region body
PF: predicated region fallthrough
CT: control target
= control target key end

     0   :  { %s1864_s0 = inlined_call_operand.vmem [shape: f32[16,64], index: 0, kind: input, shape index: {}]   ;;  %s1865_s1 = inlined_call_operand.vmem [shape: f32[64,256], index: 1, kind: input, shape index: {}]   ;;  %s1866_s2 = inlined_call_operand.vmem [shape: f32[32,128], index: 2, kind: input, shape index: {}]   ;;  %s1867_s3 = inlined_call_operand.vmem [shape: f32[32,128], index: 3, kind: input, shape index: {}]   ;;  %s1868_s4 = inlined_call_operand.vmem [shape: f32[1,256], index: 4, kind: input, shape index: {}]   ;;  %s1869_s5 = inlined_call_operand.vmem [shape: f32[64,4], index: 5, kind: input, shape index: {}]   ;;  %s1870_s6 = inlined_call_operand.vmem [shape: f32[1,4], index: 6, kind: input, shape index: {}]   ;;  %s1871_s7 = inlined_call_operand.hbm [shape: f32[2,4], index: 7, kind: output, shape index: {}]  }
   0x1   :  { %v43_v0 = vld [vmem:[%s1865_s1 + $0x70] sm:$0xff]  ;;  %v44_v1 = vld [vmem:[%s1865_s1 + $0x78] sm:$0xff]  ;;  %v41_v2 = vld [vmem:[%s1865_s1 + $0x60] sm:$0xff] }
   0x2   :  { %66 = vmatpush.msra.mxu0 %v43_v0  ;;  %89 = vmatpush.msra.mxu1 %v44_v1  ;;  %v42_v3 = vld [vmem:[%s1865_s1 + $0x68] sm:$0xff]  ;;  %v39_v4 = vld [vmem:[%s1865_s1 + $0x50] sm:$0xff]  ;;  %v40_v5 = vld [vmem:[%s1865_s1 + $0x58] sm:$0xff] }
   0x3   :  { %v37_v6 = vld [vmem:[%s1865_s1 + $0x40] sm:$0xff]  ;;  %v38_v7 = vld [vmem:[%s1865_s1 + $0x48] sm:$0xff]  ;;  %v1552_v8 = vld [vmem:[%s1866_s2 + $0x18] sm:$0xff] }
   0x4   :  { %67 = vmatpush.msra.mxu0 %v41_v2  ;;  %90 = vmatpush.msra.mxu1 %v42_v3  ;;  %v1557_v9 = vld [vmem:[%s1866_s2 + $0x10] sm:$0xff]  ;;  %v36_v11 = vld [vmem:[%s1865_s1 + $0x38] sm:$0xff]  ;;  %v1570_v12 = vld [vmem:[%s1866_s2 + $0x8] sm:$0xff] }
   0x5   :  { %v35_v10 = vld [vmem:[%s1865_s1 + $0x30] sm:$0xff]  ;;  %132 = vmatpush.msra.mxu3 %v1552_v8  ;;  %264 = vmatpush.msra.mxu2 %v1552_v8  ;;  %v33_v13 = vld [vmem:[%s1865_s1 + $0x20] sm:$0xff]  ;;  %v34_v14 = vld [vmem:[%s1865_s1 + $0x28] sm:$0xff] }
   0x6   :  { %68 = vmatpush.msra.mxu0 %v39_v4  ;;  %91 = vmatpush.msra.mxu1 %v40_v5  ;;  %v1583_v15 = vld [vmem:[%s1866_s2] sm:$0xff] }
   0x7   :  { %133 = vmatpush.msra.mxu3 %v1557_v9  ;;  %265 = vmatpush.msra.mxu2 %v1557_v9 }
   0x8   :  { %69 = vmatpush.msra.mxu0 %v37_v6  ;;  %92 = vmatpush.msra.mxu1 %v38_v7 }
   0xa   :  { %70 = vmatpush.msra.mxu0 %v35_v10  ;;  %93 = vmatpush.msra.mxu1 %v36_v11 }
   0xb   :  { %12 = vsyncpa [#allocation4], 0  ;;  %v31_v16 = vld [vmem:[%s1865_s1 + $0x10] sm:$0xff]  ;;  %v32_v17 = vld [vmem:[%s1865_s1 + $0x18] sm:$0xff]  ;;  %134 = vmatpush.msra.mxu3 %v1570_v12  ;;  %266 = vmatpush.msra.mxu2 %v1570_v12  ;;  %vm51_vm0 = vcmask 523264   ;;  %v1481_v21 = vmov 0.0  }
   0xc   :  { %71 = vmatpush.msra.mxu0 %v33_v13  ;;  %94 = vmatpush.msra.mxu1 %v34_v14  ;;  %v29_v18 = vld [vmem:[%s1865_s1] sm:$0xff]  ;;  %v30_v19 = vld [vmem:[%s1865_s1 + $0x8] sm:$0xff]  ;;  %v1607_v22 = vld [vmem:[%s1867_s3 + $0x18] sm:$0xff]  ;;  %s1483_s28 = smov 32   ;;  %vm116_vm9 = vcmask 261120   ;;  %s1484_s22 = smov [#allocation3]  }
   0xd   :  { %135 = vmatpush.msra.mxu3 %v1583_v15  ;;  %267 = vmatpush.msra.mxu2 %v1583_v15  ;;  %v27_v20 = vld [vmem:[%s1864_s0] sm:$0xff]  ;;  %v1615_v23 = vld [vmem:[%s1867_s3 + $0x10] sm:$0xff]  ;;  %v1622_v24 = vld [vmem:[%s1867_s3 + $0x8] sm:$0xff]  ;;  %s1276_s23 = sshll.u32 %s1484_s22, 4  ;;  %s1278_s26 = sshll.u32 %s1871_s7, 4  ;;  %s1277_s23 = int_to_ptr.vmem [resolvable:$true] %s1276_s23  ;;  %s1279_s26 = int_to_ptr.hbm [resolvable:$true] %s1278_s26 }
   0xe   :  { %72 = vmatpush.msra.mxu0 %v31_v16  ;;  %95 = vmatpush.msra.mxu1 %v32_v17  ;;  %v1631_v25 = vld [vmem:[%s1867_s3] sm:$0xff]  ;;  %v28_v26 = vld [vmem:[%s1864_s0 + $0x8] sm:$0xff] }
   0xf   :  { %136 = vmatmul.f32.vlgmr.msra.gmra.mxu3 %v1481_v21  ;;  %408 = vmatpush.msrb.mxu2 %v1552_v8  ;;  %v1666_v27 = vld [vmem:[%s1868_s4] sm:$0x3]  ;;  %s1482_s4 = smov 64  }
  0x10   :  { %73 = vmatpush.msra.mxu0 %v29_v18  ;;  %96 = vmatpush.msra.mxu1 %v30_v19  ;;  %v47_v28 = vperm.slane %v1666_v27, 0  ;;  %v48_v29 = vperm.slane %v1666_v27, 1 }
  0x11   :  { %1287 = vmatmul.msk.f32.vlgmr.msra.gmra.mxu0 %vm51_vm0, %v27_v20  ;;  %1289 = vmatmul.msk.f32.vlgmr.msra.gmra.mxu1 %vm51_vm0, %v27_v20 }
  0x12   :  { %157 = vmatpush.msrb.mxu3 %v1607_v22  ;;  %409 = vmatpush.msrb.mxu2 %v1557_v9 }
  0x13   :  { %582 = vmatpush.msrb.mxu1 %v1607_v22  ;;  %552 = vmatpush.msrb.mxu0 %v1552_v8 }
  0x14   :  { %158 = vmatpush.msrb.mxu3 %v1615_v23  ;;  %410 = vmatpush.msrb.mxu2 %v1570_v12 }
  0x15   :  { %583 = vmatpush.msrb.mxu1 %v1615_v23  ;;  %553 = vmatpush.msrb.mxu0 %v1557_v9 }
  0x16   :  { %159 = vmatpush.msrb.mxu3 %v1622_v24  ;;  %411 = vmatpush.msrb.mxu2 %v1583_v15 }
  0x17   :  { %584 = vmatpush.msrb.mxu1 %v1622_v24  ;;  %554 = vmatpush.msrb.mxu0 %v1570_v12 }
  0x18   :  { %160 = vmatpush.msrb.mxu3 %v1631_v25 }
  0x19   :  { %1290 = vmatmul.msk.f32.gmra.mxu1 %vm51_vm0, %v28_v26  ;;  %161 = vmatmul.f32.vlgmr.msrb.gmra.mxu3 %v1481_v21 }
  0x1a   :  { %294 = vmatpush.msra.mxu3 %v1607_v22  ;;  %585 = vmatpush.msrb.mxu1 %v1631_v25 }
  0x1b   :  { %1288 = vmatmul.msk.f32.gmra.mxu0 %vm51_vm0, %v28_v26 }
  0x1c   :  { %854 = vmatpush.msra.mxu1 %v1607_v22  ;;  %295 = vmatpush.msra.mxu3 %v1615_v23 }
  0x1d   :  { %555 = vmatpush.msrb.mxu0 %v1583_v15 }
  0x1e   :  { %855 = vmatpush.msra.mxu1 %v1615_v23  ;;  %296 = vmatpush.msra.mxu3 %v1622_v24 }
  0x1f   :  { %824 = vmatpush.msra.mxu0 %v1552_v8 }
  0x20   :  { %856 = vmatpush.msra.mxu1 %v1622_v24  ;;  %297 = vmatpush.msra.mxu3 %v1631_v25 }
  0x21   :  { %825 = vmatpush.msra.mxu0 %v1557_v9 }
  0x22   :  { %438 = vmatpush.msrb.mxu3 %v1607_v22  ;;  %857 = vmatpush.msra.mxu1 %v1631_v25 }
  0x23   :  { %826 = vmatpush.msra.mxu0 %v1570_v12 }
  0x24   :  { %439 = vmatpush.msrb.mxu3 %v1615_v23 }
  0x25   :  { %827 = vmatpush.msra.mxu0 %v1583_v15 }
  0x26   :  { %440 = vmatpush.msrb.mxu3 %v1622_v24 }
  0x28   :  { %441 = vmatpush.msrb.mxu3 %v1631_v25 }
  0x8e   :  { %v75_v30 = vpop.f32.mrf.mxu0  ;;  %v98_v31 = vpop.f32.mrf.mxu1 }
  0x8f   :  { %v76_v32 = vadd.f32 %v75_v30, %v47_v28  ;;  %v99_v33 = vadd.f32 %v98_v31, %v48_v29 }
  0x91   :  { %104 = vst [vmem:[#allocation2 + $0x10] sm:$0xff] %v76_v32 }
  0x92   :  { %105 = vst [vmem:[#allocation2] sm:$0xff] %v99_v33  ;;  %v137_v34 = vpop.f32.mrf.mxu3 }
  0x96   :  { %v101_v35 = vpop.f32.mrf.mxu1 }
  0x97   :  { %v102_v36 = vadd.f32 %v101_v35, %v48_v29 }
  0x98   :  { %v108_v41 = vld [vmem:[#allocation2 + $0x10] sm:$0x3] }
  0x99   :  { %107 = vst [vmem:[#allocation2 + $0x8] sm:$0xff] %v102_v36  ;;  %v140_v42 = vadd.f32 %v137_v34, %v108_v41 }
  0x9b   :  { %v1291_v46 = vmul.f32 -1.442695, %v140_v42 }
  0x9c   :  { %v162_v37 = vpop.f32.mrf.mxu3 }
  0x9d   :  { %v166_v38 = vrot.slane %v162_v37, 2 }
  0xa0   :  { %v111_v39 = vld [vmem:[#allocation2 + $0x8] sm:$0xc0]  ;;  %v533_v27 = vld [vmem:[#allocation2 + $0x8] sm:$0x3] }
  0xa1   :  { %v168_v40 = vadd.f32 %v166_v38, %v111_v39  ;;  %v246_v38 = vld [vmem:[#allocation2 + $0x8] sm:$0x30] }
  0xa3   :  { %1327 = vtanh.f32 %v168_v40  ;;  %v1292_v45 = vmul.f32 -1.442695, %v168_v40 }
  0xa4   :  { %1329 = vtanh.f32 %v140_v42  ;;  %v243_v42 = vld [vmem:[#allocation2 + $0x10] sm:$0xc] }
  0xa5   :  { %1331 = vpow2.f32 %v1292_v45 }
  0xa6   :  { %1333 = vpow2.f32 %v1291_v46 }
  0xa9   :  { %v1328_v43 = vpop.eup %1327 }
  0xaa   :  { %228 = vrot.lane.b32.xlu0 %v1328_v43, %s1482_s4  ;;  %v1330_v44 = vpop.eup %1329 }
  0xab   :  { %v1332_v47 = vpop.eup %1331 }
  0xac   :  { %v209_v48 = vadd.f32 1.0, %v1332_v47  ;;  %v1334_v49 = vpop.eup %1333 }
  0xad   :  { %v172_v50 = vadd.f32 1.0, %v1334_v49 }
  0xae   :  { %1335 = vrcp.f32 %v209_v48  ;;  %v221_v59 = vand.u32 2147483648, %v209_v48  ;;  %vm215_vm2 = vweird.f32 %v209_v48  ;;  %v219_v60 = vand.u32 2147483647, %v209_v48 }
  0xaf   :  { %1337 = vrcp.f32 %v172_v50  ;;  %v184_v4 = vand.u32 2147483648, %v172_v50  ;;  %vm178_vm6 = vweird.f32 %v172_v50  ;;  %v182_v5 = vand.u32 2147483647, %v172_v50 }
  0xb0   :  { %v222_v63 = vor.u32 1.1754944e-38, %v221_v59  ;;  %vm220_vm4 = vcmp.eq.f32.partialorder %v219_v60, 8.507059e+37 }
  0xb1   :  { %v185_v7 = vor.u32 1.1754944e-38, %v184_v4  ;;  %vm183_vm8 = vcmp.eq.f32.partialorder %v182_v5, 8.507059e+37 }
  0xb2   :  { %191 = vrot.lane.b32.xlu0 %v1330_v44, %s1482_s4 }
  0xb4   :  { %v1336_v51 = vpop.eup %1335 }
  0xb5   :  { %v211_v52 = vmul.f32 %v1336_v51, %v209_v48  ;;  %v1338_v54 = vpop.eup %1337  ;;  %vm216_vm1 = vweird.f32 %v1336_v51 }
  0xb6   :  { %v174_v56 = vmul.f32 %v1338_v54, %v172_v50  ;;  %vm217_vm3 = vmor %vm215_vm2, %vm216_vm1  ;;  %vm179_vm5 = vweird.f32 %v1338_v54 }
  0xb7   :  { %v212_v53 = vsub.f32 1.0, %v211_v52  ;;  %vm180_vm7 = vmor %vm178_vm6, %vm179_vm5 }
  0xb8   :  { %v175_v58 = vsub.f32 1.0, %v174_v56 }
  0xb9   :  { %v213_v55 = vmul.f32 %v1336_v51, %v212_v53 }
  0xba   :  { %v176_v62 = vmul.f32 %v1338_v54, %v175_v58 }
  0xbb   :  { %v214_v57 = vadd.f32 %v1336_v51, %v213_v55 }
  0xbc   :  { %v177_v3 = vadd.f32 %v1338_v54, %v176_v62 }
  0xbd   :  { %v218_v61 = vsel %vm217_vm3, %v1336_v51, %v214_v57 }
  0xbe   :  { %v223_v1 = vsel %vm220_vm4, %v222_v63, %v218_v61  ;;  %v181_v6 = vsel %vm180_vm7, %v1338_v54, %v177_v3 }
  0xbf   :  { %v186_v11 = vsel %vm183_vm8, %v185_v7, %v181_v6  ;;  %v226_v14 = vmul.f32 0.0, %v223_v1 }
  0xc0   :  { %v189_v18 = vmul.f32 0.0, %v186_v11 }
 0x11c   :  { %v229_v0 = vpop.permute.xlu0 %228 }
 0x11d   :  { %v231_v2 = vmul.f32 %v229_v0, %v223_v1 }
 0x11f   :  { %233 = vrot.lane.b32.xlu1 %v231_v2, %s1483_s28 }
 0x124   :  { %v192_v10 = vpop.permute.xlu0 %191 }
 0x125   :  { %v194_v13 = vmul.f32 %v192_v10, %v186_v11 }
 0x127   :  { %196 = vrot.lane.b32.xlu1 %v194_v13, %s1483_s28 }
 0x191   :  { %v234_v16 = vpop.permute.xlu1 %233 }
 0x192   :  { %v1676_v17 = vadd.f32 %v234_v16, %v226_v14 }
 0x194   :  { %1339 = vtanh.f32 %v1676_v17  ;;  %v367_v16 = vrot.slane %v1676_v17, 2 }
 0x199   :  { %v197_v19 = vpop.permute.xlu1 %196 }
 0x19a   :  { %v1340_v20 = vpop.eup %1339  ;;  %v1679_v21 = vadd.f32 %v197_v19, %v189_v18 }
 0x19b   :  { %239 = vrot.lane.b32.xlu2 %v1340_v20, %s1482_s4 }
 0x19c   :  { %1341 = vtanh.f32 %v1679_v21 }
 0x1a2   :  { %v1342_v26 = vpop.eup %1341 }
 0x1a3   :  { %202 = vrot.lane.b32.xlu2 %v1342_v26, %s1482_s4  ;;  %v327_v26 = vrot.slane %v1679_v21, 6 }
 0x1f5   :  { %v240_v29 = vpop.permute.xlu2 %239 }
 0x1f6   :  { %v242_v30 = vmul.f32 %v240_v29, %v223_v1 }
 0x1f8   :  { %v277_v31 = vrot.slane %v242_v30, 6 }
 0x1fa   :  { %278 = vrot.lane.b32.xlu1 %v277_v31, %s1483_s28 }
 0x1fd   :  { %v203_v32 = vpop.permute.xlu2 %202 }
 0x1fe   :  { %v205_v33 = vmul.f32 %v203_v32, %v186_v11 }
 0x200   :  { %248 = vrot.lane.b32.xlu0 %v205_v33, %s1483_s28 }
 0x26c   :  { %v279_v34 = vpop.permute.xlu1 %278 }
 0x26d   :  { %1294 = vmatmul.msk.f32.vlgmr.msra.gmra.mxu3 %vm116_vm9, %v279_v34 }
 0x26e   :  { %715 = vmatpush.msra.mxu3 %v1607_v22 }
 0x270   :  { %716 = vmatpush.msra.mxu3 %v1615_v23 }
 0x272   :  { %v249_v35 = vpop.permute.xlu0 %248  ;;  %717 = vmatpush.msra.mxu3 %v1622_v24 }
 0x273   :  { %1293 = vmatmul.msk.f32.vlgmr.msra.gmra.mxu2 %vm116_vm9, %v249_v35 }
 0x274   :  { %718 = vmatpush.msra.mxu3 %v1631_v25  ;;  %689 = vmatpush.msra.mxu2 %v1552_v8 }
 0x276   :  { %690 = vmatpush.msra.mxu2 %v1557_v9 }
 0x278   :  { %691 = vmatpush.msra.mxu2 %v1570_v12 }
 0x27a   :  { %692 = vmatpush.msra.mxu2 %v1583_v15 }
 0x2f0   :  { %v299_v36 = vpop.f32.mrf.mxu3 }
 0x2f1   :  { %v303_v37 = vrot.slane %v299_v36, 4 }
 0x2f3   :  { %v305_v39 = vadd.f32 %v303_v37, %v246_v38 }
 0x2f5   :  { %1343 = vtanh.f32 %v305_v39  ;;  %v1296_v49 = vmul.f32 -1.442695, %v305_v39 }
 0x2f6   :  { %v269_v40 = vpop.f32.mrf.mxu2 }
 0x2f7   :  { %v273_v41 = vrot.slane %v269_v40, 6 }
 0x2f9   :  { %v275_v43 = vadd.f32 %v273_v41, %v243_v42  ;;  %v386_v42 = vld [vmem:[#allocation2 + $0x10] sm:$0x30] }
 0x2fb   :  { %v1344_v44 = vpop.eup %1343  ;;  %1345 = vtanh.f32 %v275_v43  ;;  %v1295_v46 = vmul.f32 -1.442695, %v275_v43 }
 0x2fc   :  { %371 = vrot.lane.b32.xlu0 %v1344_v44, %s1482_s4 }
 0x2fd   :  { %1347 = vpow2.f32 %v1295_v46 }
 0x301   :  { %v1346_v45 = vpop.eup %1345 }
 0x302   :  { %331 = vrot.lane.b32.xlu2 %v1346_v45, %s1482_s4 }
 0x303   :  { %v1348_v47 = vpop.eup %1347 }
 0x304   :  { %v309_v48 = vadd.f32 1.0, %v1348_v47  ;;  %v389_v47 = vld [vmem:[#allocation2 + $0x8] sm:$0xc] }
 0x306   :  { %1349 = vrcp.f32 %v309_v48  ;;  %v321_v57 = vand.u32 2147483648, %v309_v48  ;;  %vm315_vm11 = vweird.f32 %v309_v48  ;;  %v319_v58 = vand.u32 2147483647, %v309_v48 }
 0x307   :  { %1351 = vpow2.f32 %v1296_v49 }
 0x308   :  { %v322_v61 = vor.u32 1.1754944e-38, %v321_v57  ;;  %vm320_vm13 = vcmp.eq.f32.partialorder %v319_v58, 8.507059e+37 }
 0x30c   :  { %v1350_v50 = vpop.eup %1349 }
 0x30d   :  { %v311_v51 = vmul.f32 %v1350_v50, %v309_v48  ;;  %v1352_v52 = vpop.eup %1351  ;;  %vm316_vm10 = vweird.f32 %v1350_v50 }
 0x30e   :  { %v349_v54 = vadd.f32 1.0, %v1352_v52  ;;  %vm317_vm12 = vmor %vm315_vm11, %vm316_vm10 }
 0x30f   :  { %v312_v53 = vsub.f32 1.0, %v311_v51 }
 0x310   :  { %1353 = vrcp.f32 %v349_v54  ;;  %v361_v5 = vand.u32 2147483648, %v349_v54  ;;  %vm355_vm15 = vweird.f32 %v349_v54  ;;  %v359_v6 = vand.u32 2147483647, %v349_v54 }
 0x311   :  { %v313_v55 = vmul.f32 %v1350_v50, %v312_v53 }
 0x312   :  { %v362_v10 = vor.u32 1.1754944e-38, %v361_v5  ;;  %vm360_vm2 = vcmp.eq.f32.partialorder %v359_v6, 8.507059e+37 }
 0x313   :  { %v314_v56 = vadd.f32 %v1350_v50, %v313_v55 }
 0x315   :  { %v318_v60 = vsel %vm317_vm12, %v1350_v50, %v314_v56 }
 0x316   :  { %v1354_v59 = vpop.eup %1353  ;;  %v323_v0 = vsel %vm320_vm13, %v322_v61, %v318_v60 }
 0x317   :  { %v351_v62 = vmul.f32 %v1354_v59, %v349_v54  ;;  %vm356_vm14 = vweird.f32 %v1354_v59  ;;  %v329_v29 = vmul.f32 %v327_v26, %v323_v0 }
 0x318   :  { %vm357_vm1 = vmor %vm355_vm15, %vm356_vm14 }
 0x319   :  { %v352_v2 = vsub.f32 1.0, %v351_v62 }
 0x31b   :  { %v353_v3 = vmul.f32 %v1354_v59, %v352_v2 }
 0x31d   :  { %v354_v4 = vadd.f32 %v1354_v59, %v353_v3 }
 0x31f   :  { %v358_v7 = vsel %vm357_vm1, %v1354_v59, %v354_v4 }
 0x320   :  { %v363_v11 = vsel %vm360_vm2, %v362_v10, %v358_v7 }
 0x321   :  { %v369_v18 = vmul.f32 %v367_v16, %v363_v11 }
 0x35c   :  { %v332_v63 = vpop.permute.xlu2 %331 }
 0x35d   :  { %v334_v1 = vmul.f32 %v332_v63, %v323_v0 }
 0x35f   :  { %336 = vrot.lane.b32.xlu1 %v334_v1, %s1483_s28 }
 0x36e   :  { %v372_v13 = vpop.permute.xlu0 %371 }
 0x36f   :  { %v374_v14 = vmul.f32 %v372_v13, %v363_v11 }
 0x371   :  { %376 = vrot.lane.b32.xlu2 %v374_v14, %s1483_s28 }
 0x3cb   :  { %v377_v19 = vpop.permute.xlu2 %376 }
 0x3cc   :  { %v1701_v20 = vadd.f32 %v377_v19, %v369_v18 }
 0x3ce   :  { %1355 = vtanh.f32 %v1701_v20 }
 0x3d1   :  { %v337_v30 = vpop.permute.xlu1 %336 }
 0x3d2   :  { %v1705_v31 = vadd.f32 %v337_v30, %v329_v29  ;;  %v511_v29 = vrot.slane %v1701_v20, 2 }
 0x3d4   :  { %v1356_v32 = vpop.eup %1355  ;;  %1357 = vtanh.f32 %v1705_v31 }
 0x3d5   :  { %382 = vrot.lane.b32.xlu1 %v1356_v32, %s1482_s4 }
 0x3da   :  { %v1358_v33 = vpop.eup %1357 }
 0x3db   :  { %342 = vrot.lane.b32.xlu0 %v1358_v33, %s1482_s4 }
 0x447   :  { %v383_v17 = vpop.permute.xlu1 %382 }
 0x448   :  { %v385_v34 = vmul.f32 %v383_v17, %v363_v11  ;;  %v471_v17 = vrot.slane %v1705_v31, 6 }
 0x44a   :  { %v421_v35 = vrot.slane %v385_v34, 4 }
 0x44c   :  { %422 = vrot.lane.b32.xlu0 %v421_v35, %s1483_s28 }
 0x44d   :  { %v343_v21 = vpop.permute.xlu0 %342 }
 0x44e   :  { %v345_v36 = vmul.f32 %v343_v21, %v323_v0 }
 0x450   :  { %v391_v37 = vrot.slane %v345_v36, 2 }
 0x452   :  { %392 = vrot.lane.b32.xlu2 %v391_v37, %s1483_s28 }
 0x4ac   :  { %v393_v38 = vpop.permute.xlu2 %392 }
 0x4ad   :  { %1297 = vmatmul.msk.f32.vlgmr.msrb.gmra.mxu2 %vm116_vm9, %v393_v38 }
 0x4ae   :  { %964 = vmatpush.msrb.mxu2 %v1552_v8 }
 0x4b0   :  { %965 = vmatpush.msrb.mxu2 %v1557_v9 }
 0x4b2   :  { %966 = vmatpush.msrb.mxu2 %v1570_v12 }
 0x4b4   :  { %967 = vmatpush.msrb.mxu2 %v1583_v15 }
 0x4be   :  { %v423_v39 = vpop.permute.xlu0 %422 }
 0x4bf   :  { %1298 = vmatmul.msk.f32.vlgmr.msrb.gmra.mxu3 %vm116_vm9, %v423_v39 }
 0x4c0   :  { %994 = vmatpush.msrb.mxu3 %v1607_v22 }
 0x4c2   :  { %995 = vmatpush.msrb.mxu3 %v1615_v23 }
 0x4c4   :  { %996 = vmatpush.msrb.mxu3 %v1622_v24 }
 0x4c6   :  { %997 = vmatpush.msrb.mxu3 %v1631_v25 }
 0x530   :  { %v413_v40 = vpop.f32.mrf.mxu2 }
 0x531   :  { %v417_v41 = vrot.slane %v413_v40, 4 }
 0x533   :  { %v419_v43 = vadd.f32 %v417_v41, %v386_v42  ;;  %v78_v42 = vpop.f32.mrf.mxu0 }
 0x535   :  { %1359 = vtanh.f32 %v419_v43  ;;  %v1299_v51 = vmul.f32 -1.442695, %v419_v43  ;;  %v79_v43 = vadd.f32 %v78_v42, %v47_v28 }
 0x537   :  { %106 = vst [vmem:[#allocation2 + $0x18] sm:$0xff] %v79_v43 }
 0x53b   :  { %v1360_v44 = vpop.eup %1359 }
 0x53c   :  { %475 = vrot.lane.b32.xlu1 %v1360_v44, %s1482_s4 }
 0x53e   :  { %v532_v42 = vld [vmem:[#allocation2 + $0x18] sm:$0x3] }
 0x542   :  { %v443_v45 = vpop.f32.mrf.mxu3 }
 0x543   :  { %v447_v46 = vrot.slane %v443_v45, 6 }
 0x545   :  { %v449_v48 = vadd.f32 %v447_v46, %v389_v47  ;;  %v530_v47 = vld [vmem:[#allocation2 + $0x10] sm:$0xc0] }
 0x547   :  { %1361 = vtanh.f32 %v449_v48  ;;  %v1300_v50 = vmul.f32 -1.442695, %v449_v48 }
 0x549   :  { %1363 = vpow2.f32 %v1300_v50 }
 0x54a   :  { %1365 = vpow2.f32 %v1299_v51 }
 0x54d   :  { %v1362_v49 = vpop.eup %1361 }
 0x54e   :  { %515 = vrot.lane.b32.xlu2 %v1362_v49, %s1482_s4 }
 0x54f   :  { %v1364_v52 = vpop.eup %1363 }
 0x550   :  { %v493_v53 = vadd.f32 1.0, %v1364_v52  ;;  %v1366_v54 = vpop.eup %1365 }
 0x551   :  { %v453_v55 = vadd.f32 1.0, %v1366_v54 }
 0x552   :  { %1367 = vrcp.f32 %v493_v53  ;;  %v505_v0 = vand.u32 2147483648, %v493_v53  ;;  %vm499_vm4 = vweird.f32 %v493_v53  ;;  %v503_v1 = vand.u32 2147483647, %v493_v53 }
 0x553   :  { %1369 = vrcp.f32 %v453_v55  ;;  %v465_v10 = vand.u32 2147483648, %v453_v55  ;;  %vm459_vm8 = vweird.f32 %v453_v55  ;;  %v463_v13 = vand.u32 2147483647, %v453_v55 }
 0x554   :  { %v506_v4 = vor.u32 1.1754944e-38, %v505_v0  ;;  %vm504_vm6 = vcmp.eq.f32.partialorder %v503_v1, 8.507059e+37 }
 0x555   :  { %v466_v16 = vor.u32 1.1754944e-38, %v465_v10  ;;  %vm464_vm11 = vcmp.eq.f32.partialorder %v463_v13, 8.507059e+37 }
 0x558   :  { %v1368_v56 = vpop.eup %1367 }
 0x559   :  { %v495_v57 = vmul.f32 %v1368_v56, %v493_v53  ;;  %v1370_v58 = vpop.eup %1369  ;;  %vm500_vm3 = vweird.f32 %v1368_v56 }
 0x55a   :  { %v455_v60 = vmul.f32 %v1370_v58, %v453_v55  ;;  %vm501_vm5 = vmor %vm499_vm4, %vm500_vm3  ;;  %vm460_vm7 = vweird.f32 %v1370_v58 }
 0x55b   :  { %v496_v59 = vsub.f32 1.0, %v495_v57  ;;  %vm461_vm10 = vmor %vm459_vm8, %vm460_vm7 }
 0x55c   :  { %v456_v62 = vsub.f32 1.0, %v455_v60 }
 0x55d   :  { %v497_v61 = vmul.f32 %v1368_v56, %v496_v59 }
 0x55e   :  { %v457_v2 = vmul.f32 %v1370_v58, %v456_v62 }
 0x55f   :  { %v498_v63 = vadd.f32 %v1368_v56, %v497_v61 }
 0x560   :  { %v458_v5 = vadd.f32 %v1370_v58, %v457_v2 }
 0x561   :  { %v502_v3 = vsel %vm501_vm5, %v1368_v56, %v498_v63 }
 0x562   :  { %v507_v7 = vsel %vm504_vm6, %v506_v4, %v502_v3  ;;  %v462_v14 = vsel %vm461_vm10, %v1370_v58, %v458_v5 }
 0x563   :  { %v467_v19 = vsel %vm464_vm11, %v466_v16, %v462_v14  ;;  %v513_v30 = vmul.f32 %v511_v29, %v507_v7 }
 0x564   :  { %v473_v34 = vmul.f32 %v471_v17, %v467_v19 }
 0x5a8   :  { %v516_v6 = vpop.permute.xlu2 %515 }
 0x5a9   :  { %v518_v11 = vmul.f32 %v516_v6, %v507_v7 }
 0x5ab   :  { %520 = vrot.lane.b32.xlu1 %v518_v11, %s1483_s28 }
 0x5ae   :  { %v476_v18 = vpop.permute.xlu1 %475 }
 0x5af   :  { %v478_v26 = vmul.f32 %v476_v18, %v467_v19 }
 0x5b1   :  { %480 = vrot.lane.b32.xlu0 %v478_v26, %s1483_s28 }
 0x61d   :  { %v521_v32 = vpop.permute.xlu1 %520 }
 0x61e   :  { %v1727_v33 = vadd.f32 %v521_v32, %v513_v30 }
 0x620   :  { %1371 = vtanh.f32 %v1727_v33  ;;  %v652_v14 = vrot.slane %v1727_v33, 2 }
 0x623   :  { %v481_v35 = vpop.permute.xlu0 %480 }
 0x624   :  { %v1731_v21 = vadd.f32 %v481_v35, %v473_v34 }
 0x626   :  { %v1372_v36 = vpop.eup %1371  ;;  %1373 = vtanh.f32 %v1731_v21  ;;  %v612_v29 = vrot.slane %v1731_v21, 6 }
 0x627   :  { %526 = vrot.lane.b32.xlu0 %v1372_v36, %s1482_s4 }
 0x62c   :  { %v1374_v37 = vpop.eup %1373 }
 0x62d   :  { %486 = vrot.lane.b32.xlu2 %v1374_v37, %s1482_s4 }
 0x687   :  { %v487_v20 = vpop.permute.xlu2 %486 }
 0x688   :  { %v489_v38 = vmul.f32 %v487_v20, %v467_v19 }
 0x68a   :  { %v535_v39 = vrot.slane %v489_v38, 4 }
 0x68c   :  { %536 = vrot.lane.b32.xlu1 %v535_v39, %s1483_s28 }
 0x699   :  { %v527_v31 = vpop.permute.xlu0 %526 }
 0x69a   :  { %v529_v40 = vmul.f32 %v527_v31, %v507_v7 }
 0x69c   :  { %v565_v41 = vrot.slane %v529_v40, 2  ;;  %v531_v40 = vld [vmem:[#allocation2] sm:$0xc0] }
 0x69e   :  { %566 = vrot.lane.b32.xlu2 %v565_v41, %s1483_s28 }
 0x6f8   :  { %v567_v44 = vpop.permute.xlu2 %566 }
 0x6f9   :  { %1302 = vmatmul.msk.f32.vlgmr.msrb.gmra.mxu1 %vm116_vm9, %v567_v44 }
 0x6fa   :  { %1134 = vmatpush.msrb.mxu1 %v1607_v22 }
 0x6fc   :  { %1135 = vmatpush.msrb.mxu1 %v1615_v23 }
 0x6fe   :  { %v537_v45 = vpop.permute.xlu1 %536  ;;  %1136 = vmatpush.msrb.mxu1 %v1622_v24 }
 0x6ff   :  { %1301 = vmatmul.msk.f32.vlgmr.msrb.gmra.mxu0 %vm116_vm9, %v537_v45 }
 0x700   :  { %1137 = vmatpush.msrb.mxu1 %v1631_v25  ;;  %1104 = vmatpush.msrb.mxu0 %v1552_v8 }
 0x702   :  { %1105 = vmatpush.msrb.mxu0 %v1557_v9 }
 0x704   :  { %1106 = vmatpush.msrb.mxu0 %v1570_v12 }
 0x706   :  { %1107 = vmatpush.msrb.mxu0 %v1583_v15 }
 0x776   :  { %v587_v28 = vpop.f32.mrf.mxu1 }
 0x777   :  { %v590_v22 = vadd.f32 %v587_v28, %v533_v27 }
 0x779   :  { %1375 = vtanh.f32 %v590_v22  ;;  %v1304_v8 = vmul.f32 -1.442695, %v590_v22 }
 0x77c   :  { %v557_v23 = vpop.f32.mrf.mxu0 }
 0x77d   :  { %v561_v46 = vrot.slane %v557_v23, 2 }
 0x77f   :  { %v1376_v24 = vpop.eup %1375  ;;  %v563_v48 = vadd.f32 %v561_v46, %v530_v47 }
 0x780   :  { %656 = vrot.lane.b32.xlu0 %v1376_v24, %s1482_s4 }
 0x781   :  { %1377 = vtanh.f32 %v563_v48  ;;  %v1303_v9 = vmul.f32 -1.442695, %v563_v48 }
 0x782   :  { %1379 = vpow2.f32 %v1304_v8 }
 0x783   :  { %1381 = vpow2.f32 %v1303_v9 }
 0x787   :  { %v1378_v25 = vpop.eup %1377 }
 0x788   :  { %616 = vrot.lane.b32.xlu1 %v1378_v25, %s1482_s4  ;;  %v1380_v12 = vpop.eup %1379 }
 0x789   :  { %v634_v15 = vadd.f32 1.0, %v1380_v12  ;;  %v1382_v49 = vpop.eup %1381 }
 0x78a   :  { %v594_v50 = vadd.f32 1.0, %v1382_v49 }
 0x78b   :  { %1383 = vrcp.f32 %v634_v15  ;;  %v646_v59 = vand.u32 2147483648, %v634_v15  ;;  %vm640_vm13 = vweird.f32 %v634_v15  ;;  %v644_v60 = vand.u32 2147483647, %v634_v15 }
 0x78c   :  { %1385 = vrcp.f32 %v594_v50  ;;  %v606_v4 = vand.u32 2147483648, %v594_v50  ;;  %vm600_vm2 = vweird.f32 %v594_v50  ;;  %v604_v5 = vand.u32 2147483647, %v594_v50 }
 0x78d   :  { %v647_v63 = vor.u32 1.1754944e-38, %v646_v59  ;;  %vm645_vm15 = vcmp.eq.f32.partialorder %v644_v60, 8.507059e+37 }
 0x78e   :  { %v607_v7 = vor.u32 1.1754944e-38, %v606_v4  ;;  %vm605_vm4 = vcmp.eq.f32.partialorder %v604_v5, 8.507059e+37 }
 0x791   :  { %v1384_v51 = vpop.eup %1383 }
 0x792   :  { %v636_v52 = vmul.f32 %v1384_v51, %v634_v15  ;;  %v1386_v54 = vpop.eup %1385  ;;  %vm641_vm12 = vweird.f32 %v1384_v51 }
 0x793   :  { %v596_v56 = vmul.f32 %v1386_v54, %v594_v50  ;;  %vm642_vm14 = vmor %vm640_vm13, %vm641_vm12  ;;  %vm601_vm1 = vweird.f32 %v1386_v54 }
 0x794   :  { %v637_v53 = vsub.f32 1.0, %v636_v52  ;;  %vm602_vm3 = vmor %vm600_vm2, %vm601_vm1 }
 0x795   :  { %v597_v58 = vsub.f32 1.0, %v596_v56 }
 0x796   :  { %v638_v55 = vmul.f32 %v1384_v51, %v637_v53 }
 0x797   :  { %v598_v62 = vmul.f32 %v1386_v54, %v597_v58 }
 0x798   :  { %v639_v57 = vadd.f32 %v1384_v51, %v638_v55 }
 0x799   :  { %v599_v3 = vadd.f32 %v1386_v54, %v598_v62 }
 0x79a   :  { %v643_v61 = vsel %vm642_vm14, %v1384_v51, %v639_v57 }
 0x79b   :  { %v648_v1 = vsel %vm645_vm15, %v647_v63, %v643_v61  ;;  %v603_v6 = vsel %vm602_vm3, %v1386_v54, %v599_v3 }
 0x79c   :  { %v608_v11 = vsel %vm605_vm4, %v607_v7, %v603_v6  ;;  %v654_v16 = vmul.f32 %v652_v14, %v648_v1 }
 0x79d   :  { %v614_v30 = vmul.f32 %v612_v29, %v608_v11 }
 0x7f2   :  { %v657_v0 = vpop.permute.xlu0 %656 }
 0x7f3   :  { %v659_v2 = vmul.f32 %v657_v0, %v648_v1 }
 0x7f5   :  { %661 = vrot.lane.b32.xlu2 %v659_v2, %s1483_s28 }
 0x7fa   :  { %v617_v10 = vpop.permute.xlu1 %616 }
 0x7fb   :  { %v619_v13 = vmul.f32 %v617_v10, %v608_v11 }
 0x7fd   :  { %621 = vrot.lane.b32.xlu0 %v619_v13, %s1483_s28 }
 0x84f   :  { %v662_v18 = vpop.permute.xlu2 %661 }
 0x850   :  { %v1755_v19 = vadd.f32 %v662_v18, %v654_v16 }
 0x852   :  { %1387 = vtanh.f32 %v1755_v19  ;;  %v788_v3 = vrot.slane %v1755_v19, 2 }
 0x858   :  { %v1388_v26 = vpop.eup %1387 }
 0x859   :  { %667 = vrot.lane.b32.xlu1 %v1388_v26, %s1482_s4 }
 0x86f   :  { %v622_v32 = vpop.permute.xlu0 %621 }
 0x870   :  { %v1760_v17 = vadd.f32 %v622_v32, %v614_v30 }
 0x872   :  { %1389 = vtanh.f32 %v1760_v17  ;;  %v748_v7 = vrot.slane %v1760_v17, 6 }
 0x878   :  { %v1390_v34 = vpop.eup %1389 }
 0x879   :  { %627 = vrot.lane.b32.xlu2 %v1390_v34, %s1482_s4 }
 0x8cb   :  { %v668_v33 = vpop.permute.xlu1 %667 }
 0x8cc   :  { %v670_v35 = vmul.f32 %v668_v33, %v648_v1 }
 0x8ce   :  { %699 = vrot.lane.b32.xlu0 %v670_v35, %s1483_s28  ;;  %v388_v35 = vld [vmem:[#allocation2 + $0x18] sm:$0xc] }
 0x8d3   :  { %v628_v36 = vpop.permute.xlu2 %627 }
 0x8d4   :  { %v630_v37 = vmul.f32 %v628_v36, %v608_v11 }
 0x8d6   :  { %v672_v20 = vrot.slane %v630_v37, 6 }
 0x8d8   :  { %673 = vrot.lane.b32.xlu1 %v672_v20, %s1483_s28 }
 0x940   :  { %v700_v38 = vpop.permute.xlu0 %699 }
 0x941   :  { %1306 = vmatmul.msk.f32.vlgmr.msra.gmra.mxu3 %vm116_vm9, %v700_v38 }
 0x94a   :  { %v674_v21 = vpop.permute.xlu1 %673 }
 0x94b   :  { %1305 = vmatmul.msk.f32.vlgmr.msra.gmra.mxu2 %vm116_vm9, %v674_v21  ;;  %v387_v21 = vld [vmem:[#allocation2] sm:$0x30] }
 0x9c4   :  { %v720_v39 = vpop.f32.mrf.mxu3 }
 0x9c5   :  { %v724_v31 = vrot.slane %v720_v39, 2 }
 0x9c7   :  { %v726_v41 = vadd.f32 %v724_v31, %v531_v40 }
 0x9c9   :  { %1391 = vtanh.f32 %v726_v41  ;;  %v1308_v28 = vmul.f32 -1.442695, %v726_v41 }
 0x9ce   :  { %v694_v43 = vpop.f32.mrf.mxu2 }
 0x9cf   :  { %v1392_v44 = vpop.eup %1391  ;;  %v697_v45 = vadd.f32 %v694_v43, %v532_v42 }
 0x9d0   :  { %792 = vrot.lane.b32.xlu2 %v1392_v44, %s1482_s4 }
 0x9d1   :  { %1393 = vtanh.f32 %v697_v45  ;;  %v1307_v48 = vmul.f32 -1.442695, %v697_v45 }
 0x9d2   :  { %1395 = vpow2.f32 %v1308_v28 }
 0x9d7   :  { %v1394_v27 = vpop.eup %1393 }
 0x9d8   :  { %752 = vrot.lane.b32.xlu0 %v1394_v27, %s1482_s4  ;;  %v1396_v22 = vpop.eup %1395 }
 0x9d9   :  { %v770_v23 = vadd.f32 1.0, %v1396_v22 }
 0x9db   :  { %1397 = vrcp.f32 %v770_v23  ;;  %v782_v9 = vand.u32 2147483648, %v770_v23  ;;  %vm776_vm6 = vweird.f32 %v770_v23  ;;  %v780_v12 = vand.u32 2147483647, %v770_v23 }
 0x9dc   :  { %1399 = vpow2.f32 %v1307_v48 }
 0x9dd   :  { %v783_v50 = vor.u32 1.1754944e-38, %v782_v9  ;;  %vm781_vm8 = vcmp.eq.f32.partialorder %v780_v12, 8.507059e+37 }
 0x9e1   :  { %v1398_v46 = vpop.eup %1397 }
 0x9e2   :  { %v772_v47 = vmul.f32 %v1398_v46, %v770_v23  ;;  %vm777_vm5 = vweird.f32 %v1398_v46  ;;  %v1400_v15 = vpop.eup %1399 }
 0x9e3   :  { %vm778_vm7 = vmor %vm776_vm6, %vm777_vm5  ;;  %v730_v51 = vadd.f32 1.0, %v1400_v15 }
 0x9e4   :  { %v773_v24 = vsub.f32 1.0, %v772_v47 }
 0x9e5   :  { %1401 = vrcp.f32 %v730_v51  ;;  %v742_v60 = vand.u32 2147483648, %v730_v51  ;;  %vm736_vm11 = vweird.f32 %v730_v51  ;;  %v740_v61 = vand.u32 2147483647, %v730_v51 }
 0x9e6   :  { %v774_v25 = vmul.f32 %v1398_v46, %v773_v24 }
 0x9e7   :  { %v743_v63 = vor.u32 1.1754944e-38, %v742_v60  ;;  %vm741_vm13 = vcmp.eq.f32.partialorder %v740_v61, 8.507059e+37 }
 0x9e8   :  { %v775_v8 = vadd.f32 %v1398_v46, %v774_v25 }
 0x9ea   :  { %v779_v49 = vsel %vm778_vm7, %v1398_v46, %v775_v8 }
 0x9eb   :  { %v784_v53 = vsel %vm781_vm8, %v783_v50, %v779_v49  ;;  %v1402_v55 = vpop.eup %1401 }
 0x9ec   :  { %v732_v56 = vmul.f32 %v1402_v55, %v730_v51  ;;  %vm737_vm10 = vweird.f32 %v1402_v55  ;;  %v790_v4 = vmul.f32 %v788_v3, %v784_v53 }
 0x9ed   :  { %vm738_vm12 = vmor %vm736_vm11, %vm737_vm10 }
 0x9ee   :  { %v733_v57 = vsub.f32 1.0, %v732_v56 }
 0x9f0   :  { %v734_v58 = vmul.f32 %v1402_v55, %v733_v57 }
 0x9f2   :  { %v735_v59 = vadd.f32 %v1402_v55, %v734_v58 }
 0x9f4   :  { %v739_v62 = vsel %vm738_vm12, %v1402_v55, %v735_v59 }
 0x9f5   :  { %v744_v1 = vsel %vm741_vm13, %v743_v63, %v739_v62 }
 0x9f6   :  { %v750_v10 = vmul.f32 %v748_v7, %v744_v1 }
 0xa2a   :  { %v793_v52 = vpop.permute.xlu2 %792 }
 0xa2b   :  { %v795_v54 = vmul.f32 %v793_v52, %v784_v53 }
 0xa2d   :  { %797 = vrot.lane.b32.xlu1 %v795_v54, %s1483_s28 }
 0xa4a   :  { %v753_v0 = vpop.permute.xlu0 %752 }
 0xa4b   :  { %v755_v2 = vmul.f32 %v753_v0, %v744_v1 }
 0xa4d   :  { %757 = vrot.lane.b32.xlu2 %v755_v2, %s1483_s28 }
 0xa9f   :  { %v798_v5 = vpop.permute.xlu1 %797 }
 0xaa0   :  { %v1773_v6 = vadd.f32 %v798_v5, %v790_v4 }
 0xaa2   :  { %1403 = vtanh.f32 %v1773_v6  ;;  %v927_v60 = vrot.slane %v1773_v6, 2 }
 0xaa7   :  { %v758_v11 = vpop.permute.xlu2 %757 }
 0xaa8   :  { %v1404_v13 = vpop.eup %1403  ;;  %v1777_v14 = vadd.f32 %v758_v11, %v750_v10 }
 0xaa9   :  { %803 = vrot.lane.b32.xlu0 %v1404_v13, %s1482_s4 }
 0xaaa   :  { %1405 = vtanh.f32 %v1777_v14  ;;  %v887_v0 = vrot.slane %v1777_v14, 6 }
 0xab0   :  { %v1406_v16 = vpop.eup %1405 }
 0xab1   :  { %763 = vrot.lane.b32.xlu1 %v1406_v16, %s1482_s4 }
 0xb1b   :  { %v804_v18 = vpop.permute.xlu0 %803 }
 0xb1c   :  { %v806_v19 = vmul.f32 %v804_v18, %v784_v53 }
 0xb1e   :  { %v837_v26 = vrot.slane %v806_v19, 6 }
 0xb20   :  { %838 = vrot.lane.b32.xlu0 %v837_v26, %s1483_s28 }
 0xb23   :  { %v764_v29 = vpop.permute.xlu1 %763 }
 0xb24   :  { %v766_v30 = vmul.f32 %v764_v29, %v744_v1  ;;  %v244_v29 = vld [vmem:[#allocation2] sm:$0xc] }
 0xb26   :  { %808 = vrot.lane.b32.xlu2 %v766_v30, %s1483_s28 }
 0xb80   :  { %v809_v32 = vpop.permute.xlu2 %808 }
 0xb81   :  { %1309 = vmatmul.msk.f32.vlgmr.msra.gmra.mxu0 %vm116_vm9, %v809_v32 }
 0xb92   :  { %v839_v17 = vpop.permute.xlu0 %838 }
 0xb93   :  { %1310 = vmatmul.msk.f32.vlgmr.msra.gmra.mxu1 %vm116_vm9, %v839_v17 }
 0xbfe   :  { %v829_v34 = vpop.f32.mrf.mxu0 }
 0xbff   :  { %v833_v33 = vrot.slane %v829_v34, 6  ;;  %v245_v34 = vld [vmem:[#allocation2 + $0x18] sm:$0x30] }
 0xc01   :  { %v835_v36 = vadd.f32 %v833_v33, %v388_v35 }
 0xc03   :  { %1407 = vtanh.f32 %v835_v36  ;;  %v1311_v41 = vmul.f32 -1.442695, %v835_v36 }
 0xc09   :  { %v1408_v37 = vpop.eup %1407 }
 0xc0a   :  { %891 = vrot.lane.b32.xlu1 %v1408_v37, %s1482_s4 }
 0xc10   :  { %v859_v20 = vpop.f32.mrf.mxu1 }
 0xc11   :  { %v863_v38 = vrot.slane %v859_v20, 4 }
 0xc13   :  { %v865_v39 = vadd.f32 %v863_v38, %v387_v21 }
 0xc15   :  { %1409 = vtanh.f32 %v865_v39  ;;  %v1312_v40 = vmul.f32 -1.442695, %v865_v39 }
 0xc17   :  { %1411 = vpow2.f32 %v1312_v40 }
 0xc18   :  { %1413 = vpow2.f32 %v1311_v41 }
 0xc1b   :  { %v1410_v31 = vpop.eup %1409 }
 0xc1c   :  { %931 = vrot.lane.b32.xlu2 %v1410_v31, %s1482_s4 }
 0xc1d   :  { %v1412_v42 = vpop.eup %1411 }
 0xc1e   :  { %v909_v43 = vadd.f32 1.0, %v1412_v42  ;;  %v1414_v44 = vpop.eup %1413 }
 0xc1f   :  { %v869_v45 = vadd.f32 1.0, %v1414_v44 }
 0xc20   :  { %1415 = vrcp.f32 %v909_v43  ;;  %v921_v25 = vand.u32 2147483648, %v909_v43  ;;  %vm915_vm15 = vweird.f32 %v909_v43  ;;  %v919_v8 = vand.u32 2147483647, %v909_v43 }
 0xc21   :  { %1417 = vrcp.f32 %v869_v45  ;;  %v881_v52 = vand.u32 2147483648, %v869_v45  ;;  %vm875_vm4 = vweird.f32 %v869_v45  ;;  %v879_v54 = vand.u32 2147483647, %v869_v45 }
 0xc22   :  { %v922_v15 = vor.u32 1.1754944e-38, %v921_v25  ;;  %vm920_vm2 = vcmp.eq.f32.partialorder %v919_v8, 8.507059e+37 }
 0xc23   :  { %v882_v56 = vor.u32 1.1754944e-38, %v881_v52  ;;  %vm880_vm6 = vcmp.eq.f32.partialorder %v879_v54, 8.507059e+37 }
 0xc26   :  { %v1416_v27 = vpop.eup %1415 }
 0xc27   :  { %v911_v28 = vmul.f32 %v1416_v27, %v909_v43  ;;  %v1418_v22 = vpop.eup %1417  ;;  %vm916_vm14 = vweird.f32 %v1416_v27 }
 0xc28   :  { %v871_v46 = vmul.f32 %v1418_v22, %v869_v45  ;;  %vm917_vm1 = vmor %vm915_vm15, %vm916_vm14  ;;  %vm876_vm3 = vweird.f32 %v1418_v22 }
 0xc29   :  { %v912_v23 = vsub.f32 1.0, %v911_v28  ;;  %vm877_vm5 = vmor %vm875_vm4, %vm876_vm3 }
 0xc2a   :  { %v872_v24 = vsub.f32 1.0, %v871_v46 }
 0xc2b   :  { %v913_v47 = vmul.f32 %v1416_v27, %v912_v23 }
 0xc2c   :  { %v873_v9 = vmul.f32 %v1418_v22, %v872_v24 }
 0xc2d   :  { %v914_v48 = vadd.f32 %v1416_v27, %v913_v47 }
 0xc2e   :  { %v874_v49 = vadd.f32 %v1418_v22, %v873_v9 }
 0xc2f   :  { %v918_v12 = vsel %vm917_vm1, %v1416_v27, %v914_v48 }
 0xc30   :  { %v923_v50 = vsel %vm920_vm2, %v922_v15, %v918_v12  ;;  %v878_v55 = vsel %vm877_vm5, %v1418_v22, %v874_v49 }
 0xc31   :  { %v883_v58 = vsel %vm880_vm6, %v882_v56, %v878_v55  ;;  %v929_v61 = vmul.f32 %v927_v60, %v923_v50 }
 0xc32   :  { %v889_v1 = vmul.f32 %v887_v0, %v883_v58 }
 0xc76   :  { %v932_v51 = vpop.permute.xlu2 %931 }
 0xc77   :  { %v934_v53 = vmul.f32 %v932_v51, %v923_v50 }
 0xc79   :  { %936 = vrot.lane.b32.xlu1 %v934_v53, %s1483_s28 }
 0xc7c   :  { %v892_v57 = vpop.permute.xlu1 %891 }
 0xc7d   :  { %v894_v59 = vmul.f32 %v892_v57, %v883_v58 }
 0xc7f   :  { %896 = vrot.lane.b32.xlu0 %v894_v59, %s1483_s28 }
 0xceb   :  { %v937_v62 = vpop.permute.xlu1 %936 }
 0xcec   :  { %v1791_v63 = vadd.f32 %v937_v62, %v929_v61 }
 0xcee   :  { %1419 = vtanh.f32 %v1791_v63  ;;  %v1067_v59 = vrot.slane %v1791_v63, 2 }
 0xcf1   :  { %v897_v2 = vpop.permute.xlu0 %896 }
 0xcf2   :  { %v1795_v3 = vadd.f32 %v897_v2, %v889_v1 }
 0xcf4   :  { %v1420_v4 = vpop.eup %1419  ;;  %1421 = vtanh.f32 %v1795_v3  ;;  %v1027_v54 = vrot.slane %v1795_v3, 6 }
 0xcf5   :  { %942 = vrot.lane.b32.xlu0 %v1420_v4, %s1482_s4 }
 0xcfa   :  { %v1422_v5 = vpop.eup %1421 }
 0xcfb   :  { %902 = vrot.lane.b32.xlu2 %v1422_v5, %s1482_s4 }
 0xd55   :  { %v903_v6 = vpop.permute.xlu2 %902 }
 0xd56   :  { %v905_v7 = vmul.f32 %v903_v6, %v883_v58 }
 0xd58   :  { %v947_v10 = vrot.slane %v905_v7, 2 }
 0xd5a   :  { %948 = vrot.lane.b32.xlu1 %v947_v10, %s1483_s28  ;;  %v109_v10 = vld [vmem:[#allocation2] sm:$0x3] }
 0xd67   :  { %v943_v11 = vpop.permute.xlu0 %942 }
 0xd68   :  { %v945_v13 = vmul.f32 %v943_v11, %v923_v50 }
 0xd6a   :  { %v977_v14 = vrot.slane %v945_v13, 4 }
 0xd6c   :  { %978 = vrot.lane.b32.xlu2 %v977_v14, %s1483_s28 }
 0xdc6   :  { %v979_v16 = vpop.permute.xlu2 %978 }
 0xdc7   :  { %1314 = vmatmul.msk.f32.vlgmr.msrb.gmra.mxu3 %vm116_vm9, %v979_v16 }
 0xdcc   :  { %v949_v18 = vpop.permute.xlu1 %948 }
 0xdcd   :  { %1313 = vmatmul.msk.f32.vlgmr.msrb.gmra.mxu2 %vm116_vm9, %v949_v18  ;;  %v110_v18 = vld [vmem:[#allocation2 + $0x18] sm:$0xc0] }
 0xe4a   :  { %v999_v19 = vpop.f32.mrf.mxu3 }
 0xe4b   :  { %v1003_v26 = vrot.slane %v999_v19, 6 }
 0xe4d   :  { %v1005_v30 = vadd.f32 %v1003_v26, %v244_v29 }
 0xe4f   :  { %1423 = vtanh.f32 %v1005_v30  ;;  %v1316_v37 = vmul.f32 -1.442695, %v1005_v30 }
 0xe50   :  { %v969_v32 = vpop.f32.mrf.mxu2 }
 0xe51   :  { %v973_v17 = vrot.slane %v969_v32, 4 }
 0xe53   :  { %v975_v33 = vadd.f32 %v973_v17, %v245_v34 }
 0xe55   :  { %v1424_v35 = vpop.eup %1423  ;;  %1425 = vtanh.f32 %v975_v33  ;;  %v1315_v20 = vmul.f32 -1.442695, %v975_v33 }
 0xe56   :  { %1071 = vrot.lane.b32.xlu1 %v1424_v35, %s1482_s4  ;;  %1427 = vpow2.f32 %v1316_v37 }
 0xe57   :  { %1429 = vpow2.f32 %v1315_v20 }
 0xe5b   :  { %v1426_v36 = vpop.eup %1425 }
 0xe5c   :  { %1031 = vrot.lane.b32.xlu0 %v1426_v36, %s1482_s4  ;;  %v1428_v38 = vpop.eup %1427 }
 0xe5d   :  { %v1049_v21 = vadd.f32 1.0, %v1428_v38  ;;  %v1430_v39 = vpop.eup %1429 }
 0xe5e   :  { %v1009_v31 = vadd.f32 1.0, %v1430_v39 }
 0xe5f   :  { %1431 = vrcp.f32 %v1049_v21  ;;  %v1061_v22 = vand.u32 2147483648, %v1049_v21  ;;  %vm1055_vm8 = vweird.f32 %v1049_v21  ;;  %v1059_v23 = vand.u32 2147483647, %v1049_v21 }
 0xe60   :  { %1433 = vrcp.f32 %v1009_v31  ;;  %v1021_v9 = vand.u32 2147483648, %v1009_v31  ;;  %vm1015_vm13 = vweird.f32 %v1009_v31  ;;  %v1019_v15 = vand.u32 2147483647, %v1009_v31 }
 0xe61   :  { %v1062_v24 = vor.u32 1.1754944e-38, %v1061_v22  ;;  %vm1060_vm11 = vcmp.eq.f32.partialorder %v1059_v23, 8.507059e+37 }
 0xe62   :  { %v1022_v50 = vor.u32 1.1754944e-38, %v1021_v9  ;;  %vm1020_vm15 = vcmp.eq.f32.partialorder %v1019_v15, 8.507059e+37 }
 0xe65   :  { %v1432_v40 = vpop.eup %1431 }
 0xe66   :  { %v1051_v41 = vmul.f32 %v1432_v40, %v1049_v21  ;;  %v1434_v42 = vpop.eup %1433  ;;  %vm1056_vm7 = vweird.f32 %v1432_v40 }
 0xe67   :  { %v1011_v44 = vmul.f32 %v1434_v42, %v1009_v31  ;;  %vm1057_vm10 = vmor %vm1055_vm8, %vm1056_vm7  ;;  %vm1016_vm12 = vweird.f32 %v1434_v42 }
 0xe68   :  { %v1052_v43 = vsub.f32 1.0, %v1051_v41  ;;  %vm1017_vm14 = vmor %vm1015_vm13, %vm1016_vm12 }
 0xe69   :  { %v1012_v27 = vsub.f32 1.0, %v1011_v44 }
 0xe6a   :  { %v1053_v45 = vmul.f32 %v1432_v40, %v1052_v43 }
 0xe6b   :  { %v1013_v46 = vmul.f32 %v1434_v42, %v1012_v27 }
 0xe6c   :  { %v1054_v28 = vadd.f32 %v1432_v40, %v1053_v45 }
 0xe6d   :  { %v1014_v48 = vadd.f32 %v1434_v42, %v1013_v46 }
 0xe6e   :  { %v1058_v47 = vsel %vm1057_vm10, %v1432_v40, %v1054_v28  ;;  %vm1269_vm10 = vcmask 25600  }
 0xe6f   :  { %v1063_v8 = vsel %vm1060_vm11, %v1062_v24, %v1058_v47  ;;  %v1018_v49 = vsel %vm1017_vm14, %v1434_v42, %v1014_v48 }
 0xe70   :  { %v1023_v52 = vsel %vm1020_vm15, %v1022_v50, %v1018_v49  ;;  %v1069_v60 = vmul.f32 %v1067_v59, %v1063_v8 }
 0xe71   :  { %v1029_v55 = vmul.f32 %v1027_v54, %v1023_v52 }
 0xec8   :  { %v1072_v25 = vpop.permute.xlu1 %1071 }
 0xec9   :  { %v1074_v12 = vmul.f32 %v1072_v25, %v1063_v8 }
 0xecb   :  { %1076 = vrot.lane.b32.xlu0 %v1074_v12, %s1483_s28 }
 0xece   :  { %v1032_v51 = vpop.permute.xlu0 %1031 }
 0xecf   :  { %v1034_v53 = vmul.f32 %v1032_v51, %v1023_v52 }
 0xed1   :  { %1036 = vrot.lane.b32.xlu2 %v1034_v53, %s1483_s28 }
 0xf2b   :  { %v1037_v56 = vpop.permute.xlu2 %1036 }
 0xf2c   :  { %v1809_v57 = vadd.f32 %v1037_v56, %v1029_v55 }
 0xf2e   :  { %1435 = vtanh.f32 %v1809_v57  ;;  %v1164_v51 = vrot.slane %v1809_v57, 6  ;;  %v1240_v57 = vld [vmem:[%s1869_s5 + $0x38] sm:$0xff] }
 0xf2f   :  { %1257 = vmatpush.msra.mxu2 %v1240_v57 }
 0xf34   :  { %v1436_v58 = vpop.eup %1435 }
 0xf35   :  { %1042 = vrot.lane.b32.xlu1 %v1436_v58, %s1482_s4 }
 0xf3d   :  { %v1077_v61 = vpop.permute.xlu0 %1076 }
 0xf3e   :  { %v1814_v62 = vadd.f32 %v1077_v61, %v1069_v60 }
 0xf40   :  { %1437 = vtanh.f32 %v1814_v62  ;;  %v1204_v12 = vrot.slane %v1814_v62, 2 }
 0xf46   :  { %v1438_v0 = vpop.eup %1437 }
 0xf47   :  { %1082 = vrot.lane.b32.xlu2 %v1438_v0, %s1482_s4  ;;  %v1239_v0 = vld [vmem:[%s1869_s5 + $0x30] sm:$0xff] }
 0xf48   :  { %1258 = vmatpush.msra.mxu2 %v1239_v0 }
 0xfa1   :  { %v1083_v1 = vpop.permute.xlu2 %1082 }
 0xfa2   :  { %v1085_v2 = vmul.f32 %v1083_v1, %v1063_v8  ;;  %v1238_v1 = vld [vmem:[%s1869_s5 + $0x28] sm:$0xff] }
 0xfa3   :  { %1259 = vmatpush.msra.mxu2 %v1238_v1 }
 0xfa4   :  { %v1117_v3 = vrot.slane %v1085_v2, 2  ;;  %v1237_v2 = vld [vmem:[%s1869_s5 + $0x20] sm:$0xff] }
 0xfa5   :  { %1260 = vmatpush.msra.mxu2 %v1237_v2 }
 0xfa6   :  { %1118 = vrot.lane.b32.xlu1 %v1117_v3, %s1483_s28  ;;  %v1236_v3 = vld [vmem:[%s1869_s5 + $0x18] sm:$0xff] }
 0xfa7   :  { %v1043_v4 = vpop.permute.xlu1 %1042  ;;  %1261 = vmatpush.msra.mxu2 %v1236_v3 }
 0xfa8   :  { %v1045_v5 = vmul.f32 %v1043_v4, %v1023_v52  ;;  %v1235_v4 = vld [vmem:[%s1869_s5 + $0x10] sm:$0xff] }
 0xfa9   :  { %1262 = vmatpush.msra.mxu2 %v1235_v4 }
 0xfaa   :  { %v1087_v6 = vrot.slane %v1045_v5, 4  ;;  %v1234_v5 = vld [vmem:[%s1869_s5 + $0x8] sm:$0xff] }
 0xfab   :  { %1263 = vmatpush.msra.mxu2 %v1234_v5 }
 0xfac   :  { %1088 = vrot.lane.b32.xlu0 %v1087_v6, %s1483_s28  ;;  %v1233_v6 = vld [vmem:[%s1869_s5] sm:$0xff] }
 0xfad   :  { %1264 = vmatpush.msra.mxu2 %v1233_v6 }
0x1018   :  { %v1119_v63 = vpop.permute.xlu1 %1118 }
0x1019   :  { %1318 = vmatmul.msk.f32.vlgmr.msrb.gmra.mxu1 %vm116_vm9, %v1119_v63 }
0x101e   :  { %v1089_v7 = vpop.permute.xlu0 %1088 }
0x101f   :  { %1317 = vmatmul.msk.f32.vlgmr.msrb.gmra.mxu0 %vm116_vm9, %v1089_v7 }
0x1096   :  { %v1139_v11 = vpop.f32.mrf.mxu1 }
0x1097   :  { %v1142_v13 = vadd.f32 %v1139_v11, %v109_v10 }
0x1099   :  { %1439 = vtanh.f32 %v1142_v13  ;;  %v1320_v30 = vmul.f32 -1.442695, %v1142_v13  ;;  %v1326_v13 = vld [vmem:[%s1870_s6] ss:$0 sm:$0xff] }
0x109c   :  { %v1109_v14 = vpop.f32.mrf.mxu0 }
0x109d   :  { %v1113_v16 = vrot.slane %v1109_v14, 2 }
0x109f   :  { %v1440_v19 = vpop.eup %1439  ;;  %v1115_v26 = vadd.f32 %v1113_v16, %v110_v18 }
0x10a0   :  { %1208 = vrot.lane.b32.xlu2 %v1440_v19, %s1482_s4 }
0x10a1   :  { %1441 = vtanh.f32 %v1115_v26  ;;  %v1319_v36 = vmul.f32 -1.442695, %v1115_v26 }
0x10a2   :  { %1443 = vpow2.f32 %v1320_v30 }
0x10a7   :  { %v1442_v29 = vpop.eup %1441 }
0x10a8   :  { %1168 = vrot.lane.b32.xlu0 %v1442_v29, %s1482_s4  ;;  %v1444_v32 = vpop.eup %1443 }
0x10a9   :  { %v1186_v17 = vadd.f32 1.0, %v1444_v32 }
0x10ab   :  { %1445 = vrcp.f32 %v1186_v17  ;;  %v1198_v38 = vand.u32 2147483648, %v1186_v17  ;;  %vm1192_vm2 = vweird.f32 %v1186_v17  ;;  %v1196_v21 = vand.u32 2147483647, %v1186_v17 }
0x10ac   :  { %1447 = vpow2.f32 %v1319_v36 }
0x10ad   :  { %v1199_v40 = vor.u32 1.1754944e-38, %v1198_v38  ;;  %vm1197_vm4 = vcmp.eq.f32.partialorder %v1196_v21, 8.507059e+37 }
0x10b1   :  { %v1446_v34 = vpop.eup %1445 }
0x10b2   :  { %v1188_v33 = vmul.f32 %v1446_v34, %v1186_v17  ;;  %vm1193_vm1 = vweird.f32 %v1446_v34  ;;  %v1448_v39 = vpop.eup %1447 }
0x10b3   :  { %vm1194_vm3 = vmor %vm1192_vm2, %vm1193_vm1  ;;  %v1146_v41 = vadd.f32 1.0, %v1448_v39 }
0x10b4   :  { %v1189_v35 = vsub.f32 1.0, %v1188_v33 }
0x10b5   :  { %1449 = vrcp.f32 %v1146_v41  ;;  %v1158_v46 = vand.u32 2147483648, %v1146_v41  ;;  %vm1152_vm6 = vweird.f32 %v1146_v41  ;;  %v1156_v47 = vand.u32 2147483647, %v1146_v41 }
0x10b6   :  { %v1190_v37 = vmul.f32 %v1446_v34, %v1189_v35 }
0x10b7   :  { %v1159_v48 = vor.u32 1.1754944e-38, %v1158_v46  ;;  %vm1157_vm8 = vcmp.eq.f32.partialorder %v1156_v47, 8.507059e+37 }
0x10b8   :  { %v1191_v20 = vadd.f32 %v1446_v34, %v1190_v37 }
0x10ba   :  { %v1195_v31 = vsel %vm1194_vm3, %v1446_v34, %v1191_v20 }
0x10bb   :  { %v1200_v43 = vsel %vm1197_vm4, %v1199_v40, %v1195_v31  ;;  %v1450_v45 = vpop.eup %1449 }
0x10bc   :  { %v1148_v27 = vmul.f32 %v1450_v45, %v1146_v41  ;;  %vm1153_vm5 = vweird.f32 %v1450_v45  ;;  %v1206_v15 = vmul.f32 %v1204_v12, %v1200_v43 }
0x10bd   :  { %vm1154_vm7 = vmor %vm1152_vm6, %vm1153_vm5 }
0x10be   :  { %v1149_v28 = vsub.f32 1.0, %v1148_v27 }
0x10c0   :  { %v1150_v22 = vmul.f32 %v1450_v45, %v1149_v28 }
0x10c2   :  { %v1151_v23 = vadd.f32 %v1450_v45, %v1150_v22 }
0x10c4   :  { %v1155_v24 = vsel %vm1154_vm7, %v1450_v45, %v1151_v23 }
0x10c5   :  { %v1160_v8 = vsel %vm1157_vm8, %v1159_v48, %v1155_v24 }
0x10c6   :  { %v1166_v52 = vmul.f32 %v1164_v51, %v1160_v8 }
0x10fa   :  { %v1209_v42 = vpop.permute.xlu2 %1208 }
0x10fb   :  { %v1211_v44 = vmul.f32 %v1209_v42, %v1200_v43 }
0x10fd   :  { %1213 = vrot.lane.b32.xlu1 %v1211_v44, %s1483_s28 }
0x111a   :  { %v1169_v25 = vpop.permute.xlu0 %1168 }
0x111b   :  { %v1171_v9 = vmul.f32 %v1169_v25, %v1160_v8 }
0x111d   :  { %1173 = vrot.lane.b32.xlu2 %v1171_v9, %s1483_s28 }
0x116f   :  { %v1214_v49 = vpop.permute.xlu1 %1213 }
0x1170   :  { %v1216_v50 = vadd.f32 %v1214_v49, %v1206_v15 }
0x1172   :  { %1451 = vtanh.f32 %v1216_v50 }
0x1177   :  { %v1174_v53 = vpop.permute.xlu2 %1173 }
0x1178   :  { %v1452_v54 = vpop.eup %1451  ;;  %v1176_v55 = vadd.f32 %v1174_v53, %v1166_v52 }
0x1179   :  { %1219 = vrot.lane.b32.xlu0 %v1452_v54, %s1482_s4 }
0x117a   :  { %1453 = vtanh.f32 %v1176_v55 }
0x1180   :  { %v1454_v56 = vpop.eup %1453 }
0x1181   :  { %1179 = vrot.lane.b32.xlu1 %v1454_v56, %s1482_s4 }
0x11eb   :  { %v1220_v58 = vpop.permute.xlu0 %1219 }
0x11ec   :  { %v1222_v59 = vmul.f32 %v1220_v58, %v1200_v43 }
0x11ee   :  { %v1228_v60 = vrot.slane %v1222_v59, 2 }
0x11f0   :  { %1229 = vrot.lane.b32.xlu0 %v1228_v60, %s1482_s4 }
0x11f3   :  { %v1180_v61 = vpop.permute.xlu1 %1179 }
0x11f4   :  { %v1182_v62 = vmul.f32 %v1180_v61, %v1160_v8 }
0x11f6   :  { %1224 = vrot.lane.b32.xlu2 %v1182_v62, %s1483_s28 }
0x1250   :  { %v1225_v63 = vpop.permute.xlu2 %1224 }
0x1262   :  { %v1230_v7 = vpop.permute.xlu0 %1229 }
0x1263   :  { %v1232_v10 = vsel %vm116_vm9, %v1225_v63, %v1230_v7 }
0x1264   :  { %v1246_v11 = vrot.slane %v1232_v10, 6 }
0x1266   :  { %1321 = vmatmul.msk.f32.vlgmr.msra.gmra.mxu2 %vm51_vm0, %v1246_v11 }
0x12e9   :  { %v1266_v14 = vpop.f32.mrf.mxu2 }
0x12ea   :  { %v1267_v16 = vadd.f32 %v1326_v13, %v1266_v14 }
0x12ec   :  { %1270 = vst.msk [vmem:[#allocation3] sm:$0x3] %vm1269_vm10, %v1267_v16 }
0x12ed   :  { %1281 = dma.vmem_to_hbm [thread:$0]  %s1277_s23, 32, %s1279_s26, [#allocation4]  }
0x12ee   :  { %1479 = dma.done.wait [#allocation4], 32  }
0x12ef   :  { %1480 = vsyncadd [#allocation4], 4294967264 }
0x12f0   :  { %1286 = vsyncpa [#allocation4], 1 }

// kernel: rnn_forward.2
= control target key start
LH: loop header
LB: loop body
LE: loop exit
PB: predicated region body
PF: predicated region fallthrough
CT: control target
= control target key end

     0   :  { %10 = vsyncpa [#allocation6], 0  ;;  %s1556_s21 = smov [#allocation5]   ;;  %s1557_s23 = smov 128   ;;  %s1927_s0 = inlined_call_operand.vmem [shape: f32[16,16], index: 0, kind: input, shape index: {}]   ;;  %s1928_s1 = inlined_call_operand.vmem [shape: f32[16,256], index: 1, kind: input, shape index: {}]   ;;  %s1929_s2 = inlined_call_operand.vmem [shape: f32[32,128], index: 2, kind: input, shape index: {}]   ;;  %s1930_s3 = inlined_call_operand.hbm [shape: f32[32,128], index: 3, kind: input, shape index: {}]   ;;  %s1931_s4 = inlined_call_operand.vmem [shape: f32[1,256], index: 4, kind: input, shape index: {}]   ;;  %s1932_s5 = inlined_call_operand.vmem [shape: f32[16,64], index: 5, kind: output, shape index: {}]  }
   0x1   :  { %s21_s20 = sshll.u32 %s1930_s3, 4  ;;  %s23_s22 = sshll.u32 %s1556_s21, 4  ;;  %s22_s20 = int_to_ptr.hbm [resolvable:$true] %s21_s20  ;;  %s24_s22 = int_to_ptr.vmem [resolvable:$true] %s23_s22 }
   0x2   :  { %s1558_s24 = smov 8  }
   0x3   :  { %29 = dma.hbm_to_vmem [thread:$0]  %s22_s20, 512, %s24_s22, [#allocation6], %s1557_s23, %s1557_s23, %s1558_s24  }
   0x4   :  { %1554 = dma.done.wait [#allocation6], 512  }
   0x5   :  { %1555 = vsyncadd [#allocation6], 4294966784  ;;  %v41_v0 = vld [vmem:[%s1928_s1 + $0x18] sm:$0xff]  ;;  %v39_v1 = vld [vmem:[%s1928_s1 + $0x8] sm:$0xff]  ;;  %vm48_vm0 = vcmask 130048   ;;  %v1559_v14 = vmov 0.0  }
   0x6   :  { %92 = vmatpush.msra.mxu1 %v41_v0  ;;  %v36_v2 = vld [vmem:[%s1927_s0] sm:$0xff]  ;;  %v1604_v3 = vld [vmem:[#allocation5 + $0x18] sm:$0xff]  ;;  %v1606_v4 = vld [vmem:[#allocation5 + $0x10] sm:$0xff]  ;;  %s1561_s19 = smov 32   ;;  %vm111_vm9 = vcmask 261120   ;;  %vm242_vm10 = vcmask 254976  }
   0x7   :  { %152 = vmatpush.msra.mxu3 %v1604_v3  ;;  %v40_v5 = vld [vmem:[%s1928_s1 + $0x10] sm:$0xff]  ;;  %v1612_v6 = vld [vmem:[#allocation5 + $0x8] sm:$0xff]  ;;  %v1617_v7 = vld [vmem:[%s1929_s2 + $0x18] sm:$0xff] }
   0x8   :  { %93 = vmatpush.msra.mxu1 %v39_v1  ;;  %69 = vmatpush.msra.mxu0 %v40_v5  ;;  %v38_v8 = vld [vmem:[%s1928_s1] sm:$0xff]  ;;  %v1627_v9 = vld [vmem:[%s1929_s2 + $0x10] sm:$0xff]  ;;  %v1637_v11 = vld [vmem:[%s1929_s2 + $0x8] sm:$0xff] }
   0x9   :  { %1364 = vmatmul.msk.f32.vlgmr.msra.gmra.mxu1 %vm48_vm0, %v36_v2  ;;  %153 = vmatpush.msra.mxu3 %v1606_v4  ;;  %v1629_v10 = vld [vmem:[#allocation5] sm:$0xff]  ;;  %v37_v13 = vld [vmem:[%s1927_s0 + $0x8] sm:$0xff] }
   0xa   :  { %127 = vmatpush.msra.mxu2 %v1617_v7  ;;  %70 = vmatpush.msra.mxu0 %v38_v8  ;;  %v1645_v12 = vld [vmem:[%s1929_s2] sm:$0xff] }
   0xb   :  { %154 = vmatpush.msra.mxu3 %v1612_v6  ;;  %1362 = vmatmul.msk.f32.vlgmr.msra.gmra.mxu0 %vm48_vm0, %v36_v2  ;;  %v1688_v15 = vld [vmem:[%s1931_s4] sm:$0x3]  ;;  %s1560_s4 = smov 64  }
   0xc   :  { %128 = vmatpush.msra.mxu2 %v1627_v9  ;;  %463 = vmatpush.msrb.mxu1 %v1604_v3  ;;  %v45_v16 = vperm.slane %v1688_v15, 1  ;;  %v44_v17 = vperm.slane %v1688_v15, 0 }
   0xd   :  { %155 = vmatpush.msra.mxu3 %v1629_v10  ;;  %430 = vmatpush.msrb.mxu0 %v1617_v7 }
   0xe   :  { %156 = vmatmul.f32.vlgmr.msra.gmra.mxu3 %v1559_v14  ;;  %129 = vmatpush.msra.mxu2 %v1637_v11 }
   0xf   :  { %303 = vmatpush.msrb.mxu3 %v1604_v3  ;;  %464 = vmatpush.msrb.mxu1 %v1606_v4 }
  0x10   :  { %130 = vmatpush.msra.mxu2 %v1645_v12  ;;  %431 = vmatpush.msrb.mxu0 %v1627_v9 }
  0x11   :  { %1365 = vmatmul.msk.f32.gmra.mxu1 %vm48_vm0, %v37_v13  ;;  %131 = vmatmul.f32.vlgmr.msra.gmra.mxu2 %v1559_v14 }
  0x12   :  { %304 = vmatpush.msrb.mxu3 %v1606_v4  ;;  %270 = vmatpush.msrb.mxu2 %v1617_v7 }
  0x13   :  { %465 = vmatpush.msrb.mxu1 %v1612_v6  ;;  %1363 = vmatmul.msk.f32.gmra.mxu0 %vm48_vm0, %v37_v13 }
  0x14   :  { %305 = vmatpush.msrb.mxu3 %v1612_v6  ;;  %271 = vmatpush.msrb.mxu2 %v1627_v9 }
  0x15   :  { %466 = vmatpush.msrb.mxu1 %v1629_v10  ;;  %432 = vmatpush.msrb.mxu0 %v1637_v11 }
  0x16   :  { %306 = vmatpush.msrb.mxu3 %v1629_v10  ;;  %272 = vmatpush.msrb.mxu2 %v1637_v11 }
  0x17   :  { %433 = vmatpush.msrb.mxu0 %v1645_v12  ;;  %770 = vmatpush.msra.mxu1 %v1604_v3 }
  0x18   :  { %621 = vmatpush.msra.mxu3 %v1604_v3  ;;  %273 = vmatpush.msrb.mxu2 %v1645_v12 }
  0x19   :  { %771 = vmatpush.msra.mxu1 %v1606_v4  ;;  %743 = vmatpush.msra.mxu0 %v1617_v7 }
  0x1a   :  { %622 = vmatpush.msra.mxu3 %v1606_v4  ;;  %588 = vmatpush.msra.mxu2 %v1617_v7 }
  0x1b   :  { %772 = vmatpush.msra.mxu1 %v1612_v6  ;;  %744 = vmatpush.msra.mxu0 %v1627_v9 }
  0x1c   :  { %623 = vmatpush.msra.mxu3 %v1612_v6  ;;  %589 = vmatpush.msra.mxu2 %v1627_v9 }
  0x1d   :  { %773 = vmatpush.msra.mxu1 %v1629_v10  ;;  %745 = vmatpush.msra.mxu0 %v1637_v11 }
  0x1e   :  { %624 = vmatpush.msra.mxu3 %v1629_v10  ;;  %590 = vmatpush.msra.mxu2 %v1637_v11 }
  0x1f   :  { %746 = vmatpush.msra.mxu0 %v1645_v12 }
  0x20   :  { %591 = vmatpush.msra.mxu2 %v1645_v12 }
  0x86   :  { %v95_v18 = vpop.f32.mrf.mxu1 }
  0x87   :  { %v96_v19 = vadd.f32 %v95_v18, %v45_v16 }
  0x88   :  { %v72_v20 = vpop.f32.mrf.mxu0 }
  0x89   :  { %102 = vst [vmem:[#allocation2] sm:$0xff] %v96_v19  ;;  %v73_v21 = vadd.f32 %v72_v20, %v44_v17 }
  0x8b   :  { %101 = vst [vmem:[#allocation2 + $0x10] sm:$0xff] %v73_v21 }
  0x8e   :  { %v98_v22 = vpop.f32.mrf.mxu1 }
  0x8f   :  { %v99_v23 = vadd.f32 %v98_v22, %v45_v16 }
  0x91   :  { %104 = vst [vmem:[#allocation2 + $0x8] sm:$0xff] %v99_v23  ;;  %v157_v24 = vpop.f32.mrf.mxu3 }
  0x92   :  { %v161_v25 = vrot.slane %v157_v24, 2  ;;  %v105_v28 = vld [vmem:[#allocation2 + $0x10] sm:$0x3] }
  0x94   :  { %v132_v29 = vpop.f32.mrf.mxu2 }
  0x95   :  { %v135_v30 = vadd.f32 %v132_v29, %v105_v28 }
  0x97   :  { %v1366_v34 = vmul.f32 -1.442695, %v135_v30 }
  0x98   :  { %v106_v26 = vld [vmem:[#allocation2 + $0x8] sm:$0xc0] }
  0x99   :  { %v163_v27 = vadd.f32 %v161_v25, %v106_v26 }
  0x9b   :  { %1402 = vtanh.f32 %v163_v27  ;;  %v1367_v33 = vmul.f32 -1.442695, %v163_v27  ;;  %v250_v27 = vld [vmem:[#allocation2 + $0x10] sm:$0xc] }
  0x9c   :  { %1404 = vtanh.f32 %v135_v30 }
  0x9d   :  { %1406 = vpow2.f32 %v1367_v33 }
  0x9e   :  { %1408 = vpow2.f32 %v1366_v34 }
  0xa1   :  { %v1403_v31 = vpop.eup %1402 }
  0xa2   :  { %223 = vrot.lane.b32.xlu0 %v1403_v31, %s1560_s4  ;;  %v1405_v32 = vpop.eup %1404 }
  0xa3   :  { %v1407_v35 = vpop.eup %1406 }
  0xa4   :  { %v204_v36 = vadd.f32 1.0, %v1407_v35  ;;  %v1409_v37 = vpop.eup %1408 }
  0xa5   :  { %v167_v38 = vadd.f32 1.0, %v1409_v37 }
  0xa6   :  { %1410 = vrcp.f32 %v204_v36  ;;  %v216_v47 = vand.u32 2147483648, %v204_v36  ;;  %vm210_vm2 = vweird.f32 %v204_v36  ;;  %v214_v48 = vand.u32 2147483647, %v204_v36 }
  0xa7   :  { %1412 = vrcp.f32 %v167_v38  ;;  %vm173_vm5 = vweird.f32 %v167_v38  ;;  %v179_v54 = vand.u32 2147483648, %v167_v38  ;;  %v177_v57 = vand.u32 2147483647, %v167_v38 }
  0xa8   :  { %v217_v51 = vor.u32 1.1754944e-38, %v216_v47  ;;  %vm215_vm4 = vcmp.eq.f32.partialorder %v214_v48, 8.507059e+37 }
  0xa9   :  { %v180_v58 = vor.u32 1.1754944e-38, %v179_v54  ;;  %vm178_vm8 = vcmp.eq.f32.partialorder %v177_v57, 8.507059e+37 }
  0xaa   :  { %186 = vrot.lane.b32.xlu0 %v1405_v32, %s1560_s4 }
  0xac   :  { %v1411_v39 = vpop.eup %1410 }
  0xad   :  { %v206_v40 = vmul.f32 %v1411_v39, %v204_v36  ;;  %v1413_v42 = vpop.eup %1412  ;;  %vm211_vm1 = vweird.f32 %v1411_v39 }
  0xae   :  { %v169_v44 = vmul.f32 %v1413_v42, %v167_v38  ;;  %vm212_vm3 = vmor %vm210_vm2, %vm211_vm1  ;;  %vm174_vm6 = vweird.f32 %v1413_v42 }
  0xaf   :  { %v207_v41 = vsub.f32 1.0, %v206_v40  ;;  %vm175_vm7 = vmor %vm173_vm5, %vm174_vm6 }
  0xb0   :  { %v170_v46 = vsub.f32 1.0, %v169_v44 }
  0xb1   :  { %v208_v43 = vmul.f32 %v1411_v39, %v207_v41 }
  0xb2   :  { %v171_v50 = vmul.f32 %v1413_v42, %v170_v46 }
  0xb3   :  { %v209_v45 = vadd.f32 %v1411_v39, %v208_v43 }
  0xb4   :  { %v172_v56 = vadd.f32 %v1413_v42, %v171_v50 }
  0xb5   :  { %v213_v49 = vsel %vm212_vm3, %v1411_v39, %v209_v45 }
  0xb6   :  { %v218_v53 = vsel %vm215_vm4, %v217_v51, %v213_v49  ;;  %v176_v59 = vsel %vm175_vm7, %v1413_v42, %v172_v56 }
  0xb7   :  { %v181_v61 = vsel %vm178_vm8, %v180_v58, %v176_v59  ;;  %v221_v63 = vmul.f32 0.0, %v218_v53 }
  0xb8   :  { %v184_v2 = vmul.f32 0.0, %v181_v61 }
 0x114   :  { %v224_v52 = vpop.permute.xlu0 %223 }
 0x115   :  { %v226_v55 = vmul.f32 %v224_v52, %v218_v53 }
 0x117   :  { %228 = vrot.lane.b32.xlu1 %v226_v55, %s1561_s19 }
 0x11c   :  { %v187_v60 = vpop.permute.xlu0 %186 }
 0x11d   :  { %v189_v62 = vmul.f32 %v187_v60, %v181_v61 }
 0x11f   :  { %191 = vrot.lane.b32.xlu1 %v189_v62, %s1561_s19 }
 0x189   :  { %v229_v0 = vpop.permute.xlu1 %228 }
 0x18a   :  { %v1698_v1 = vadd.f32 %v229_v0, %v221_v63 }
 0x18c   :  { %1414 = vtanh.f32 %v1698_v1  ;;  %v376_v56 = vrot.slane %v1698_v1, 2 }
 0x191   :  { %v192_v5 = vpop.permute.xlu1 %191 }
 0x192   :  { %v1415_v8 = vpop.eup %1414  ;;  %v1701_v13 = vadd.f32 %v192_v5, %v184_v2 }
 0x193   :  { %234 = vrot.lane.b32.xlu2 %v1415_v8, %s1560_s4 }
 0x194   :  { %1416 = vtanh.f32 %v1701_v13  ;;  %v336_v60 = vrot.slane %v1701_v13, 6 }
 0x19a   :  { %v1417_v14 = vpop.eup %1416 }
 0x19b   :  { %197 = vrot.lane.b32.xlu2 %v1417_v14, %s1560_s4 }
 0x1ed   :  { %v235_v16 = vpop.permute.xlu2 %234 }
 0x1ee   :  { %v1706_v18 = vmul.f32 %v235_v16, %v218_v53 }
 0x1f0   :  { %v286_v19 = vrot.slane %v1706_v18, 6 }
 0x1f2   :  { %287 = vrot.lane.b32.xlu0 %v286_v19, %s1561_s19 }
 0x1f5   :  { %v198_v20 = vpop.permute.xlu2 %197 }
 0x1f6   :  { %v200_v21 = vmul.f32 %v198_v20, %v181_v61 }
 0x1f8   :  { %239 = vrot.lane.b32.xlu1 %v200_v21, %s1561_s19  ;;  %v75_v21 = vpop.f32.mrf.mxu0 }
 0x264   :  { %v288_v22 = vpop.permute.xlu0 %287 }
 0x265   :  { %1369 = vmatmul.msk.f32.vlgmr.msrb.gmra.mxu3 %vm111_vm9, %v288_v22  ;;  %v76_v22 = vadd.f32 %v75_v21, %v44_v17 }
 0x266   :  { %925 = vmatpush.msrb.mxu3 %v1604_v3 }
 0x267   :  { %103 = vst [vmem:[#allocation2 + $0x18] sm:$0xff] %v76_v22 }
 0x268   :  { %926 = vmatpush.msrb.mxu3 %v1606_v4  ;;  %v251_v4 = vld [vmem:[#allocation2 + $0x8] sm:$0x30] }
 0x26a   :  { %v240_v23 = vpop.permute.xlu1 %239  ;;  %927 = vmatpush.msrb.mxu3 %v1612_v6 }
 0x26b   :  { %243 = vst.msk [vmem:[#allocation3] sm:$0x3] %vm242_vm10, %v240_v23  ;;  %1368 = vmatmul.msk.f32.vlgmr.msrb.gmra.mxu2 %vm111_vm9, %v240_v23 }
 0x26c   :  { %928 = vmatpush.msrb.mxu3 %v1629_v10  ;;  %892 = vmatpush.msrb.mxu2 %v1617_v7 }
 0x26e   :  { %893 = vmatpush.msrb.mxu2 %v1627_v9 }
 0x270   :  { %894 = vmatpush.msrb.mxu2 %v1637_v11 }
 0x272   :  { %895 = vmatpush.msrb.mxu2 %v1645_v12 }
 0x2e8   :  { %v308_v3 = vpop.f32.mrf.mxu3 }
 0x2e9   :  { %v312_v24 = vrot.slane %v308_v3, 4 }
 0x2eb   :  { %v314_v25 = vadd.f32 %v312_v24, %v251_v4  ;;  %v408_v24 = vld [vmem:[#allocation2 + $0x8] sm:$0xc] }
 0x2ed   :  { %1418 = vtanh.f32 %v314_v25  ;;  %v1371_v9 = vmul.f32 -1.442695, %v314_v25 }
 0x2ee   :  { %v275_v6 = vpop.f32.mrf.mxu2 }
 0x2ef   :  { %v279_v26 = vrot.slane %v275_v6, 6 }
 0x2f1   :  { %v281_v28 = vadd.f32 %v279_v26, %v250_v27  ;;  %v407_v27 = vld [vmem:[#allocation2 + $0x10] sm:$0x30] }
 0x2f3   :  { %v1419_v29 = vpop.eup %1418  ;;  %1420 = vtanh.f32 %v281_v28  ;;  %v1370_v31 = vmul.f32 -1.442695, %v281_v28 }
 0x2f4   :  { %380 = vrot.lane.b32.xlu2 %v1419_v29, %s1560_s4  ;;  %1422 = vpow2.f32 %v1371_v9 }
 0x2f9   :  { %v1421_v7 = vpop.eup %1420 }
 0x2fa   :  { %340 = vrot.lane.b32.xlu0 %v1421_v7, %s1560_s4  ;;  %v1423_v10 = vpop.eup %1422 }
 0x2fb   :  { %v358_v11 = vadd.f32 1.0, %v1423_v10 }
 0x2fd   :  { %1424 = vrcp.f32 %v358_v11  ;;  %v370_v35 = vand.u32 2147483648, %v358_v11  ;;  %vm364_vm12 = vweird.f32 %v358_v11  ;;  %v368_v37 = vand.u32 2147483647, %v358_v11 }
 0x2fe   :  { %1426 = vpow2.f32 %v1370_v31 }
 0x2ff   :  { %v371_v40 = vor.u32 1.1754944e-38, %v370_v35  ;;  %vm369_vm14 = vcmp.eq.f32.partialorder %v368_v37, 8.507059e+37 }
 0x303   :  { %v1425_v12 = vpop.eup %1424 }
 0x304   :  { %v360_v30 = vmul.f32 %v1425_v12, %v358_v11  ;;  %vm365_vm11 = vweird.f32 %v1425_v12  ;;  %v1427_v36 = vpop.eup %1426 }
 0x305   :  { %vm366_vm13 = vmor %vm364_vm12, %vm365_vm11  ;;  %v318_v39 = vadd.f32 1.0, %v1427_v36 }
 0x306   :  { %v361_v32 = vsub.f32 1.0, %v360_v30 }
 0x307   :  { %1428 = vrcp.f32 %v318_v39  ;;  %v330_v49 = vand.u32 2147483648, %v318_v39  ;;  %vm324_vm0 = vweird.f32 %v318_v39  ;;  %v328_v50 = vand.u32 2147483647, %v318_v39 }
 0x308   :  { %v362_v33 = vmul.f32 %v1425_v12, %v361_v32 }
 0x309   :  { %v331_v52 = vor.u32 1.1754944e-38, %v330_v49  ;;  %vm329_vm2 = vcmp.eq.f32.partialorder %v328_v50, 8.507059e+37 }
 0x30a   :  { %v363_v34 = vadd.f32 %v1425_v12, %v362_v33 }
 0x30c   :  { %v367_v38 = vsel %vm366_vm13, %v1425_v12, %v363_v34 }
 0x30d   :  { %v372_v41 = vsel %vm369_vm14, %v371_v40, %v367_v38  ;;  %v1429_v44 = vpop.eup %1428 }
 0x30e   :  { %v320_v45 = vmul.f32 %v1429_v44, %v318_v39  ;;  %vm325_vm15 = vweird.f32 %v1429_v44  ;;  %v378_v57 = vmul.f32 %v376_v56, %v372_v41 }
 0x30f   :  { %vm326_vm1 = vmor %vm324_vm0, %vm325_vm15 }
 0x310   :  { %v321_v46 = vsub.f32 1.0, %v320_v45 }
 0x312   :  { %v322_v47 = vmul.f32 %v1429_v44, %v321_v46 }
 0x314   :  { %v323_v48 = vadd.f32 %v1429_v44, %v322_v47 }
 0x316   :  { %v327_v51 = vsel %vm326_vm1, %v1429_v44, %v323_v48 }
 0x317   :  { %v332_v54 = vsel %vm329_vm2, %v331_v52, %v327_v51 }
 0x318   :  { %v338_v61 = vmul.f32 %v336_v60, %v332_v54 }
 0x34e   :  { %v381_v42 = vpop.permute.xlu2 %380 }
 0x34f   :  { %v383_v43 = vmul.f32 %v381_v42, %v372_v41 }
 0x351   :  { %385 = vrot.lane.b32.xlu1 %v383_v43, %s1561_s19 }
 0x36c   :  { %v341_v53 = vpop.permute.xlu0 %340 }
 0x36d   :  { %v343_v55 = vmul.f32 %v341_v53, %v332_v54 }
 0x36f   :  { %345 = vrot.lane.b32.xlu2 %v343_v55, %s1561_s19 }
 0x3c3   :  { %v386_v58 = vpop.permute.xlu1 %385 }
 0x3c4   :  { %v1727_v59 = vadd.f32 %v386_v58, %v378_v57 }
 0x3c6   :  { %1430 = vtanh.f32 %v1727_v59  ;;  %v536_v53 = vrot.slane %v1727_v59, 2 }
 0x3c9   :  { %v346_v62 = vpop.permute.xlu2 %345 }
 0x3ca   :  { %v1731_v63 = vadd.f32 %v346_v62, %v338_v61 }
 0x3cc   :  { %v1431_v0 = vpop.eup %1430  ;;  %1432 = vtanh.f32 %v1731_v63  ;;  %v496_v57 = vrot.slane %v1731_v63, 6 }
 0x3cd   :  { %391 = vrot.lane.b32.xlu0 %v1431_v0, %s1560_s4 }
 0x3d2   :  { %v1433_v2 = vpop.eup %1432 }
 0x3d3   :  { %351 = vrot.lane.b32.xlu1 %v1433_v2, %s1560_s4 }
 0x43f   :  { %v392_v1 = vpop.permute.xlu0 %391 }
 0x440   :  { %v1736_v5 = vmul.f32 %v392_v1, %v372_v41 }
 0x442   :  { %v446_v8 = vrot.slane %v1736_v5, 4 }
 0x444   :  { %447 = vrot.lane.b32.xlu2 %v446_v8, %s1561_s19 }
 0x445   :  { %v352_v13 = vpop.permute.xlu1 %351 }
 0x446   :  { %v1740_v14 = vmul.f32 %v352_v13, %v332_v54 }
 0x448   :  { %v413_v16 = vrot.slane %v1740_v14, 2 }
 0x44a   :  { %414 = vrot.lane.b32.xlu0 %v413_v16, %s1561_s19 }
 0x49e   :  { %v448_v19 = vpop.permute.xlu2 %447 }
 0x49f   :  { %1373 = vmatmul.msk.f32.vlgmr.msrb.gmra.mxu1 %vm111_vm9, %v448_v19 }
 0x4bc   :  { %v415_v20 = vpop.permute.xlu0 %414 }
 0x4bd   :  { %1372 = vmatmul.msk.f32.vlgmr.msrb.gmra.mxu0 %vm111_vm9, %v415_v20  ;;  %v566_v20 = vld [vmem:[#allocation2 + $0x8] sm:$0x3] }
 0x51c   :  { %v468_v23 = vpop.f32.mrf.mxu1 }
 0x51d   :  { %v472_v3 = vrot.slane %v468_v23, 6 }
 0x51f   :  { %v474_v4 = vadd.f32 %v472_v3, %v408_v24  ;;  %v565_v24 = vld [vmem:[#allocation2 + $0x10] sm:$0xc0] }
 0x521   :  { %1434 = vtanh.f32 %v474_v4  ;;  %v1375_v7 = vmul.f32 -1.442695, %v474_v4 }
 0x527   :  { %v1435_v25 = vpop.eup %1434 }
 0x528   :  { %540 = vrot.lane.b32.xlu1 %v1435_v25, %s1560_s4 }
 0x53a   :  { %v435_v6 = vpop.f32.mrf.mxu0 }
 0x53b   :  { %v439_v26 = vrot.slane %v435_v6, 4 }
 0x53d   :  { %v441_v28 = vadd.f32 %v439_v26, %v407_v27 }
 0x53f   :  { %1436 = vtanh.f32 %v441_v28  ;;  %v1374_v15 = vmul.f32 -1.442695, %v441_v28 }
 0x540   :  { %1438 = vpow2.f32 %v1375_v7 }
 0x541   :  { %1440 = vpow2.f32 %v1374_v15 }
 0x545   :  { %v1437_v29 = vpop.eup %1436 }
 0x546   :  { %500 = vrot.lane.b32.xlu2 %v1437_v29, %s1560_s4  ;;  %v1439_v17 = vpop.eup %1438 }
 0x547   :  { %v518_v9 = vadd.f32 1.0, %v1439_v17  ;;  %v1441_v10 = vpop.eup %1440 }
 0x548   :  { %v478_v11 = vadd.f32 1.0, %v1441_v10 }
 0x549   :  { %1442 = vrcp.f32 %v518_v9  ;;  %v530_v37 = vand.u32 2147483648, %v518_v9  ;;  %vm524_vm4 = vweird.f32 %v518_v9  ;;  %v528_v38 = vand.u32 2147483647, %v518_v9 }
 0x54a   :  { %1444 = vrcp.f32 %v478_v11  ;;  %v490_v45 = vand.u32 2147483648, %v478_v11  ;;  %vm484_vm8 = vweird.f32 %v478_v11  ;;  %v488_v47 = vand.u32 2147483647, %v478_v11 }
 0x54b   :  { %v531_v41 = vor.u32 1.1754944e-38, %v530_v37  ;;  %vm529_vm6 = vcmp.eq.f32.partialorder %v528_v38, 8.507059e+37 }
 0x54c   :  { %v491_v49 = vor.u32 1.1754944e-38, %v490_v45  ;;  %vm489_vm12 = vcmp.eq.f32.partialorder %v488_v47, 8.507059e+37 }
 0x54f   :  { %v1443_v12 = vpop.eup %1442 }
 0x550   :  { %v520_v30 = vmul.f32 %v1443_v12, %v518_v9  ;;  %v1445_v31 = vpop.eup %1444  ;;  %vm525_vm3 = vweird.f32 %v1443_v12 }
 0x551   :  { %v480_v33 = vmul.f32 %v1445_v31, %v478_v11  ;;  %vm526_vm5 = vmor %vm524_vm4, %vm525_vm3  ;;  %vm485_vm7 = vweird.f32 %v1445_v31 }
 0x552   :  { %v521_v32 = vsub.f32 1.0, %v520_v30  ;;  %vm486_vm11 = vmor %vm484_vm8, %vm485_vm7 }
 0x553   :  { %v481_v35 = vsub.f32 1.0, %v480_v33 }
 0x554   :  { %v522_v34 = vmul.f32 %v1443_v12, %v521_v32 }
 0x555   :  { %v482_v39 = vmul.f32 %v1445_v31, %v481_v35 }
 0x556   :  { %v523_v36 = vadd.f32 %v1443_v12, %v522_v34 }
 0x557   :  { %v483_v42 = vadd.f32 %v1445_v31, %v482_v39 }
 0x558   :  { %v527_v40 = vsel %vm526_vm5, %v1443_v12, %v523_v36 }
 0x559   :  { %v532_v44 = vsel %vm529_vm6, %v531_v41, %v527_v40  ;;  %v487_v48 = vsel %vm486_vm11, %v1445_v31, %v483_v42 }
 0x55a   :  { %v492_v50 = vsel %vm489_vm12, %v491_v49, %v487_v48  ;;  %v538_v54 = vmul.f32 %v536_v53, %v532_v44 }
 0x55b   :  { %v498_v58 = vmul.f32 %v496_v57, %v492_v50 }
 0x59a   :  { %v541_v43 = vpop.permute.xlu1 %540 }
 0x59b   :  { %v543_v46 = vmul.f32 %v541_v43, %v532_v44 }
 0x59d   :  { %545 = vrot.lane.b32.xlu0 %v543_v46, %s1561_s19 }
 0x5a0   :  { %v501_v51 = vpop.permute.xlu2 %500 }
 0x5a1   :  { %v503_v52 = vmul.f32 %v501_v51, %v492_v50 }
 0x5a3   :  { %505 = vrot.lane.b32.xlu1 %v503_v52, %s1561_s19 }
 0x60f   :  { %v546_v55 = vpop.permute.xlu0 %545 }
 0x610   :  { %v1753_v56 = vadd.f32 %v546_v55, %v538_v54 }
 0x612   :  { %1446 = vtanh.f32 %v1753_v56  ;;  %v691_v49 = vrot.slane %v1753_v56, 2 }
 0x615   :  { %v506_v60 = vpop.permute.xlu1 %505 }
 0x616   :  { %v1757_v61 = vadd.f32 %v506_v60, %v498_v58 }
 0x618   :  { %v1447_v62 = vpop.eup %1446  ;;  %1448 = vtanh.f32 %v1757_v61  ;;  %v651_v54 = vrot.slane %v1757_v61, 6 }
 0x619   :  { %551 = vrot.lane.b32.xlu2 %v1447_v62, %s1560_s4 }
 0x61e   :  { %v1449_v0 = vpop.eup %1448 }
 0x61f   :  { %511 = vrot.lane.b32.xlu0 %v1449_v0, %s1560_s4 }
 0x673   :  { %v552_v59 = vpop.permute.xlu2 %551 }
 0x674   :  { %v1762_v2 = vmul.f32 %v552_v59, %v532_v44 }
 0x676   :  { %v604_v1 = vrot.slane %v1762_v2, 2 }
 0x678   :  { %605 = vrot.lane.b32.xlu1 %v604_v1, %s1561_s19 }
 0x691   :  { %v512_v63 = vpop.permute.xlu0 %511 }
 0x692   :  { %v1766_v8 = vmul.f32 %v512_v63, %v492_v50 }
 0x694   :  { %v571_v13 = vrot.slane %v1766_v8, 4 }
 0x696   :  { %572 = vrot.lane.b32.xlu2 %v571_v13, %s1561_s19 }
 0x6ea   :  { %v606_v16 = vpop.permute.xlu1 %605 }
 0x6eb   :  { %1377 = vmatmul.msk.f32.vlgmr.msra.gmra.mxu3 %vm111_vm9, %v606_v16 }
 0x6f0   :  { %v573_v19 = vpop.permute.xlu2 %572 }
 0x6f1   :  { %1376 = vmatmul.msk.f32.vlgmr.msra.gmra.mxu2 %vm111_vm9, %v573_v19  ;;  %v721_v19 = vld [vmem:[#allocation2] sm:$0xc0] }
 0x76e   :  { %v626_v21 = vpop.f32.mrf.mxu3 }
 0x76f   :  { %v629_v22 = vadd.f32 %v626_v21, %v566_v20  ;;  %v720_v21 = vld [vmem:[#allocation2 + $0x18] sm:$0x3] }
 0x771   :  { %1450 = vtanh.f32 %v629_v22  ;;  %v1379_v26 = vmul.f32 -1.442695, %v629_v22 }
 0x774   :  { %v593_v23 = vpop.f32.mrf.mxu2 }
 0x775   :  { %v597_v3 = vrot.slane %v593_v23, 2 }
 0x777   :  { %v1451_v4 = vpop.eup %1450  ;;  %v599_v25 = vadd.f32 %v597_v3, %v565_v24 }
 0x778   :  { %695 = vrot.lane.b32.xlu0 %v1451_v4, %s1560_s4 }
 0x779   :  { %1452 = vtanh.f32 %v599_v25  ;;  %v1378_v27 = vmul.f32 -1.442695, %v599_v25 }
 0x77a   :  { %1454 = vpow2.f32 %v1379_v26 }
 0x77b   :  { %1456 = vpow2.f32 %v1378_v27 }
 0x77f   :  { %v1453_v6 = vpop.eup %1452 }
 0x780   :  { %655 = vrot.lane.b32.xlu1 %v1453_v6, %s1560_s4  ;;  %v1455_v28 = vpop.eup %1454 }
 0x781   :  { %v673_v29 = vadd.f32 1.0, %v1455_v28  ;;  %v1457_v7 = vpop.eup %1456 }
 0x782   :  { %v633_v15 = vadd.f32 1.0, %v1457_v7 }
 0x783   :  { %1458 = vrcp.f32 %v673_v29  ;;  %v685_v33 = vand.u32 2147483648, %v673_v29  ;;  %vm679_vm14 = vweird.f32 %v673_v29  ;;  %v683_v34 = vand.u32 2147483647, %v673_v29 }
 0x784   :  { %1460 = vrcp.f32 %v633_v15  ;;  %v645_v42 = vand.u32 2147483648, %v633_v15  ;;  %vm639_vm2 = vweird.f32 %v633_v15  ;;  %v643_v43 = vand.u32 2147483647, %v633_v15 }
 0x785   :  { %v686_v37 = vor.u32 1.1754944e-38, %v685_v33  ;;  %vm684_vm0 = vcmp.eq.f32.partialorder %v683_v34, 8.507059e+37 }
 0x786   :  { %v646_v45 = vor.u32 1.1754944e-38, %v645_v42  ;;  %vm644_vm4 = vcmp.eq.f32.partialorder %v643_v43, 8.507059e+37 }
 0x789   :  { %v1459_v17 = vpop.eup %1458 }
 0x78a   :  { %v675_v9 = vmul.f32 %v1459_v17, %v673_v29  ;;  %v1461_v11 = vpop.eup %1460  ;;  %vm680_vm13 = vweird.f32 %v1459_v17 }
 0x78b   :  { %v635_v30 = vmul.f32 %v1461_v11, %v633_v15  ;;  %vm681_vm15 = vmor %vm679_vm14, %vm680_vm13  ;;  %vm640_vm1 = vweird.f32 %v1461_v11 }
 0x78c   :  { %v676_v10 = vsub.f32 1.0, %v675_v9  ;;  %vm641_vm3 = vmor %vm639_vm2, %vm640_vm1 }
 0x78d   :  { %v636_v32 = vsub.f32 1.0, %v635_v30 }
 0x78e   :  { %v677_v12 = vmul.f32 %v1459_v17, %v676_v10 }
 0x78f   :  { %v637_v36 = vmul.f32 %v1461_v11, %v636_v32 }
 0x790   :  { %v678_v31 = vadd.f32 %v1459_v17, %v677_v12 }
 0x791   :  { %v638_v41 = vadd.f32 %v1461_v11, %v637_v36 }
 0x792   :  { %v682_v35 = vsel %vm681_vm15, %v1459_v17, %v678_v31 }
 0x793   :  { %v687_v39 = vsel %vm684_vm0, %v686_v37, %v682_v35  ;;  %v642_v44 = vsel %vm641_vm3, %v1461_v11, %v638_v41 }
 0x794   :  { %v647_v47 = vsel %vm644_vm4, %v646_v45, %v642_v44  ;;  %v693_v50 = vmul.f32 %v691_v49, %v687_v39 }
 0x795   :  { %v653_v55 = vmul.f32 %v651_v54, %v647_v47 }
 0x7ea   :  { %v696_v38 = vpop.permute.xlu0 %695 }
 0x7eb   :  { %v698_v40 = vmul.f32 %v696_v38, %v687_v39 }
 0x7ed   :  { %700 = vrot.lane.b32.xlu2 %v698_v40, %s1561_s19 }
 0x7f2   :  { %v656_v46 = vpop.permute.xlu1 %655 }
 0x7f3   :  { %v658_v48 = vmul.f32 %v656_v46, %v647_v47 }
 0x7f5   :  { %660 = vrot.lane.b32.xlu0 %v658_v48, %s1561_s19 }
 0x847   :  { %v701_v51 = vpop.permute.xlu2 %700 }
 0x848   :  { %v1777_v52 = vadd.f32 %v701_v51, %v693_v50 }
 0x84a   :  { %1462 = vtanh.f32 %v1777_v52  ;;  %v843_v46 = vrot.slane %v1777_v52, 2 }
 0x850   :  { %v1463_v53 = vpop.eup %1462 }
 0x851   :  { %706 = vrot.lane.b32.xlu1 %v1463_v53, %s1560_s4 }
 0x867   :  { %v661_v57 = vpop.permute.xlu0 %660 }
 0x868   :  { %v1782_v58 = vadd.f32 %v661_v57, %v653_v55 }
 0x86a   :  { %1464 = vtanh.f32 %v1782_v58  ;;  %v803_v50 = vrot.slane %v1782_v58, 6 }
 0x870   :  { %v1465_v60 = vpop.eup %1464 }
 0x871   :  { %666 = vrot.lane.b32.xlu2 %v1465_v60, %s1560_s4 }
 0x8c3   :  { %v707_v56 = vpop.permute.xlu1 %706 }
 0x8c4   :  { %v709_v62 = vmul.f32 %v707_v56, %v687_v39 }
 0x8c6   :  { %716 = vrot.lane.b32.xlu0 %v709_v62, %s1561_s19 }
 0x8cb   :  { %v667_v0 = vpop.permute.xlu2 %666 }
 0x8cc   :  { %v1787_v59 = vmul.f32 %v667_v0, %v647_v47 }
 0x8ce   :  { %v726_v1 = vrot.slane %v1787_v59, 6 }
 0x8d0   :  { %727 = vrot.lane.b32.xlu1 %v726_v1, %s1561_s19 }
 0x938   :  { %v717_v61 = vpop.permute.xlu0 %716 }
 0x939   :  { %719 = vst.msk [vmem:[#allocation4 + $0x8] sm:$0x3] %vm242_vm10, %v717_v61  ;;  %1381 = vmatmul.msk.f32.vlgmr.msra.gmra.mxu1 %vm111_vm9, %v717_v61 }
 0x942   :  { %v728_v63 = vpop.permute.xlu1 %727 }
 0x943   :  { %1380 = vmatmul.msk.f32.vlgmr.msra.gmra.mxu0 %vm111_vm9, %v728_v63 }
 0x9b6   :  { %v775_v13 = vpop.f32.mrf.mxu1 }
 0x9b7   :  { %v779_v16 = vrot.slane %v775_v13, 2  ;;  %v873_v13 = vld [vmem:[#allocation2] sm:$0x30] }
 0x9b9   :  { %v781_v20 = vadd.f32 %v779_v16, %v721_v19 }
 0x9bb   :  { %1466 = vtanh.f32 %v781_v20  ;;  %v1383_v4 = vmul.f32 -1.442695, %v781_v20 }
 0x9c0   :  { %v748_v22 = vpop.f32.mrf.mxu0 }
 0x9c1   :  { %v1467_v23 = vpop.eup %1466  ;;  %v751_v3 = vadd.f32 %v748_v22, %v720_v21  ;;  %v872_v22 = vld [vmem:[#allocation2 + $0x18] sm:$0xc] }
 0x9c2   :  { %847 = vrot.lane.b32.xlu2 %v1467_v23, %s1560_s4 }
 0x9c3   :  { %1468 = vtanh.f32 %v751_v3  ;;  %v1382_v29 = vmul.f32 -1.442695, %v751_v3 }
 0x9c4   :  { %1470 = vpow2.f32 %v1383_v4 }
 0x9c9   :  { %v1469_v24 = vpop.eup %1468 }
 0x9ca   :  { %807 = vrot.lane.b32.xlu0 %v1469_v24, %s1560_s4  ;;  %v1471_v25 = vpop.eup %1470 }
 0x9cb   :  { %v825_v6 = vadd.f32 1.0, %v1471_v25 }
 0x9cd   :  { %1472 = vrcp.f32 %v825_v6  ;;  %v837_v17 = vand.u32 2147483648, %v825_v6  ;;  %vm831_vm6 = vweird.f32 %v825_v6  ;;  %v835_v9 = vand.u32 2147483647, %v825_v6 }
 0x9ce   :  { %1474 = vpow2.f32 %v1382_v29 }
 0x9cf   :  { %v838_v12 = vor.u32 1.1754944e-38, %v837_v17  ;;  %vm836_vm8 = vcmp.eq.f32.partialorder %v835_v9, 8.507059e+37 }
 0x9d3   :  { %v1473_v26 = vpop.eup %1472 }
 0x9d4   :  { %v827_v27 = vmul.f32 %v1473_v26, %v825_v6  ;;  %vm832_vm5 = vweird.f32 %v1473_v26  ;;  %v1475_v10 = vpop.eup %1474 }
 0x9d5   :  { %vm833_vm7 = vmor %vm831_vm6, %vm832_vm5  ;;  %v785_v30 = vadd.f32 1.0, %v1475_v10 }
 0x9d6   :  { %v828_v28 = vsub.f32 1.0, %v827_v27 }
 0x9d7   :  { %1476 = vrcp.f32 %v785_v30  ;;  %v797_v39 = vand.u32 2147483648, %v785_v30  ;;  %vm791_vm12 = vweird.f32 %v785_v30  ;;  %v795_v40 = vand.u32 2147483647, %v785_v30 }
 0x9d8   :  { %v829_v7 = vmul.f32 %v1473_v26, %v828_v28 }
 0x9d9   :  { %v798_v42 = vor.u32 1.1754944e-38, %v797_v39  ;;  %vm796_vm14 = vcmp.eq.f32.partialorder %v795_v40, 8.507059e+37 }
 0x9da   :  { %v830_v15 = vadd.f32 %v1473_v26, %v829_v7 }
 0x9dc   :  { %v834_v11 = vsel %vm833_vm7, %v1473_v26, %v830_v15 }
 0x9dd   :  { %v839_v31 = vsel %vm836_vm8, %v838_v12, %v834_v11  ;;  %v1477_v34 = vpop.eup %1476 }
 0x9de   :  { %v787_v35 = vmul.f32 %v1477_v34, %v785_v30  ;;  %vm792_vm11 = vweird.f32 %v1477_v34  ;;  %v845_v47 = vmul.f32 %v843_v46, %v839_v31 }
 0x9df   :  { %vm793_vm13 = vmor %vm791_vm12, %vm792_vm11 }
 0x9e0   :  { %v788_v36 = vsub.f32 1.0, %v787_v35 }
 0x9e2   :  { %v789_v37 = vmul.f32 %v1477_v34, %v788_v36 }
 0x9e4   :  { %v790_v38 = vadd.f32 %v1477_v34, %v789_v37 }
 0x9e6   :  { %v794_v41 = vsel %vm793_vm13, %v1477_v34, %v790_v38 }
 0x9e7   :  { %v799_v44 = vsel %vm796_vm14, %v798_v42, %v794_v41 }
 0x9e8   :  { %v805_v51 = vmul.f32 %v803_v50, %v799_v44 }
 0xa1c   :  { %v848_v32 = vpop.permute.xlu2 %847 }
 0xa1d   :  { %v850_v33 = vmul.f32 %v848_v32, %v839_v31 }
 0xa1f   :  { %852 = vrot.lane.b32.xlu1 %v850_v33, %s1561_s19 }
 0xa3c   :  { %v808_v43 = vpop.permute.xlu0 %807 }
 0xa3d   :  { %v810_v45 = vmul.f32 %v808_v43, %v799_v44 }
 0xa3f   :  { %812 = vrot.lane.b32.xlu2 %v810_v45, %s1561_s19 }
 0xa91   :  { %v853_v48 = vpop.permute.xlu1 %852 }
 0xa92   :  { %v1799_v49 = vadd.f32 %v853_v48, %v845_v47 }
 0xa94   :  { %1478 = vtanh.f32 %v1799_v49  ;;  %v998_v45 = vrot.slane %v1799_v49, 2 }
 0xa99   :  { %v813_v53 = vpop.permute.xlu2 %812 }
 0xa9a   :  { %v1479_v54 = vpop.eup %1478  ;;  %v1803_v55 = vadd.f32 %v813_v53, %v805_v51 }
 0xa9b   :  { %858 = vrot.lane.b32.xlu0 %v1479_v54, %s1560_s4 }
 0xa9c   :  { %1480 = vtanh.f32 %v1803_v55  ;;  %v958_v50 = vrot.slane %v1803_v55, 6  ;;  %v1065_v55 = vld [vmem:[#allocation5 + $0x18] sm:$0xff] }
 0xa9d   :  { %1083 = vmatpush.msrb.mxu1 %v1065_v55  ;;  %1241 = vmatpush.msra.mxu3 %v1065_v55 }
 0xaa2   :  { %v1481_v57 = vpop.eup %1480 }
 0xaa3   :  { %818 = vrot.lane.b32.xlu1 %v1481_v57, %s1560_s4 }
 0xb0d   :  { %v859_v52 = vpop.permute.xlu0 %858 }
 0xb0e   :  { %v1808_v60 = vmul.f32 %v859_v52, %v839_v31 }
 0xb10   :  { %v908_v56 = vrot.slane %v1808_v60, 6 }
 0xb12   :  { %909 = vrot.lane.b32.xlu2 %v908_v56, %s1561_s19 }
 0xb15   :  { %v819_v58 = vpop.permute.xlu1 %818 }
 0xb16   :  { %v821_v62 = vmul.f32 %v819_v58, %v799_v44 }
 0xb18   :  { %863 = vrot.lane.b32.xlu0 %v821_v62, %s1561_s19  ;;  %v1064_v62 = vld [vmem:[#allocation5 + $0x10] sm:$0xff] }
 0xb19   :  { %1084 = vmatpush.msrb.mxu1 %v1064_v62  ;;  %1242 = vmatpush.msra.mxu3 %v1064_v62 }
 0xb6c   :  { %v910_v0 = vpop.permute.xlu2 %909 }
 0xb6d   :  { %1385 = vmatmul.msk.f32.vlgmr.msrb.gmra.mxu3 %vm111_vm9, %v910_v0  ;;  %v1032_v0 = vld [vmem:[%s1929_s2 + $0x18] sm:$0xff] }
 0xb6e   :  { %1050 = vmatpush.msrb.mxu0 %v1032_v0  ;;  %1208 = vmatpush.msra.mxu2 %v1032_v0 }
 0xb8a   :  { %v864_v1 = vpop.permute.xlu0 %863 }
 0xb8b   :  { %866 = vst.msk [vmem:[#allocation3 + $0x8] sm:$0x3] %vm242_vm10, %v864_v1  ;;  %1384 = vmatmul.msk.f32.vlgmr.msrb.gmra.mxu2 %vm111_vm9, %v864_v1  ;;  %v1063_v1 = vld [vmem:[#allocation5 + $0x8] sm:$0xff] }
 0xb8c   :  { %1085 = vmatpush.msrb.mxu1 %v1063_v1  ;;  %1243 = vmatpush.msra.mxu3 %v1063_v1 }
 0xbf0   :  { %v930_v61 = vpop.f32.mrf.mxu3 }
 0xbf1   :  { %v934_v63 = vrot.slane %v930_v61, 4  ;;  %v1062_v61 = vld [vmem:[#allocation5] sm:$0xff] }
 0xbf2   :  { %1086 = vmatpush.msrb.mxu1 %v1062_v61  ;;  %1244 = vmatpush.msra.mxu3 %v1062_v61 }
 0xbf3   :  { %v936_v16 = vadd.f32 %v934_v63, %v873_v13 }
 0xbf5   :  { %1482 = vtanh.f32 %v936_v16  ;;  %v1387_v24 = vmul.f32 -1.442695, %v936_v16 }
 0xbfb   :  { %v1483_v19 = vpop.eup %1482 }
 0xbfc   :  { %1002 = vrot.lane.b32.xlu1 %v1483_v19, %s1560_s4  ;;  %v1031_v19 = vld [vmem:[%s1929_s2 + $0x10] sm:$0xff] }
 0xbfd   :  { %1051 = vmatpush.msrb.mxu0 %v1031_v19  ;;  %1209 = vmatpush.msra.mxu2 %v1031_v19 }
 0xc0e   :  { %v897_v20 = vpop.f32.mrf.mxu2 }
 0xc0f   :  { %v901_v21 = vrot.slane %v897_v20, 6  ;;  %v1030_v20 = vld [vmem:[%s1929_s2 + $0x8] sm:$0xff] }
 0xc10   :  { %1052 = vmatpush.msrb.mxu0 %v1030_v20  ;;  %1210 = vmatpush.msra.mxu2 %v1030_v20 }
 0xc11   :  { %v903_v23 = vadd.f32 %v901_v21, %v872_v22  ;;  %v1029_v21 = vld [vmem:[%s1929_s2] sm:$0xff] }
 0xc12   :  { %1053 = vmatpush.msrb.mxu0 %v1029_v21  ;;  %1211 = vmatpush.msra.mxu2 %v1029_v21 }
 0xc13   :  { %1484 = vtanh.f32 %v903_v23  ;;  %v1386_v4 = vmul.f32 -1.442695, %v903_v23 }
 0xc14   :  { %1486 = vpow2.f32 %v1387_v24 }
 0xc15   :  { %1488 = vpow2.f32 %v1386_v4  ;;  %v1028_v4 = vld [vmem:[#allocation2] sm:$0xc] }
 0xc19   :  { %v1485_v3 = vpop.eup %1484 }
 0xc1a   :  { %962 = vrot.lane.b32.xlu2 %v1485_v3, %s1560_s4  ;;  %v1487_v25 = vpop.eup %1486 }
 0xc1b   :  { %v980_v6 = vadd.f32 1.0, %v1487_v25  ;;  %v1489_v26 = vpop.eup %1488 }
 0xc1c   :  { %v940_v27 = vadd.f32 1.0, %v1489_v26 }
 0xc1d   :  { %1490 = vrcp.f32 %v980_v6  ;;  %v992_v12 = vand.u32 2147483648, %v980_v6  ;;  %vm986_vm0 = vweird.f32 %v980_v6  ;;  %v990_v30 = vand.u32 2147483647, %v980_v6 }
 0xc1e   :  { %1492 = vrcp.f32 %v940_v27  ;;  %v952_v37 = vand.u32 2147483648, %v940_v27  ;;  %vm946_vm4 = vweird.f32 %v940_v27  ;;  %v950_v39 = vand.u32 2147483647, %v940_v27 }
 0xc1f   :  { %v993_v33 = vor.u32 1.1754944e-38, %v992_v12  ;;  %vm991_vm2 = vcmp.eq.f32.partialorder %v990_v30, 8.507059e+37 }
 0xc20   :  { %v953_v41 = vor.u32 1.1754944e-38, %v952_v37  ;;  %vm951_vm6 = vcmp.eq.f32.partialorder %v950_v39, 8.507059e+37 }
 0xc23   :  { %v1491_v28 = vpop.eup %1490 }
 0xc24   :  { %v982_v29 = vmul.f32 %v1491_v28, %v980_v6  ;;  %v1493_v7 = vpop.eup %1492  ;;  %vm987_vm15 = vweird.f32 %v1491_v28 }
 0xc25   :  { %v942_v17 = vmul.f32 %v1493_v7, %v940_v27  ;;  %vm988_vm1 = vmor %vm986_vm0, %vm987_vm15  ;;  %vm947_vm3 = vweird.f32 %v1493_v7  ;;  %v1027_v27 = vld [vmem:[#allocation2 + $0x18] sm:$0x30] }
 0xc26   :  { %v983_v15 = vsub.f32 1.0, %v982_v29  ;;  %vm948_vm5 = vmor %vm946_vm4, %vm947_vm3 }
 0xc27   :  { %v943_v10 = vsub.f32 1.0, %v942_v17 }
 0xc28   :  { %v984_v9 = vmul.f32 %v1491_v28, %v983_v15 }
 0xc29   :  { %v944_v31 = vmul.f32 %v1493_v7, %v943_v10 }
 0xc2a   :  { %v985_v11 = vadd.f32 %v1491_v28, %v984_v9 }
 0xc2b   :  { %v945_v34 = vadd.f32 %v1493_v7, %v944_v31 }
 0xc2c   :  { %v989_v32 = vsel %vm988_vm1, %v1491_v28, %v985_v11 }
 0xc2d   :  { %v994_v36 = vsel %vm991_vm2, %v993_v33, %v989_v32  ;;  %v949_v40 = vsel %vm948_vm5, %v1493_v7, %v945_v34 }
 0xc2e   :  { %v954_v42 = vsel %vm951_vm6, %v953_v41, %v949_v40  ;;  %v1000_v46 = vmul.f32 %v998_v45, %v994_v36 }
 0xc2f   :  { %v960_v51 = vmul.f32 %v958_v50, %v954_v42 }
 0xc6e   :  { %v1003_v35 = vpop.permute.xlu1 %1002 }
 0xc6f   :  { %v1005_v38 = vmul.f32 %v1003_v35, %v994_v36 }
 0xc71   :  { %1007 = vrot.lane.b32.xlu0 %v1005_v38, %s1561_s19 }
 0xc74   :  { %v963_v43 = vpop.permute.xlu2 %962 }
 0xc75   :  { %v965_v44 = vmul.f32 %v963_v43, %v954_v42 }
 0xc77   :  { %967 = vrot.lane.b32.xlu1 %v965_v44, %s1561_s19 }
 0xce3   :  { %v1008_v47 = vpop.permute.xlu0 %1007 }
 0xce4   :  { %v1821_v48 = vadd.f32 %v1008_v47, %v1000_v46 }
 0xce6   :  { %1494 = vtanh.f32 %v1821_v48 }
 0xce9   :  { %v968_v53 = vpop.permute.xlu1 %967 }
 0xcea   :  { %v1825_v54 = vadd.f32 %v968_v53, %v960_v51 }
 0xcec   :  { %v1495_v57 = vpop.eup %1494  ;;  %1496 = vtanh.f32 %v1825_v54  ;;  %v1116_v61 = vrot.slane %v1825_v54, 6 }
 0xced   :  { %1013 = vrot.lane.b32.xlu2 %v1495_v57, %s1560_s4 }
 0xcf2   :  { %v1497_v52 = vpop.eup %1496 }
 0xcf3   :  { %973 = vrot.lane.b32.xlu0 %v1497_v52, %s1560_s4 }
 0xd47   :  { %v1014_v49 = vpop.permute.xlu2 %1013 }
 0xd48   :  { %v1830_v56 = vmul.f32 %v1014_v49, %v994_v36 }
 0xd4a   :  { %v1066_v58 = vrot.slane %v1830_v56, 4 }
 0xd4c   :  { %1067 = vrot.lane.b32.xlu1 %v1066_v58, %s1561_s19  ;;  %v1156_v58 = vrot.slane %v1821_v48, 2 }
 0xd65   :  { %v974_v63 = vpop.permute.xlu0 %973 }
 0xd66   :  { %v1837_v13 = vmul.f32 %v974_v63, %v954_v42 }
 0xd68   :  { %v1033_v16 = vrot.slane %v1837_v13, 2 }
 0xd6a   :  { %1034 = vrot.lane.b32.xlu2 %v1033_v16, %s1561_s19 }
 0xdbe   :  { %v1068_v22 = vpop.permute.xlu1 %1067 }
 0xdbf   :  { %1389 = vmatmul.msk.f32.vlgmr.msrb.gmra.mxu1 %vm111_vm9, %v1068_v22 }
 0xdc4   :  { %v1035_v23 = vpop.permute.xlu2 %1034 }
 0xdc5   :  { %1388 = vmatmul.msk.f32.vlgmr.msrb.gmra.mxu0 %vm111_vm9, %v1035_v23 }
 0xe3c   :  { %v1088_v3 = vpop.f32.mrf.mxu1 }
 0xe3d   :  { %v1092_v24 = vrot.slane %v1088_v3, 6 }
 0xe3f   :  { %v1094_v25 = vadd.f32 %v1092_v24, %v1028_v4 }
 0xe41   :  { %1498 = vtanh.f32 %v1094_v25  ;;  %v1391_v15 = vmul.f32 -1.442695, %v1094_v25  ;;  %v1186_v25 = vld [vmem:[#allocation2] sm:$0x3] }
 0xe42   :  { %v1055_v6 = vpop.f32.mrf.mxu0 }
 0xe43   :  { %v1059_v26 = vrot.slane %v1055_v6, 4 }
 0xe45   :  { %v1061_v28 = vadd.f32 %v1059_v26, %v1027_v27 }
 0xe47   :  { %v1499_v29 = vpop.eup %1498  ;;  %1500 = vtanh.f32 %v1061_v28  ;;  %v1390_v17 = vmul.f32 -1.442695, %v1061_v28 }
 0xe48   :  { %1160 = vrot.lane.b32.xlu0 %v1499_v29, %s1560_s4  ;;  %1502 = vpow2.f32 %v1391_v15  ;;  %v1185_v29 = vld [vmem:[#allocation2 + $0x18] sm:$0xc0] }
 0xe49   :  { %1504 = vpow2.f32 %v1390_v17 }
 0xe4d   :  { %v1501_v7 = vpop.eup %1500 }
 0xe4e   :  { %1120 = vrot.lane.b32.xlu1 %v1501_v7, %s1560_s4  ;;  %v1503_v9 = vpop.eup %1502 }
 0xe4f   :  { %v1138_v10 = vadd.f32 1.0, %v1503_v9  ;;  %v1505_v11 = vpop.eup %1504 }
 0xe50   :  { %v1098_v12 = vadd.f32 1.0, %v1505_v11 }
 0xe51   :  { %1506 = vrcp.f32 %v1138_v10  ;;  %v1150_v38 = vand.u32 2147483648, %v1138_v10  ;;  %vm1144_vm8 = vweird.f32 %v1138_v10  ;;  %v1148_v39 = vand.u32 2147483647, %v1138_v10 }
 0xe52   :  { %1508 = vrcp.f32 %v1098_v12  ;;  %v1110_v46 = vand.u32 2147483648, %v1098_v12  ;;  %vm1104_vm14 = vweird.f32 %v1098_v12  ;;  %v1108_v50 = vand.u32 2147483647, %v1098_v12 }
 0xe53   :  { %v1151_v42 = vor.u32 1.1754944e-38, %v1150_v38  ;;  %vm1149_vm12 = vcmp.eq.f32.partialorder %v1148_v39, 8.507059e+37 }
 0xe54   :  { %v1111_v53 = vor.u32 1.1754944e-38, %v1110_v46  ;;  %vm1109_vm0 = vcmp.eq.f32.partialorder %v1108_v50, 8.507059e+37 }
 0xe57   :  { %v1507_v30 = vpop.eup %1506 }
 0xe58   :  { %v1140_v31 = vmul.f32 %v1507_v30, %v1138_v10  ;;  %v1509_v32 = vpop.eup %1508  ;;  %vm1145_vm7 = vweird.f32 %v1507_v30 }
 0xe59   :  { %v1100_v34 = vmul.f32 %v1509_v32, %v1098_v12  ;;  %vm1146_vm11 = vmor %vm1144_vm8, %vm1145_vm7  ;;  %vm1105_vm13 = vweird.f32 %v1509_v32 }
 0xe5a   :  { %v1141_v33 = vsub.f32 1.0, %v1140_v31  ;;  %vm1106_vm15 = vmor %vm1104_vm14, %vm1105_vm13  ;;  %vm399_vm13 = vcmask 257026   ;;  %vm1354_vm14 = vcmask 523264  }
 0xe5b   :  { %v1101_v36 = vsub.f32 1.0, %v1100_v34 }
 0xe5c   :  { %v1142_v35 = vmul.f32 %v1507_v30, %v1141_v33 }
 0xe5d   :  { %v1102_v40 = vmul.f32 %v1509_v32, %v1101_v36 }
 0xe5e   :  { %v1143_v37 = vadd.f32 %v1507_v30, %v1142_v35 }
 0xe5f   :  { %v1103_v43 = vadd.f32 %v1509_v32, %v1102_v40 }
 0xe60   :  { %v1147_v41 = vsel %vm1146_vm11, %v1507_v30, %v1143_v37  ;;  %vm248_vm11 = vcmask 261126  }
 0xe61   :  { %v1152_v45 = vsel %vm1149_vm12, %v1151_v42, %v1147_v41  ;;  %v1107_v51 = vsel %vm1106_vm15, %v1509_v32, %v1103_v43  ;;  %vm405_vm12 = vcmask 259076  }
 0xe62   :  { %v1112_v52 = vsel %vm1109_vm0, %v1111_v53, %v1107_v51  ;;  %v1158_v55 = vmul.f32 %v1156_v58, %v1152_v45 }
 0xe63   :  { %v1118_v63 = vmul.f32 %v1116_v61, %v1112_v52 }
 0xeba   :  { %v1161_v44 = vpop.permute.xlu0 %1160 }
 0xebb   :  { %v1163_v47 = vmul.f32 %v1161_v44, %v1152_v45 }
 0xebd   :  { %1165 = vrot.lane.b32.xlu2 %v1163_v47, %s1561_s19 }
 0xec0   :  { %v1121_v57 = vpop.permute.xlu1 %1120 }
 0xec1   :  { %v1123_v49 = vmul.f32 %v1121_v57, %v1112_v52 }
 0xec3   :  { %1125 = vrot.lane.b32.xlu0 %v1123_v49, %s1561_s19 }
 0xf17   :  { %v1166_v62 = vpop.permute.xlu2 %1165 }
 0xf18   :  { %v1857_v0 = vadd.f32 %v1166_v62, %v1158_v55 }
 0xf1a   :  { %1510 = vtanh.f32 %v1857_v0  ;;  %v1311_v62 = vrot.slane %v1857_v0, 2 }
 0xf20   :  { %v1511_v1 = vpop.eup %1510 }
 0xf21   :  { %1171 = vrot.lane.b32.xlu1 %v1511_v1, %s1560_s4 }
 0xf35   :  { %v1126_v16 = vpop.permute.xlu0 %1125 }
 0xf36   :  { %v1862_v19 = vadd.f32 %v1126_v16, %v1118_v63 }
 0xf38   :  { %1512 = vtanh.f32 %v1862_v19  ;;  %v1271_v16 = vrot.slane %v1862_v19, 6 }
 0xf3e   :  { %v1513_v20 = vpop.eup %1512 }
 0xf3f   :  { %1131 = vrot.lane.b32.xlu2 %v1513_v20, %s1560_s4 }
 0xf93   :  { %v1172_v48 = vpop.permute.xlu1 %1171 }
 0xf94   :  { %v1866_v21 = vmul.f32 %v1172_v48, %v1152_v45 }
 0xf96   :  { %v1224_v22 = vrot.slane %v1866_v21, 2 }
 0xf98   :  { %1225 = vrot.lane.b32.xlu0 %v1224_v22, %s1561_s19 }
 0xf99   :  { %v1132_v23 = vpop.permute.xlu2 %1131 }
 0xf9a   :  { %v1870_v3 = vmul.f32 %v1132_v23, %v1112_v52 }
 0xf9c   :  { %v1191_v54 = vrot.slane %v1870_v3, 4 }
 0xf9e   :  { %1192 = vrot.lane.b32.xlu1 %v1191_v54, %s1561_s19 }
0x100a   :  { %v1226_v24 = vpop.permute.xlu0 %1225 }
0x100b   :  { %1393 = vmatmul.msk.f32.vlgmr.msra.gmra.mxu3 %vm111_vm9, %v1226_v24 }
0x1010   :  { %v1193_v4 = vpop.permute.xlu1 %1192 }
0x1011   :  { %1392 = vmatmul.msk.f32.vlgmr.msra.gmra.mxu2 %vm111_vm9, %v1193_v4 }
0x108e   :  { %v1246_v6 = vpop.f32.mrf.mxu3 }
0x108f   :  { %v1249_v26 = vadd.f32 %v1246_v6, %v1186_v25 }
0x1091   :  { %1514 = vtanh.f32 %v1249_v26  ;;  %v1395_v9 = vmul.f32 -1.442695, %v1249_v26 }
0x1094   :  { %v1213_v27 = vpop.f32.mrf.mxu2 }
0x1095   :  { %v1217_v28 = vrot.slane %v1213_v27, 2 }
0x1097   :  { %v1515_v7 = vpop.eup %1514  ;;  %v1219_v15 = vadd.f32 %v1217_v28, %v1185_v29 }
0x1098   :  { %1315 = vrot.lane.b32.xlu2 %v1515_v7, %s1560_s4 }
0x1099   :  { %1516 = vtanh.f32 %v1219_v15  ;;  %v1394_v32 = vmul.f32 -1.442695, %v1219_v15 }
0x109a   :  { %1518 = vpow2.f32 %v1395_v9 }
0x109f   :  { %v1517_v17 = vpop.eup %1516 }
0x10a0   :  { %1275 = vrot.lane.b32.xlu0 %v1517_v17, %s1560_s4  ;;  %v1519_v10 = vpop.eup %1518 }
0x10a1   :  { %v1293_v11 = vadd.f32 1.0, %v1519_v10 }
0x10a3   :  { %1520 = vrcp.f32 %v1293_v11  ;;  %v1305_v35 = vand.u32 2147483648, %v1293_v11  ;;  %vm1299_vm2 = vweird.f32 %v1293_v11  ;;  %v1303_v36 = vand.u32 2147483647, %v1293_v11 }
0x10a4   :  { %1522 = vpow2.f32 %v1394_v32 }
0x10a5   :  { %v1306_v39 = vor.u32 1.1754944e-38, %v1305_v35  ;;  %vm1304_vm4 = vcmp.eq.f32.partialorder %v1303_v36, 8.507059e+37 }
0x10a9   :  { %v1521_v12 = vpop.eup %1520 }
0x10aa   :  { %v1295_v30 = vmul.f32 %v1521_v12, %v1293_v11  ;;  %vm1300_vm1 = vweird.f32 %v1521_v12  ;;  %v1523_v37 = vpop.eup %1522 }
0x10ab   :  { %vm1301_vm3 = vmor %vm1299_vm2, %vm1300_vm1  ;;  %v1253_v40 = vadd.f32 1.0, %v1523_v37 }
0x10ac   :  { %v1296_v31 = vsub.f32 1.0, %v1295_v30 }
0x10ad   :  { %1524 = vrcp.f32 %v1253_v40  ;;  %v1265_v51 = vand.u32 2147483648, %v1253_v40  ;;  %vm1259_vm6 = vweird.f32 %v1253_v40  ;;  %v1263_v53 = vand.u32 2147483647, %v1253_v40 }
0x10ae   :  { %v1297_v33 = vmul.f32 %v1521_v12, %v1296_v31 }
0x10af   :  { %v1266_v52 = vor.u32 1.1754944e-38, %v1265_v51  ;;  %vm1264_vm8 = vcmp.eq.f32.partialorder %v1263_v53, 8.507059e+37 }
0x10b0   :  { %v1298_v34 = vadd.f32 %v1521_v12, %v1297_v33 }
0x10b2   :  { %v1302_v38 = vsel %vm1301_vm3, %v1521_v12, %v1298_v34 }
0x10b3   :  { %v1307_v41 = vsel %vm1304_vm4, %v1306_v39, %v1302_v38  ;;  %v1525_v44 = vpop.eup %1524 }
0x10b4   :  { %v1255_v45 = vmul.f32 %v1525_v44, %v1253_v40  ;;  %vm1260_vm5 = vweird.f32 %v1525_v44  ;;  %v1313_v1 = vmul.f32 %v1311_v62, %v1307_v41 }
0x10b5   :  { %vm1261_vm7 = vmor %vm1259_vm6, %vm1260_vm5 }
0x10b6   :  { %v1256_v46 = vsub.f32 1.0, %v1255_v45 }
0x10b8   :  { %v1257_v47 = vmul.f32 %v1525_v44, %v1256_v46 }
0x10ba   :  { %v1258_v50 = vadd.f32 %v1525_v44, %v1257_v47 }
0x10bc   :  { %v1262_v57 = vsel %vm1261_vm7, %v1525_v44, %v1258_v50 }
0x10bd   :  { %v1267_v58 = vsel %vm1264_vm8, %v1266_v52, %v1262_v57 }
0x10be   :  { %v1273_v20 = vmul.f32 %v1271_v16, %v1267_v58 }
0x10f2   :  { %v1316_v42 = vpop.permute.xlu2 %1315 }
0x10f3   :  { %v1318_v43 = vmul.f32 %v1316_v42, %v1307_v41 }
0x10f5   :  { %1320 = vrot.lane.b32.xlu1 %v1318_v43, %s1561_s19 }
0x1112   :  { %v1276_v49 = vpop.permute.xlu0 %1275 }
0x1113   :  { %v1278_v55 = vmul.f32 %v1276_v49, %v1267_v58 }
0x1115   :  { %1280 = vrot.lane.b32.xlu2 %v1278_v55, %s1561_s19 }
0x111d   :  { %245 = vrot.lane.b32.xlu2 %v1706_v18, %s1561_s19 }
0x1125   :  { %868 = vrot.lane.b32.xlu2 %v1808_v60, %s1561_s19 }
0x1167   :  { %v1321_v61 = vpop.permute.xlu1 %1320 }
0x1168   :  { %v1323_v63 = vadd.f32 %v1321_v61, %v1313_v1 }
0x116a   :  { %1526 = vtanh.f32 %v1323_v63 }
0x116f   :  { %v1281_v48 = vpop.permute.xlu2 %1280 }
0x1170   :  { %v1527_v22 = vpop.eup %1526  ;;  %v1283_v23 = vadd.f32 %v1281_v48, %v1273_v20 }
0x1171   :  { %1326 = vrot.lane.b32.xlu0 %v1527_v22, %s1560_s4 }
0x1172   :  { %1528 = vtanh.f32 %v1283_v23 }
0x1177   :  { %v246_v18 = vpop.permute.xlu2 %245 }
0x1178   :  { %v1529_v54 = vpop.eup %1528  ;;  %249 = vst.msk [vmem:[#allocation4 + $0x8] sm:$0xc0] %vm248_vm11, %v246_v18 }
0x1179   :  { %402 = vrot.lane.b32.xlu0 %v1736_v5, %s1561_s19  ;;  %1286 = vrot.lane.b32.xlu1 %v1529_v54, %s1560_s4 }
0x117f   :  { %v869_v60 = vpop.permute.xlu2 %868 }
0x1180   :  { %871 = vst.msk [vmem:[#allocation4] sm:$0xc0] %vm248_vm11, %v869_v60 }
0x1181   :  { %1023 = vrot.lane.b32.xlu0 %v1830_v56, %s1561_s19  ;;  %561 = vrot.lane.b32.xlu1 %v1762_v2, %s1561_s19 }
0x1189   :  { %396 = vrot.lane.b32.xlu0 %v1740_v14, %s1561_s19  ;;  %1181 = vrot.lane.b32.xlu1 %v1866_v21, %s1561_s19 }
0x1191   :  { %1018 = vrot.lane.b32.xlu0 %v1837_v13, %s1561_s19  ;;  %556 = vrot.lane.b32.xlu1 %v1766_v8, %s1561_s19 }
0x1199   :  { %1176 = vrot.lane.b32.xlu1 %v1870_v3, %s1561_s19 }
0x11e3   :  { %v1327_v5 = vpop.permute.xlu0 %1326 }
0x11e4   :  { %v1329_v56 = vmul.f32 %v1327_v5, %v1307_v41 }
0x11e6   :  { %1336 = vrot.lane.b32.xlu2 %v1329_v56, %s1561_s19 }
0x11eb   :  { %v403_v2 = vpop.permute.xlu0 %402  ;;  %v1287_v0 = vpop.permute.xlu1 %1286 }
0x11ec   :  { %406 = vst.msk [vmem:[#allocation4 + $0x8] sm:$0x30] %vm405_vm12, %v403_v2  ;;  %v1289_v19 = vmul.f32 %v1287_v0, %v1267_v58 }
0x11ee   :  { %711 = vrot.lane.b32.xlu2 %v1787_v59, %s1561_s19 }
0x11f3   :  { %v1024_v14 = vpop.permute.xlu0 %1023  ;;  %v562_v13 = vpop.permute.xlu1 %561 }
0x11f4   :  { %1026 = vst.msk [vmem:[#allocation4] sm:$0x30] %vm405_vm12, %v1024_v14 }
0x11f5   :  { %564 = vst.msk [vmem:[#allocation4 + $0x8] sm:$0xc] %vm399_vm13, %v562_v13 }
0x11f6   :  { %1331 = vrot.lane.b32.xlu2 %v1289_v19, %s1561_s19 }
0x11fb   :  { %v397_v8 = vpop.permute.xlu0 %396  ;;  %v1182_v21 = vpop.permute.xlu1 %1181 }
0x11fc   :  { %400 = vst.msk [vmem:[#allocation3] sm:$0xc] %vm399_vm13, %v397_v8  ;;  %v1343_v3 = vld [vmem:[#allocation4 + $0x8] sm:$0xff] }
0x11fd   :  { %1184 = vst.msk [vmem:[#allocation4] sm:$0xc] %vm399_vm13, %v1182_v21  ;;  %1348 = vrot.lane.b32.xlu1 %v1343_v3, %s1561_s19 }
0x1203   :  { %v1019_v24 = vpop.permute.xlu0 %1018  ;;  %v557_v4 = vpop.permute.xlu1 %556 }
0x1204   :  { %1021 = vst.msk [vmem:[#allocation3 + $0x8] sm:$0xc] %vm399_vm13, %v1019_v24 }
0x1205   :  { %559 = vst.msk [vmem:[#allocation3] sm:$0x30] %vm405_vm12, %v557_v4 }
0x120b   :  { %v1177_v59 = vpop.permute.xlu1 %1176 }
0x120c   :  { %1179 = vst.msk [vmem:[#allocation3 + $0x8] sm:$0x30] %vm405_vm12, %v1177_v59 }
0x1240   :  { %v1337_v25 = vpop.permute.xlu2 %1336 }
0x1241   :  { %1339 = vst.msk [vmem:[#allocation4] sm:$0x3] %vm242_vm10, %v1337_v25 }
0x1248   :  { %v712_v6 = vpop.permute.xlu2 %711  ;;  %v1342_v26 = vld [vmem:[#allocation4] sm:$0xff] }
0x1249   :  { %714 = vst.msk [vmem:[#allocation3] sm:$0xc0] %vm248_vm11, %v712_v6  ;;  %1346 = vrot.lane.b32.xlu0 %v1342_v26, %s1561_s19 }
0x1250   :  { %v1332_v27 = vpop.permute.xlu2 %1331  ;;  %v1340_v17 = vld [vmem:[#allocation3] sm:$0xff] }
0x1251   :  { %1334 = vst.msk [vmem:[#allocation3 + $0x8] sm:$0xc0] %vm248_vm11, %v1332_v27 }
0x1258   :  { %v1341_v29 = vld [vmem:[#allocation3 + $0x8] sm:$0xff] }
0x126f   :  { %v1349_v28 = vpop.permute.xlu1 %1348 }
0x1270   :  { %v1353_v7 = vsel %vm111_vm9, %v1341_v29, %v1349_v28 }
0x1271   :  { %1356 = vst.msk [vmem:[%s1932_s5 + $0x8] sm:$0xff] %vm1354_vm14, %v1353_v7 }
0x12bb   :  { %v1347_v15 = vpop.permute.xlu0 %1346 }
0x12bc   :  { %v1352_v9 = vsel %vm111_vm9, %v1340_v17, %v1347_v15 }
0x12bd   :  { %1355 = vst.msk [vmem:[%s1932_s5] sm:$0xff] %vm1354_vm14, %v1352_v9 }
0x12be   :  { %1361 = vsyncpa [#allocation6], 1 }

</bundles_post_ra>
